<compile_context>
chip_gen: v5e
topology: v5e:2x2
jax: 0.10.0
libtpu: 0.0.40
codegen_flags: <defaults>
</compile_context>

<pallas_src>
import functools

import jax
import jax.numpy as jnp
from jax.experimental import pallas as pl
from jax.experimental.pallas import tpu as pltpu


_COMPILER_PARAMS = pltpu.CompilerParams(dimension_semantics=("parallel",))


# ----------------------------- small helpers --------------------------------

def _full(a):
    """Full-array (grid-invariant) BlockSpec for a weight tensor."""
    return pl.BlockSpec(a.shape, lambda i, _nd=a.ndim: (0,) * _nd)


def _leaky(x):
    return jnp.where(x >= 0.0, x, 0.1 * x)          # LeakyReLU(0.1)


def _atan2(y, x):
    """Elementwise atan2 built from guaranteed-lowerable ops.
    Uses the Abramowitz&Stegun 4.4.49 minimax polynomial (|err| <= 1e-5 rad).
    atan2(0, 0) == 0 (matches torch.angle(0))."""
    ax = jnp.abs(x)
    ay = jnp.abs(y)
    mx = jnp.maximum(ax, ay)
    mn = jnp.minimum(ax, ay)
    z = mn / jnp.where(mx > 0.0, mx, 1.0)
    z2 = z * z
    p = 0.9998660 + z2 * (-0.3302995 + z2 * (0.1801410
                                             + z2 * (-0.0851330 + z2 * 0.0208351)))
    a = z * p
    a = jnp.where(ay > ax, (0.5 * jnp.pi) - a, a)
    a = jnp.where(x < 0.0, jnp.pi - a, a)
    return jnp.where(y < 0.0, -a, a)


def _group_norm(v, A, gamma, beta, eps=1e-6):
    """GroupNorm on a (C, L) tile.  A is (C, C) group-averaging matrix with
    1/(channels_per_group * L) baked in.  Reduce over lanes first, then one
    narrow matmul per statistic (broadcast to a 128-lane tile so the MXU sees
    a native shape)."""
    cdim = v.shape[0]
    s = jnp.sum(v, axis=1, keepdims=True)                               # (C, 1)
    mu = jnp.dot(A, jnp.broadcast_to(s, (cdim, 128)),
                 preferred_element_type=jnp.float32)[:, 0:1]            # (C, 1)
    d = v - mu
    q = jnp.sum(d * d, axis=1, keepdims=True)
    var = jnp.dot(A, jnp.broadcast_to(q, (cdim, 128)),
                  preferred_element_type=jnp.float32)[:, 0:1]
    return d * jax.lax.rsqrt(var + eps) * gamma + beta


# -------------------------- packed weight layout -----------------------------

def _col_layout(c):
    """Column layout of the three row-grouped weight packs (pure fn of c)."""
    ch, cr = c // 2, c // 2 + 1

    def offs(spec):
        d, o = {}, 0
        for name, wd in spec:
            d[name] = (o, wd)
            o += wd
        return d, o

    A = offs([('Gre', cr), ('Gim', cr), ('A1', c), ('g1', 1), ('b1', 1),
              ('mw_a', ch), ('mw_b', ch), ('mb', 1)])                  # c rows
    B = offs([('Fre', c), ('Fim', c), ('a0w1', cr), ('a0b1', 1),
              ('a0w2', cr), ('a0b2', 1)])                              # cr rows
    Cc = offs([('ws1', c), ('bs1', 1), ('ws2', c), ('bs2', 1),
               ('amw1', ch), ('amb1', 1), ('amw2', ch), ('amb2', 1),
               ('phw1', ch), ('phb1', 1), ('phw2', ch), ('phb2', 1),
               ('dw1', 9), ('db1', 1), ('pwc1', ch), ('pcb1', 1),
               ('A2', ch), ('g2', 1), ('b2', 1),
               ('dw2', 9), ('db2', 1), ('pwc2', ch), ('pcb2', 1)])     # ch rows
    return A, B, Cc


# --------------------------------- kernel ------------------------------------

def _res_four6_kernel(x_ref, pA_ref, pB_ref, pC_ref, fs_ref, gr_ref, gi_ref,
                      mask_ref, o_ref, *, h, w, lp, A_cols, B_cols, C_cols):
    """Whole Res_four6 forward for one sample, fully fused.

    Layouts: activations (C, L=H*W) with channels on sublanes, space on lanes.
    Channel rfft/irfft and spatial rfft2/irfft2 are explicit real-DFT matmuls.
    Depthwise 3x3 = pltpu.roll lane shifts + precomputed (9, L) border mask."""
    l = h * w
    x = x_ref[0]                                   # (C, L)
    pA = pA_ref[...]
    pB = pB_ref[...]
    pC = pC_ref[...]

    def sl(mat, cols, name):
        o, wd = cols[name]
        return mat[:, o:o + wd]

    ca = functools.partial(sl, pA, A_cols)
    cb = functools.partial(sl, pB, B_cols)
    cc = functools.partial(sl, pC, C_cols)

    # ---- channel-axis rfft -> ampconv0 -> irfft -> residual -> norm1 ----
    re = jnp.dot(cb('Fre'), x, preferred_element_type=jnp.float32)      # (cr, L)
    im = jnp.dot(cb('Fim'), x, preferred_element_type=jnp.float32)
    amp = jnp.sqrt(re * re + im * im)
    t0 = _leaky(jnp.dot(cb('a0w1'), amp,
                        preferred_element_type=jnp.float32) + cb('a0b1'))
    amp2 = jnp.dot(cb('a0w2'), t0,
                   preferred_element_type=jnp.float32) + cb('a0b2')
    # amp2 * exp(i*angle) via cos = re/amp, sin = im/amp  (angle(0) == 0)
    pos = amp > 0.0
    inv = pl.reciprocal(jnp.where(pos, amp, 1.0), approx=True)          # EUP
    cosp = jnp.where(pos, re * inv, 1.0)
    sinp = jnp.where(pos, im * inv, 0.0)
    hf = (jnp.dot(ca('Gre'), amp2 * cosp, preferred_element_type=jnp.float32)
          + jnp.dot(ca('Gim'), amp2 * sinp, preferred_element_type=jnp.float32))
    hres = x + hf
    hn = _group_norm(hres, ca('A1'), ca('g1'), ca('b1'))

    # ---- split convs (1x1) ----
    x1 = jnp.dot(cc('ws1'), hn, preferred_element_type=jnp.float32) + cc('bs1')
    h2 = jnp.dot(cc('ws2'), hn, preferred_element_type=jnp.float32) + cc('bs2')
    h2 = h2 * jax.nn.sigmoid(h2)                     # nonlinearity (swish)

    # ---- spatial rfft2 branch on x1 (2D DFT as matmuls) ----
    spec = jnp.dot(x1, fs_ref[...], preferred_element_type=jnp.float32)  # (ch, 2*Lp)
    sr = spec[:, 0:lp]
    si = spec[:, lp:2 * lp]
    amp_s = jnp.sqrt(sr * sr + si * si)
    pha_s = _atan2(si, sr)
    a1_ = _leaky(jnp.dot(cc('amw1'), amp_s,
                         preferred_element_type=jnp.float32) + cc('amb1'))
    a2_ = jnp.dot(cc('amw2'), a1_,
                  preferred_element_type=jnp.float32) + cc('amb2')
    p1_ = _leaky(jnp.dot(cc('phw1'), pha_s,
                         preferred_element_type=jnp.float32) + cc('phb1'))
    p2_ = jnp.dot(cc('phw2'), p1_,
                  preferred_element_type=jnp.float32) + cc('phb2')
    re2 = a2_ * jnp.cos(p2_)
    im2 = a2_ * jnp.sin(p2_)
    # padded spectral lanes (>= H*(W//2+1)) hit zero rows of GR/GI
    x11 = (jnp.dot(re2, gr_ref[...], preferred_element_type=jnp.float32)
           + jnp.dot(im2, gi_ref[...], preferred_element_type=jnp.float32))
    x1p = x1 + x11

    # ---- conv path: dw3x3 + pw, norm2 + swish, dw3x3 + pw ----
    taps = [(di, dj) for di in (-1, 0, 1) for dj in (-1, 0, 1)]

    def dw3x3(v, w9, bias):
        acc = jnp.zeros_like(v)
        for t, (di, dj) in enumerate(taps):
            sft = di * w + dj                          # flattened neighbor offset
            nbr = v if sft == 0 else pltpu.roll(v, shift=(-sft) % l, axis=1)
            acc = acc + w9[:, t:t + 1] * (mask_ref[t:t + 1, :] * nbr)
        return acc + bias

    d1 = dw3x3(h2, cc('dw1'), cc('db1'))
    y1 = jnp.dot(cc('pwc1'), d1, preferred_element_type=jnp.float32) + cc('pcb1')
    yn = _group_norm(y1, cc('A2'), cc('g2'), cc('b2'))
    yn = yn * jax.nn.sigmoid(yn)
    # TODO(synk): Dropout is identity here (eval mode / p = 0.0).
    d2 = dw3x3(yn, cc('dw2'), cc('db2'))
    hh = jnp.dot(cc('pwc2'), d2, preferred_element_type=jnp.float32) + cc('pcb2')

    # ---- x1 = x1 + x11 ; mergeconv over implicit [x1 | h] ; outer residual ----
    m = (jnp.dot(ca('mw_a'), x1p, preferred_element_type=jnp.float32)
         + jnp.dot(ca('mw_b'), hh, preferred_element_type=jnp.float32)
         + ca('mb'))
    o_ref[0] = x + m


# ------------------------------ DFT matrices ---------------------------------

def _dft_mats_1d(c):
    """rfft / irfft along a length-c axis as f32 matrices.
    Forward:  Re = Fre @ x, Im = Fim @ x      (Fre/Fim: (c//2+1, c))
    Inverse:  x  = Gre @ Re + Gim @ Im        (Gre/Gim: (c, c//2+1))"""
    cr = c // 2 + 1
    k = jnp.arange(cr, dtype=jnp.float32)
    n = jnp.arange(c, dtype=jnp.float32)
    ang = 2.0 * jnp.pi * k[:, None] * n[None, :] / c
    fre = jnp.cos(ang)
    fim = -jnp.sin(ang)
    idx = jnp.arange(cr)
    nyq = c // 2 if c % 2 == 0 else -1
    wgt = jnp.where((idx == 0) | (idx == nyq), 1.0, 2.0)      # Hermitian weights
    ang_g = 2.0 * jnp.pi * n[:, None] * k[None, :] / c
    gre = jnp.cos(ang_g) * (wgt[None, :] / c)
    gim = -jnp.sin(ang_g) * (wgt[None, :] / c)
    return (fre.astype(jnp.float32), fim.astype(jnp.float32),
            gre.astype(jnp.float32), gim.astype(jnp.float32))


def _dft_mats_2d(h, w, lp):
    """rfft2 / irfft2 over (h, w) as dense real matrices (norm='backward').
    Forward:  [Re | Im] = x_flat @ FS            FS: (h*w, 2*lp)
    Inverse:  x_flat    = Re @ GR + Im @ GI      GR/GI: (lp, h*w)
    Spectral flat index m = u*(w//2+1) + v; rows/cols >= h*(w//2+1) are zero."""
    wr = w // 2 + 1
    l = h * w
    lr = h * wr
    li = jnp.arange(l)
    r = (li // w).astype(jnp.float32)
    cg = (li % w).astype(jnp.float32)
    mi = jnp.arange(lr)
    vi = mi % wr
    u = (mi // wr).astype(jnp.float32)
    v = vi.astype(jnp.float32)
    frac = jnp.outer(r, u) / h + jnp.outer(cg, v) / w
    theta = 2.0 * jnp.pi * jnp.mod(frac, 1.0)                 # (l, lr)
    fr = jnp.cos(theta)
    fi = -jnp.sin(theta)
    nyq_v = w // 2 if w % 2 == 0 else -1
    wgt = jnp.where((vi == 0) | (vi == nyq_v), 1.0, 2.0).astype(jnp.float32)
    gr = (wgt[:, None] * jnp.cos(theta).T) / (h * w)          # (lr, l)
    gi = (-wgt[:, None] * jnp.sin(theta).T) / (h * w)
    fs = jnp.concatenate([jnp.pad(fr, ((0, 0), (0, lp - lr))),
                          jnp.pad(fi, ((0, 0), (0, lp - lr)))], axis=1)
    gr = jnp.pad(gr, ((0, lp - lr), (0, 0)))
    gi = jnp.pad(gi, ((0, lp - lr), (0, 0)))
    return (fs.astype(jnp.float32), gr.astype(jnp.float32), gi.astype(jnp.float32))


def _make_border_mask(h, w):
    """(9, h*w) float mask: mask[t, l] = 1 iff tap t's neighbor of pixel l is
    inside the image (zero padding).  Tap order t = (di+1)*3 + (dj+1)."""
    l = h * w
    li = jnp.arange(l)
    r = li // w
    c_ = li % w
    rows = []
    for di in (-1, 0, 1):
        for dj in (-1, 0, 1):
            ok = ((r + di >= 0) & (r + di < h) & (c_ + dj >= 0) & (c_ + dj < w))
            rows.append(ok.astype(jnp.float32))
    return jnp.stack(rows, axis=0)


# ------------------------------ parameters -----------------------------------

def init_params(key, c, h, w, num_groups=4):
    """Deterministic synthetic parameters matching Res_four6(in=out=c),
    pre-packed into the layout expected by the fused kernel."""
    ch, cr, l = c // 2, c // 2 + 1, h * w
    wr = w // 2 + 1
    lp = ((h * wr + 127) // 128) * 128
    keys = iter(jax.random.split(key, 40))

    def nrm(shape, scale=0.2):
        return (scale * jax.random.normal(next(keys), shape)).astype(jnp.float32)

    fre, fim, gre, gim = _dft_mats_1d(c)
    raw = {
        'Fre': fre, 'Fim': fim, 'Gre': gre, 'Gim': gim,
        # ampconv0 : 1x1 -> LeakyReLU(0.1) -> 1x1 on (c//2 + 1) channels
        'a0w1': nrm((cr, cr)), 'a0b1': nrm((cr, 1), 0.05),
        'a0w2': nrm((cr, cr)), 'a0b2': nrm((cr, 1), 0.05),
        # norm1 affine
        'g1': 1.0 + nrm((c, 1), 0.1), 'b1': nrm((c, 1), 0.1),
        # splitconv1 / splitconv2 : 1x1, c -> c//2
        'ws1': nrm((ch, c)), 'bs1': nrm((ch, 1), 0.05),
        'ws2': nrm((ch, c)), 'bs2': nrm((ch, 1), 0.05),
        # ampconv / phaconv : 1x1 -> LeakyReLU -> 1x1, c//2 -> c//2
        'amw1': nrm((ch, ch)), 'amb1': nrm((ch, 1), 0.05),
        'amw2': nrm((ch, ch)), 'amb2': nrm((ch, 1), 0.05),
        'phw1': nrm((ch, ch)), 'phb1': nrm((ch, 1), 0.05),
        'phw2': nrm((ch, ch)), 'phb2': nrm((ch, 1), 0.05),
        # conv1 : depthwise 3x3 (taps flattened t=(di+1)*3+(dj+1)) + pointwise
        'dw1': nrm((ch, 9)), 'db1': nrm((ch, 1), 0.05),
        'pwc1': nrm((ch, ch)), 'pcb1': nrm((ch, 1), 0.05),
        # norm2 affine
        'g2': 1.0 + nrm((ch, 1), 0.1), 'b2': nrm((ch, 1), 0.1),
        # conv2 : depthwise 3x3 + pointwise
        'dw2': nrm((ch, 9)), 'db2': nrm((ch, 1), 0.05),
        'pwc2': nrm((ch, ch)), 'pcb2': nrm((ch, 1), 0.05),
        'mb': nrm((c, 1), 0.05),
    }
    mw = nrm((c, c))                       # mergeconv 1x1, split for [x1 | h]
    raw['mw_a'] = mw[:, :ch]
    raw['mw_b'] = mw[:, ch:]
    # GroupNorm group-averaging matrices (1/(channels_per_group * L) baked in)
    cpg = c // num_groups
    grp = jnp.arange(c) // cpg
    raw['A1'] = (grp[:, None] == grp[None, :]).astype(jnp.float32) / (cpg * l)
    cpg2 = ch // num_groups
    grp2 = jnp.arange(ch) // cpg2
    raw['A2'] = (grp2[:, None] == grp2[None, :]).astype(jnp.float32) / (cpg2 * l)

    (a_cols, _), (b_cols, _), (c_cols, _) = _col_layout(c)

    def pack(cols):
        names = sorted(cols, key=lambda nm: cols[nm][0])
        return jnp.concatenate([raw[nm].astype(jnp.float32) for nm in names], axis=1)

    fs, gr, gi = _dft_mats_2d(h, w, lp)
    return {'pA': pack(a_cols), 'pB': pack(b_cols), 'pC': pack(c_cols),
            'FS': fs, 'GR': gr, 'GI': gi, 'mask9': _make_border_mask(h, w)}


# -------------------------------- forward ------------------------------------

def res_four6_forward(x, p):
    """Res_four6.forward with in_channels == out_channels (no shortcut conv).
    Single fused pallas_call; grid over the batch, marked 'parallel'."""
    n, c, h, w = x.shape
    l = h * w
    wr = w // 2 + 1
    lp = ((h * wr + 127) // 128) * 128
    (a_cols, _), (b_cols, _), (c_cols, _) = _col_layout(c)

    x_f = x.reshape(n, c, l).astype(jnp.float32)
    kern = functools.partial(_res_four6_kernel, h=h, w=w, lp=lp,
                             A_cols=a_cols, B_cols=b_cols, C_cols=c_cols)
    blk = pl.BlockSpec((1, c, l), lambda i: (i, 0, 0))
    weights = [p['pA'], p['pB'], p['pC'], p['FS'], p['GR'], p['GI'], p['mask9']]

    out = pl.pallas_call(
        kern,
        out_shape=jax.ShapeDtypeStruct((n, c, l), jnp.float32),
        grid=(n,),
        in_specs=[blk] + [_full(wt) for wt in weights],
        out_specs=blk,
        compiler_params=_COMPILER_PARAMS,
    )(x_f, *weights)
    return out.reshape(n, c, h, w)


# --------------------------------- main ---------------------------------------

if __name__ == "__main__":
    key = jax.random.PRNGKey(0)
    kx, kp = jax.random.split(key)
    # in_channels = out_channels = 8 so that GroupNorm(4, C) and
    # GroupNorm(4, C//2) are both valid; dropout = 0.0 (eval mode).
    N, C, H, W = 2, 8, 16, 16
    x = jax.random.normal(kx, (N, C, H, W), dtype=jnp.float32)
    params = init_params(kp, C, H, W)

    fwd = jax.jit(res_four6_forward)
    out = jax.block_until_ready(fwd(x, params))

    assert out.shape == (N, C, H, W), out.shape
    assert bool(jnp.all(jnp.isfinite(out)))
    print("KERNEL_OK")
</pallas_src>

<mosaic_0001>
module attributes {stable_mosaic.version = 11 : i64} {
  func.func @_res_four6_kernel(%arg0: i32, %arg1: memref<1x8x256xf32, #tpu.memory_space<vmem>>, %arg2: memref<8x29xf32, #tpu.memory_space<vmem>>, %arg3: memref<5x28xf32, #tpu.memory_space<vmem>>, %arg4: memref<4x74xf32, #tpu.memory_space<vmem>>, %arg5: memref<256x512xf32, #tpu.memory_space<vmem>>, %arg6: memref<256x256xf32, #tpu.memory_space<vmem>>, %arg7: memref<256x256xf32, #tpu.memory_space<vmem>>, %arg8: memref<9x256xf32, #tpu.memory_space<vmem>>, %arg9: memref<1x8x256xf32, #tpu.memory_space<vmem>>) attributes {dimension_semantics = [#tpu.dimension_semantics<parallel>], iteration_bounds = array<i64: 2>, scalar_prefetch = 0 : i64, scratch_operands = 0 : i64, tpu.core_type = #tpu.core_type<tc>, window_params = [{transform_indices = @transform_0, window_bounds = array<i64: 1, 8, 256>}, {pipeline_mode = #tpu.pipeline_mode<synchronous>, transform_indices = @transform_1, window_bounds = array<i64: 8, 29>}, {pipeline_mode = #tpu.pipeline_mode<synchronous>, transform_indices = @transform_2, window_bounds = array<i64: 5, 28>}, {pipeline_mode = #tpu.pipeline_mode<synchronous>, transform_indices = @transform_3, window_bounds = array<i64: 4, 74>}, {pipeline_mode = #tpu.pipeline_mode<synchronous>, transform_indices = @transform_4, window_bounds = array<i64: 256, 512>}, {pipeline_mode = #tpu.pipeline_mode<synchronous>, transform_indices = @transform_5, window_bounds = array<i64: 256, 256>}, {pipeline_mode = #tpu.pipeline_mode<synchronous>, transform_indices = @transform_6, window_bounds = array<i64: 256, 256>}, {pipeline_mode = #tpu.pipeline_mode<synchronous>, transform_indices = @transform_7, window_bounds = array<i64: 9, 256>}, {transform_indices = @transform_8, window_bounds = array<i64: 1, 8, 256>}]} {
    %c0 = arith.constant 0 : index
    %c0_0 = arith.constant 0 : index
    %c0_1 = arith.constant 0 : index
    %0 = vector.load %arg1[%c0, %c0_0, %c0_1] : memref<1x8x256xf32, #tpu.memory_space<vmem>>, vector<1x8x256xf32>
    %1 = vector.shape_cast %0 : vector<1x8x256xf32> to vector<8x256xf32>
    %c0_2 = arith.constant 0 : index
    %c0_3 = arith.constant 0 : index
    %2 = vector.load %arg2[%c0_2, %c0_3] : memref<8x29xf32, #tpu.memory_space<vmem>>, vector<8x29xf32>
    %c0_4 = arith.constant 0 : index
    %c0_5 = arith.constant 0 : index
    %3 = vector.load %arg3[%c0_4, %c0_5] : memref<5x28xf32, #tpu.memory_space<vmem>>, vector<5x28xf32>
    %c0_6 = arith.constant 0 : index
    %c0_7 = arith.constant 0 : index
    %4 = vector.load %arg4[%c0_6, %c0_7] : memref<4x74xf32, #tpu.memory_space<vmem>>, vector<4x74xf32>
    %5 = vector.extract_strided_slice %3 {offsets = [0, 0], sizes = [5, 8], strides = [1, 1]} : vector<5x28xf32> to vector<5x8xf32>
    %cst = arith.constant dense<0.000000e+00> : vector<5x256xf32>
    %6 = tpu.matmul %5, %1, %cst {dimension_numbers = #tpu.dot_dimension_numbers<[1], [0], [0], [1], [0, 0, 1, 1], [], []>} : vector<5x8xf32>, vector<8x256xf32>, vector<5x256xf32> -> vector<5x256xf32>
    %7 = vector.extract_strided_slice %3 {offsets = [0, 8], sizes = [5, 8], strides = [1, 1]} : vector<5x28xf32> to vector<5x8xf32>
    %cst_8 = arith.constant dense<0.000000e+00> : vector<5x256xf32>
    %8 = tpu.matmul %7, %1, %cst_8 {dimension_numbers = #tpu.dot_dimension_numbers<[1], [0], [0], [1], [0, 0, 1, 1], [], []>} : vector<5x8xf32>, vector<8x256xf32>, vector<5x256xf32> -> vector<5x256xf32>
    %9 = arith.mulf %6, %6 : vector<5x256xf32>
    %10 = arith.mulf %8, %8 : vector<5x256xf32>
    %11 = arith.addf %9, %10 : vector<5x256xf32>
    %12 = math.sqrt %11 : vector<5x256xf32>
    %13 = vector.extract_strided_slice %3 {offsets = [0, 16], sizes = [5, 5], strides = [1, 1]} : vector<5x28xf32> to vector<5x5xf32>
    %cst_9 = arith.constant dense<0.000000e+00> : vector<5x256xf32>
    %14 = tpu.matmul %13, %12, %cst_9 {dimension_numbers = #tpu.dot_dimension_numbers<[1], [0], [0], [1], [0, 0, 1, 1], [], []>} : vector<5x5xf32>, vector<5x256xf32>, vector<5x256xf32> -> vector<5x256xf32>
    %15 = vector.extract_strided_slice %3 {offsets = [0, 21], sizes = [5, 1], strides = [1, 1]} : vector<5x28xf32> to vector<5x1xf32>
    %16 = vector.broadcast %15 : vector<5x1xf32> to vector<5x256xf32>
    %17 = arith.addf %14, %16 : vector<5x256xf32>
    %cst_10 = arith.constant 0.000000e+00 : f32
    %18 = vector.broadcast %cst_10 : f32 to vector<5x256xf32>
    %19 = arith.cmpf oge, %17, %18 : vector<5x256xf32>
    %cst_11 = arith.constant 1.000000e-01 : f32
    %20 = vector.broadcast %cst_11 : f32 to vector<5x256xf32>
    %21 = arith.mulf %20, %17 : vector<5x256xf32>
    %22 = arith.select %19, %17, %21 : vector<5x256xi1>, vector<5x256xf32>
    %23 = vector.extract_strided_slice %3 {offsets = [0, 22], sizes = [5, 5], strides = [1, 1]} : vector<5x28xf32> to vector<5x5xf32>
    %cst_12 = arith.constant dense<0.000000e+00> : vector<5x256xf32>
    %24 = tpu.matmul %23, %22, %cst_12 {dimension_numbers = #tpu.dot_dimension_numbers<[1], [0], [0], [1], [0, 0, 1, 1], [], []>} : vector<5x5xf32>, vector<5x256xf32>, vector<5x256xf32> -> vector<5x256xf32>
    %25 = vector.extract_strided_slice %3 {offsets = [0, 27], sizes = [5, 1], strides = [1, 1]} : vector<5x28xf32> to vector<5x1xf32>
    %26 = vector.broadcast %25 : vector<5x1xf32> to vector<5x256xf32>
    %27 = arith.addf %24, %26 : vector<5x256xf32>
    %cst_13 = arith.constant 0.000000e+00 : f32
    %28 = vector.broadcast %cst_13 : f32 to vector<5x256xf32>
    %29 = arith.cmpf ogt, %12, %28 : vector<5x256xf32>
    %cst_14 = arith.constant 1.000000e+00 : f32
    %30 = vector.broadcast %cst_14 : f32 to vector<5x256xf32>
    %31 = arith.select %29, %12, %30 : vector<5x256xi1>, vector<5x256xf32>
    %32 = tpu.reciprocal %31 {approx = true} : vector<5x256xf32> -> vector<5x256xf32>
    %33 = arith.mulf %6, %32 : vector<5x256xf32>
    %cst_15 = arith.constant 1.000000e+00 : f32
    %34 = vector.broadcast %cst_15 : f32 to vector<5x256xf32>
    %35 = arith.select %29, %33, %34 : vector<5x256xi1>, vector<5x256xf32>
    %36 = arith.mulf %8, %32 : vector<5x256xf32>
    %cst_16 = arith.constant 0.000000e+00 : f32
    %37 = vector.broadcast %cst_16 : f32 to vector<5x256xf32>
    %38 = arith.select %29, %36, %37 : vector<5x256xi1>, vector<5x256xf32>
    %39 = vector.extract_strided_slice %2 {offsets = [0, 0], sizes = [8, 5], strides = [1, 1]} : vector<8x29xf32> to vector<8x5xf32>
    %40 = arith.mulf %27, %35 : vector<5x256xf32>
    %cst_17 = arith.constant dense<0.000000e+00> : vector<8x256xf32>
    %41 = tpu.matmul %39, %40, %cst_17 {dimension_numbers = #tpu.dot_dimension_numbers<[1], [0], [0], [1], [0, 0, 1, 1], [], []>} : vector<8x5xf32>, vector<5x256xf32>, vector<8x256xf32> -> vector<8x256xf32>
    %42 = vector.extract_strided_slice %2 {offsets = [0, 5], sizes = [8, 5], strides = [1, 1]} : vector<8x29xf32> to vector<8x5xf32>
    %43 = arith.mulf %27, %38 : vector<5x256xf32>
    %cst_18 = arith.constant dense<0.000000e+00> : vector<8x256xf32>
    %44 = tpu.matmul %42, %43, %cst_18 {dimension_numbers = #tpu.dot_dimension_numbers<[1], [0], [0], [1], [0, 0, 1, 1], [], []>} : vector<8x5xf32>, vector<5x256xf32>, vector<8x256xf32> -> vector<8x256xf32>
    %45 = arith.addf %41, %44 : vector<8x256xf32>
    %46 = arith.addf %1, %45 : vector<8x256xf32>
    %47 = vector.extract_strided_slice %2 {offsets = [0, 10], sizes = [8, 8], strides = [1, 1]} : vector<8x29xf32> to vector<8x8xf32>
    %48 = vector.extract_strided_slice %2 {offsets = [0, 18], sizes = [8, 1], strides = [1, 1]} : vector<8x29xf32> to vector<8x1xf32>
    %49 = vector.extract_strided_slice %2 {offsets = [0, 19], sizes = [8, 1], strides = [1, 1]} : vector<8x29xf32> to vector<8x1xf32>
    %cst_19 = arith.constant dense<0.000000e+00> : vector<8xf32>
    %50 = vector.multi_reduction <add>, %46, %cst_19 [1] : vector<8x256xf32> to vector<8xf32>
    %51 = vector.shape_cast %50 : vector<8xf32> to vector<8x1xf32>
    %52 = vector.shape_cast %51 : vector<8x1xf32> to vector<8x1xf32>
    %53 = vector.broadcast %52 : vector<8x1xf32> to vector<8x128xf32>
    %cst_20 = arith.constant dense<0.000000e+00> : vector<8x128xf32>
    %54 = tpu.matmul %47, %53, %cst_20 {dimension_numbers = #tpu.dot_dimension_numbers<[1], [0], [0], [1], [0, 0, 1, 1], [], []>} : vector<8x8xf32>, vector<8x128xf32>, vector<8x128xf32> -> vector<8x128xf32>
    %55 = vector.extract_strided_slice %54 {offsets = [0, 0], sizes = [8, 1], strides = [1, 1]} : vector<8x128xf32> to vector<8x1xf32>
    %56 = vector.broadcast %55 : vector<8x1xf32> to vector<8x256xf32>
    %57 = arith.subf %46, %56 : vector<8x256xf32>
    %58 = arith.mulf %57, %57 : vector<8x256xf32>
    %cst_21 = arith.constant dense<0.000000e+00> : vector<8xf32>
    %59 = vector.multi_reduction <add>, %58, %cst_21 [1] : vector<8x256xf32> to vector<8xf32>
    %60 = vector.shape_cast %59 : vector<8xf32> to vector<8x1xf32>
    %61 = vector.shape_cast %60 : vector<8x1xf32> to vector<8x1xf32>
    %62 = vector.broadcast %61 : vector<8x1xf32> to vector<8x128xf32>
    %cst_22 = arith.constant dense<0.000000e+00> : vector<8x128xf32>
    %63 = tpu.matmul %47, %62, %cst_22 {dimension_numbers = #tpu.dot_dimension_numbers<[1], [0], [0], [1], [0, 0, 1, 1], [], []>} : vector<8x8xf32>, vector<8x128xf32>, vector<8x128xf32> -> vector<8x128xf32>
    %64 = vector.extract_strided_slice %63 {offsets = [0, 0], sizes = [8, 1], strides = [1, 1]} : vector<8x128xf32> to vector<8x1xf32>
    %cst_23 = arith.constant 9.99999997E-7 : f32
    %65 = vector.broadcast %cst_23 : f32 to vector<8x1xf32>
    %66 = arith.addf %64, %65 : vector<8x1xf32>
    %67 = math.rsqrt %66 : vector<8x1xf32>
    %68 = vector.broadcast %67 : vector<8x1xf32> to vector<8x256xf32>
    %69 = arith.mulf %57, %68 : vector<8x256xf32>
    %70 = vector.broadcast %48 : vector<8x1xf32> to vector<8x256xf32>
    %71 = arith.mulf %69, %70 : vector<8x256xf32>
    %72 = vector.broadcast %49 : vector<8x1xf32> to vector<8x256xf32>
    %73 = arith.addf %71, %72 : vector<8x256xf32>
    %74 = vector.extract_strided_slice %4 {offsets = [0, 0], sizes = [4, 8], strides = [1, 1]} : vector<4x74xf32> to vector<4x8xf32>
    %cst_24 = arith.constant dense<0.000000e+00> : vector<4x256xf32>
    %75 = tpu.matmul %74, %73, %cst_24 {dimension_numbers = #tpu.dot_dimension_numbers<[1], [0], [0], [1], [0, 0, 1, 1], [], []>} : vector<4x8xf32>, vector<8x256xf32>, vector<4x256xf32> -> vector<4x256xf32>
    %76 = vector.extract_strided_slice %4 {offsets = [0, 8], sizes = [4, 1], strides = [1, 1]} : vector<4x74xf32> to vector<4x1xf32>
    %77 = vector.broadcast %76 : vector<4x1xf32> to vector<4x256xf32>
    %78 = arith.addf %75, %77 : vector<4x256xf32>
    %79 = vector.extract_strided_slice %4 {offsets = [0, 9], sizes = [4, 8], strides = [1, 1]} : vector<4x74xf32> to vector<4x8xf32>
    %cst_25 = arith.constant dense<0.000000e+00> : vector<4x256xf32>
    %80 = tpu.matmul %79, %73, %cst_25 {dimension_numbers = #tpu.dot_dimension_numbers<[1], [0], [0], [1], [0, 0, 1, 1], [], []>} : vector<4x8xf32>, vector<8x256xf32>, vector<4x256xf32> -> vector<4x256xf32>
    %81 = vector.extract_strided_slice %4 {offsets = [0, 17], sizes = [4, 1], strides = [1, 1]} : vector<4x74xf32> to vector<4x1xf32>
    %82 = vector.broadcast %81 : vector<4x1xf32> to vector<4x256xf32>
    %83 = arith.addf %80, %82 : vector<4x256xf32>
    %84 = arith.negf %83 : vector<4x256xf32>
    %85 = math.exp %84 : vector<4x256xf32>
    %cst_26 = arith.constant 1.000000e+00 : f32
    %86 = vector.broadcast %cst_26 : f32 to vector<4x256xf32>
    %87 = arith.addf %86, %85 : vector<4x256xf32>
    %88 = arith.divf %86, %87 : vector<4x256xf32>
    %89 = arith.mulf %83, %88 : vector<4x256xf32>
    %c0_27 = arith.constant 0 : index
    %c0_28 = arith.constant 0 : index
    %90 = vector.load %arg5[%c0_27, %c0_28] : memref<256x512xf32, #tpu.memory_space<vmem>>, vector<256x512xf32>
    %cst_29 = arith.constant dense<0.000000e+00> : vector<4x512xf32>
    %91 = tpu.matmul %78, %90, %cst_29 {dimension_numbers = #tpu.dot_dimension_numbers<[1], [0], [0], [1], [0, 0, 1, 1], [], []>} : vector<4x256xf32>, vector<256x512xf32>, vector<4x512xf32> -> vector<4x512xf32>
    %92 = vector.extract_strided_slice %91 {offsets = [0, 0], sizes = [4, 256], strides = [1, 1]} : vector<4x512xf32> to vector<4x256xf32>
    %93 = vector.extract_strided_slice %91 {offsets = [0, 256], sizes = [4, 256], strides = [1, 1]} : vector<4x512xf32> to vector<4x256xf32>
    %94 = arith.mulf %92, %92 : vector<4x256xf32>
    %95 = arith.mulf %93, %93 : vector<4x256xf32>
    %96 = arith.addf %94, %95 : vector<4x256xf32>
    %97 = math.sqrt %96 : vector<4x256xf32>
    %98 = math.absf %92 : vector<4x256xf32>
    %99 = math.absf %93 : vector<4x256xf32>
    %100 = arith.maximumf %98, %99 : vector<4x256xf32>
    %101 = arith.minimumf %98, %99 : vector<4x256xf32>
    %cst_30 = arith.constant 0.000000e+00 : f32
    %102 = vector.broadcast %cst_30 : f32 to vector<4x256xf32>
    %103 = arith.cmpf ogt, %100, %102 : vector<4x256xf32>
    %cst_31 = arith.constant 1.000000e+00 : f32
    %104 = vector.broadcast %cst_31 : f32 to vector<4x256xf32>
    %105 = arith.select %103, %100, %104 : vector<4x256xi1>, vector<4x256xf32>
    %106 = arith.divf %101, %105 : vector<4x256xf32>
    %107 = arith.mulf %106, %106 : vector<4x256xf32>
    %cst_32 = arith.constant 2.083510e-02 : f32
    %108 = vector.broadcast %cst_32 : f32 to vector<4x256xf32>
    %109 = arith.mulf %107, %108 : vector<4x256xf32>
    %cst_33 = arith.constant -8.513300e-02 : f32
    %110 = vector.broadcast %cst_33 : f32 to vector<4x256xf32>
    %111 = arith.addf %110, %109 : vector<4x256xf32>
    %112 = arith.mulf %107, %111 : vector<4x256xf32>
    %cst_34 = arith.constant 1.801410e-01 : f32
    %113 = vector.broadcast %cst_34 : f32 to vector<4x256xf32>
    %114 = arith.addf %113, %112 : vector<4x256xf32>
    %115 = arith.mulf %107, %114 : vector<4x256xf32>
    %cst_35 = arith.constant -0.330299497 : f32
    %116 = vector.broadcast %cst_35 : f32 to vector<4x256xf32>
    %117 = arith.addf %116, %115 : vector<4x256xf32>
    %118 = arith.mulf %107, %117 : vector<4x256xf32>
    %cst_36 = arith.constant 9.998660e-01 : f32
    %119 = vector.broadcast %cst_36 : f32 to vector<4x256xf32>
    %120 = arith.addf %119, %118 : vector<4x256xf32>
    %121 = arith.mulf %106, %120 : vector<4x256xf32>
    %122 = arith.cmpf ogt, %99, %98 : vector<4x256xf32>
    %cst_37 = arith.constant 1.57079637 : f32
    %123 = vector.broadcast %cst_37 : f32 to vector<4x256xf32>
    %124 = arith.subf %123, %121 : vector<4x256xf32>
    %125 = arith.select %122, %124, %121 : vector<4x256xi1>, vector<4x256xf32>
    %cst_38 = arith.constant 0.000000e+00 : f32
    %126 = vector.broadcast %cst_38 : f32 to vector<4x256xf32>
    %127 = arith.cmpf olt, %92, %126 : vector<4x256xf32>
    %cst_39 = arith.constant 3.14159274 : f32
    %128 = vector.broadcast %cst_39 : f32 to vector<4x256xf32>
    %129 = arith.subf %128, %125 : vector<4x256xf32>
    %130 = arith.select %127, %129, %125 : vector<4x256xi1>, vector<4x256xf32>
    %cst_40 = arith.constant 0.000000e+00 : f32
    %131 = vector.broadcast %cst_40 : f32 to vector<4x256xf32>
    %132 = arith.cmpf olt, %93, %131 : vector<4x256xf32>
    %cst_41 = arith.constant 0.000000e+00 : f32
    %133 = vector.broadcast %cst_41 : f32 to vector<4x256xf32>
    %134 = arith.subf %133, %130 : vector<4x256xf32>
    %135 = arith.select %132, %134, %130 : vector<4x256xi1>, vector<4x256xf32>
    %136 = vector.extract_strided_slice %4 {offsets = [0, 18], sizes = [4, 4], strides = [1, 1]} : vector<4x74xf32> to vector<4x4xf32>
    %cst_42 = arith.constant dense<0.000000e+00> : vector<4x256xf32>
    %137 = tpu.matmul %136, %97, %cst_42 {dimension_numbers = #tpu.dot_dimension_numbers<[1], [0], [0], [1], [0, 0, 1, 1], [], []>} : vector<4x4xf32>, vector<4x256xf32>, vector<4x256xf32> -> vector<4x256xf32>
    %138 = vector.extract_strided_slice %4 {offsets = [0, 22], sizes = [4, 1], strides = [1, 1]} : vector<4x74xf32> to vector<4x1xf32>
    %139 = vector.broadcast %138 : vector<4x1xf32> to vector<4x256xf32>
    %140 = arith.addf %137, %139 : vector<4x256xf32>
    %cst_43 = arith.constant 0.000000e+00 : f32
    %141 = vector.broadcast %cst_43 : f32 to vector<4x256xf32>
    %142 = arith.cmpf oge, %140, %141 : vector<4x256xf32>
    %cst_44 = arith.constant 1.000000e-01 : f32
    %143 = vector.broadcast %cst_44 : f32 to vector<4x256xf32>
    %144 = arith.mulf %143, %140 : vector<4x256xf32>
    %145 = arith.select %142, %140, %144 : vector<4x256xi1>, vector<4x256xf32>
    %146 = vector.extract_strided_slice %4 {offsets = [0, 23], sizes = [4, 4], strides = [1, 1]} : vector<4x74xf32> to vector<4x4xf32>
    %cst_45 = arith.constant dense<0.000000e+00> : vector<4x256xf32>
    %147 = tpu.matmul %146, %145, %cst_45 {dimension_numbers = #tpu.dot_dimension_numbers<[1], [0], [0], [1], [0, 0, 1, 1], [], []>} : vector<4x4xf32>, vector<4x256xf32>, vector<4x256xf32> -> vector<4x256xf32>
    %148 = vector.extract_strided_slice %4 {offsets = [0, 27], sizes = [4, 1], strides = [1, 1]} : vector<4x74xf32> to vector<4x1xf32>
    %149 = vector.broadcast %148 : vector<4x1xf32> to vector<4x256xf32>
    %150 = arith.addf %147, %149 : vector<4x256xf32>
    %151 = vector.extract_strided_slice %4 {offsets = [0, 28], sizes = [4, 4], strides = [1, 1]} : vector<4x74xf32> to vector<4x4xf32>
    %cst_46 = arith.constant dense<0.000000e+00> : vector<4x256xf32>
    %152 = tpu.matmul %151, %135, %cst_46 {dimension_numbers = #tpu.dot_dimension_numbers<[1], [0], [0], [1], [0, 0, 1, 1], [], []>} : vector<4x4xf32>, vector<4x256xf32>, vector<4x256xf32> -> vector<4x256xf32>
    %153 = vector.extract_strided_slice %4 {offsets = [0, 32], sizes = [4, 1], strides = [1, 1]} : vector<4x74xf32> to vector<4x1xf32>
    %154 = vector.broadcast %153 : vector<4x1xf32> to vector<4x256xf32>
    %155 = arith.addf %152, %154 : vector<4x256xf32>
    %cst_47 = arith.constant 0.000000e+00 : f32
    %156 = vector.broadcast %cst_47 : f32 to vector<4x256xf32>
    %157 = arith.cmpf oge, %155, %156 : vector<4x256xf32>
    %cst_48 = arith.constant 1.000000e-01 : f32
    %158 = vector.broadcast %cst_48 : f32 to vector<4x256xf32>
    %159 = arith.mulf %158, %155 : vector<4x256xf32>
    %160 = arith.select %157, %155, %159 : vector<4x256xi1>, vector<4x256xf32>
    %161 = vector.extract_strided_slice %4 {offsets = [0, 33], sizes = [4, 4], strides = [1, 1]} : vector<4x74xf32> to vector<4x4xf32>
    %cst_49 = arith.constant dense<0.000000e+00> : vector<4x256xf32>
    %162 = tpu.matmul %161, %160, %cst_49 {dimension_numbers = #tpu.dot_dimension_numbers<[1], [0], [0], [1], [0, 0, 1, 1], [], []>} : vector<4x4xf32>, vector<4x256xf32>, vector<4x256xf32> -> vector<4x256xf32>
    %163 = vector.extract_strided_slice %4 {offsets = [0, 37], sizes = [4, 1], strides = [1, 1]} : vector<4x74xf32> to vector<4x1xf32>
    %164 = vector.broadcast %163 : vector<4x1xf32> to vector<4x256xf32>
    %165 = arith.addf %162, %164 : vector<4x256xf32>
    %166 = math.cos %165 : vector<4x256xf32>
    %167 = arith.mulf %150, %166 : vector<4x256xf32>
    %168 = math.sin %165 : vector<4x256xf32>
    %169 = arith.mulf %150, %168 : vector<4x256xf32>
    %c0_50 = arith.constant 0 : index
    %c0_51 = arith.constant 0 : index
    %170 = vector.load %arg6[%c0_50, %c0_51] : memref<256x256xf32, #tpu.memory_space<vmem>>, vector<256x256xf32>
    %cst_52 = arith.constant dense<0.000000e+00> : vector<4x256xf32>
    %171 = tpu.matmul %167, %170, %cst_52 {dimension_numbers = #tpu.dot_dimension_numbers<[1], [0], [0], [1], [0, 0, 1, 1], [], []>} : vector<4x256xf32>, vector<256x256xf32>, vector<4x256xf32> -> vector<4x256xf32>
    %c0_53 = arith.constant 0 : index
    %c0_54 = arith.constant 0 : index
    %172 = vector.load %arg7[%c0_53, %c0_54] : memref<256x256xf32, #tpu.memory_space<vmem>>, vector<256x256xf32>
    %cst_55 = arith.constant dense<0.000000e+00> : vector<4x256xf32>
    %173 = tpu.matmul %169, %172, %cst_55 {dimension_numbers = #tpu.dot_dimension_numbers<[1], [0], [0], [1], [0, 0, 1, 1], [], []>} : vector<4x256xf32>, vector<256x256xf32>, vector<4x256xf32> -> vector<4x256xf32>
    %174 = arith.addf %171, %173 : vector<4x256xf32>
    %175 = arith.addf %78, %174 : vector<4x256xf32>
    %176 = vector.extract_strided_slice %4 {offsets = [0, 38], sizes = [4, 9], strides = [1, 1]} : vector<4x74xf32> to vector<4x9xf32>
    %177 = vector.extract_strided_slice %4 {offsets = [0, 47], sizes = [4, 1], strides = [1, 1]} : vector<4x74xf32> to vector<4x1xf32>
    %cst_56 = arith.constant 0.000000e+00 : f32
    %178 = vector.broadcast %cst_56 : f32 to vector<4x256xf32>
    %c17_i32 = arith.constant 17 : i32
    %179 = tpu.dynamic_rotate %89 by %c17_i32 dim 1 : vector<4x256xf32>, i32 -> vector<4x256xf32>
    %180 = vector.extract_strided_slice %176 {offsets = [0, 0], sizes = [4, 1], strides = [1, 1]} : vector<4x9xf32> to vector<4x1xf32>
    %c0_57 = arith.constant 0 : index
    %c0_58 = arith.constant 0 : index
    %181 = vector.load %arg8[%c0_57, %c0_58] : memref<9x256xf32, #tpu.memory_space<vmem>>, vector<1x256xf32>
    %182 = vector.broadcast %181 : vector<1x256xf32> to vector<4x256xf32>
    %183 = arith.mulf %182, %179 : vector<4x256xf32>
    %184 = vector.broadcast %180 : vector<4x1xf32> to vector<4x256xf32>
    %185 = arith.mulf %184, %183 : vector<4x256xf32>
    %186 = arith.addf %178, %185 : vector<4x256xf32>
    %c16_i32 = arith.constant 16 : i32
    %187 = tpu.dynamic_rotate %89 by %c16_i32 dim 1 : vector<4x256xf32>, i32 -> vector<4x256xf32>
    %188 = vector.extract_strided_slice %176 {offsets = [0, 1], sizes = [4, 1], strides = [1, 1]} : vector<4x9xf32> to vector<4x1xf32>
    %c1 = arith.constant 1 : index
    %c0_59 = arith.constant 0 : index
    %189 = vector.load %arg8[%c1, %c0_59] : memref<9x256xf32, #tpu.memory_space<vmem>>, vector<1x256xf32>
    %190 = vector.broadcast %189 : vector<1x256xf32> to vector<4x256xf32>
    %191 = arith.mulf %190, %187 : vector<4x256xf32>
    %192 = vector.broadcast %188 : vector<4x1xf32> to vector<4x256xf32>
    %193 = arith.mulf %192, %191 : vector<4x256xf32>
    %194 = arith.addf %186, %193 : vector<4x256xf32>
    %c15_i32 = arith.constant 15 : i32
    %195 = tpu.dynamic_rotate %89 by %c15_i32 dim 1 : vector<4x256xf32>, i32 -> vector<4x256xf32>
    %196 = vector.extract_strided_slice %176 {offsets = [0, 2], sizes = [4, 1], strides = [1, 1]} : vector<4x9xf32> to vector<4x1xf32>
    %c2 = arith.constant 2 : index
    %c0_60 = arith.constant 0 : index
    %197 = vector.load %arg8[%c2, %c0_60] : memref<9x256xf32, #tpu.memory_space<vmem>>, vector<1x256xf32>
    %198 = vector.broadcast %197 : vector<1x256xf32> to vector<4x256xf32>
    %199 = arith.mulf %198, %195 : vector<4x256xf32>
    %200 = vector.broadcast %196 : vector<4x1xf32> to vector<4x256xf32>
    %201 = arith.mulf %200, %199 : vector<4x256xf32>
    %202 = arith.addf %194, %201 : vector<4x256xf32>
    %c1_i32 = arith.constant 1 : i32
    %203 = tpu.dynamic_rotate %89 by %c1_i32 dim 1 : vector<4x256xf32>, i32 -> vector<4x256xf32>
    %204 = vector.extract_strided_slice %176 {offsets = [0, 3], sizes = [4, 1], strides = [1, 1]} : vector<4x9xf32> to vector<4x1xf32>
    %c3 = arith.constant 3 : index
    %c0_61 = arith.constant 0 : index
    %205 = vector.load %arg8[%c3, %c0_61] : memref<9x256xf32, #tpu.memory_space<vmem>>, vector<1x256xf32>
    %206 = vector.broadcast %205 : vector<1x256xf32> to vector<4x256xf32>
    %207 = arith.mulf %206, %203 : vector<4x256xf32>
    %208 = vector.broadcast %204 : vector<4x1xf32> to vector<4x256xf32>
    %209 = arith.mulf %208, %207 : vector<4x256xf32>
    %210 = arith.addf %202, %209 : vector<4x256xf32>
    %211 = vector.extract_strided_slice %176 {offsets = [0, 4], sizes = [4, 1], strides = [1, 1]} : vector<4x9xf32> to vector<4x1xf32>
    %c4 = arith.constant 4 : index
    %c0_62 = arith.constant 0 : index
    %212 = vector.load %arg8[%c4, %c0_62] : memref<9x256xf32, #tpu.memory_space<vmem>>, vector<1x256xf32>
    %213 = vector.broadcast %212 : vector<1x256xf32> to vector<4x256xf32>
    %214 = arith.mulf %213, %89 : vector<4x256xf32>
    %215 = vector.broadcast %211 : vector<4x1xf32> to vector<4x256xf32>
    %216 = arith.mulf %215, %214 : vector<4x256xf32>
    %217 = arith.addf %210, %216 : vector<4x256xf32>
    %c255_i32 = arith.constant 255 : i32
    %218 = tpu.dynamic_rotate %89 by %c255_i32 dim 1 : vector<4x256xf32>, i32 -> vector<4x256xf32>
    %219 = vector.extract_strided_slice %176 {offsets = [0, 5], sizes = [4, 1], strides = [1, 1]} : vector<4x9xf32> to vector<4x1xf32>
    %c5 = arith.constant 5 : index
    %c0_63 = arith.constant 0 : index
    %220 = vector.load %arg8[%c5, %c0_63] : memref<9x256xf32, #tpu.memory_space<vmem>>, vector<1x256xf32>
    %221 = vector.broadcast %220 : vector<1x256xf32> to vector<4x256xf32>
    %222 = arith.mulf %221, %218 : vector<4x256xf32>
    %223 = vector.broadcast %219 : vector<4x1xf32> to vector<4x256xf32>
    %224 = arith.mulf %223, %222 : vector<4x256xf32>
    %225 = arith.addf %217, %224 : vector<4x256xf32>
    %c241_i32 = arith.constant 241 : i32
    %226 = tpu.dynamic_rotate %89 by %c241_i32 dim 1 : vector<4x256xf32>, i32 -> vector<4x256xf32>
    %227 = vector.extract_strided_slice %176 {offsets = [0, 6], sizes = [4, 1], strides = [1, 1]} : vector<4x9xf32> to vector<4x1xf32>
    %c6 = arith.constant 6 : index
    %c0_64 = arith.constant 0 : index
    %228 = vector.load %arg8[%c6, %c0_64] : memref<9x256xf32, #tpu.memory_space<vmem>>, vector<1x256xf32>
    %229 = vector.broadcast %228 : vector<1x256xf32> to vector<4x256xf32>
    %230 = arith.mulf %229, %226 : vector<4x256xf32>
    %231 = vector.broadcast %227 : vector<4x1xf32> to vector<4x256xf32>
    %232 = arith.mulf %231, %230 : vector<4x256xf32>
    %233 = arith.addf %225, %232 : vector<4x256xf32>
    %c240_i32 = arith.constant 240 : i32
    %234 = tpu.dynamic_rotate %89 by %c240_i32 dim 1 : vector<4x256xf32>, i32 -> vector<4x256xf32>
    %235 = vector.extract_strided_slice %176 {offsets = [0, 7], sizes = [4, 1], strides = [1, 1]} : vector<4x9xf32> to vector<4x1xf32>
    %c7 = arith.constant 7 : index
    %c0_65 = arith.constant 0 : index
    %236 = vector.load %arg8[%c7, %c0_65] : memref<9x256xf32, #tpu.memory_space<vmem>>, vector<1x256xf32>
    %237 = vector.broadcast %236 : vector<1x256xf32> to vector<4x256xf32>
    %238 = arith.mulf %237, %234 : vector<4x256xf32>
    %239 = vector.broadcast %235 : vector<4x1xf32> to vector<4x256xf32>
    %240 = arith.mulf %239, %238 : vector<4x256xf32>
    %241 = arith.addf %233, %240 : vector<4x256xf32>
    %c239_i32 = arith.constant 239 : i32
    %242 = tpu.dynamic_rotate %89 by %c239_i32 dim 1 : vector<4x256xf32>, i32 -> vector<4x256xf32>
    %243 = vector.extract_strided_slice %176 {offsets = [0, 8], sizes = [4, 1], strides = [1, 1]} : vector<4x9xf32> to vector<4x1xf32>
    %c8 = arith.constant 8 : index
    %c0_66 = arith.constant 0 : index
    %244 = vector.load %arg8[%c8, %c0_66] : memref<9x256xf32, #tpu.memory_space<vmem>>, vector<1x256xf32>
    %245 = vector.broadcast %244 : vector<1x256xf32> to vector<4x256xf32>
    %246 = arith.mulf %245, %242 : vector<4x256xf32>
    %247 = vector.broadcast %243 : vector<4x1xf32> to vector<4x256xf32>
    %248 = arith.mulf %247, %246 : vector<4x256xf32>
    %249 = arith.addf %241, %248 : vector<4x256xf32>
    %250 = vector.broadcast %177 : vector<4x1xf32> to vector<4x256xf32>
    %251 = arith.addf %249, %250 : vector<4x256xf32>
    %252 = vector.extract_strided_slice %4 {offsets = [0, 48], sizes = [4, 4], strides = [1, 1]} : vector<4x74xf32> to vector<4x4xf32>
    %cst_67 = arith.constant dense<0.000000e+00> : vector<4x256xf32>
    %253 = tpu.matmul %252, %251, %cst_67 {dimension_numbers = #tpu.dot_dimension_numbers<[1], [0], [0], [1], [0, 0, 1, 1], [], []>} : vector<4x4xf32>, vector<4x256xf32>, vector<4x256xf32> -> vector<4x256xf32>
    %254 = vector.extract_strided_slice %4 {offsets = [0, 52], sizes = [4, 1], strides = [1, 1]} : vector<4x74xf32> to vector<4x1xf32>
    %255 = vector.broadcast %254 : vector<4x1xf32> to vector<4x256xf32>
    %256 = arith.addf %253, %255 : vector<4x256xf32>
    %257 = vector.extract_strided_slice %4 {offsets = [0, 53], sizes = [4, 4], strides = [1, 1]} : vector<4x74xf32> to vector<4x4xf32>
    %258 = vector.extract_strided_slice %4 {offsets = [0, 57], sizes = [4, 1], strides = [1, 1]} : vector<4x74xf32> to vector<4x1xf32>
    %259 = vector.extract_strided_slice %4 {offsets = [0, 58], sizes = [4, 1], strides = [1, 1]} : vector<4x74xf32> to vector<4x1xf32>
    %cst_68 = arith.constant dense<0.000000e+00> : vector<4xf32>
    %260 = vector.multi_reduction <add>, %256, %cst_68 [1] : vector<4x256xf32> to vector<4xf32>
    %261 = vector.shape_cast %260 : vector<4xf32> to vector<4x1xf32>
    %262 = vector.shape_cast %261 : vector<4x1xf32> to vector<4x1xf32>
    %263 = vector.broadcast %262 : vector<4x1xf32> to vector<4x128xf32>
    %cst_69 = arith.constant dense<0.000000e+00> : vector<4x128xf32>
    %264 = tpu.matmul %257, %263, %cst_69 {dimension_numbers = #tpu.dot_dimension_numbers<[1], [0], [0], [1], [0, 0, 1, 1], [], []>} : vector<4x4xf32>, vector<4x128xf32>, vector<4x128xf32> -> vector<4x128xf32>
    %265 = vector.extract_strided_slice %264 {offsets = [0, 0], sizes = [4, 1], strides = [1, 1]} : vector<4x128xf32> to vector<4x1xf32>
    %266 = vector.broadcast %265 : vector<4x1xf32> to vector<4x256xf32>
    %267 = arith.subf %256, %266 : vector<4x256xf32>
    %268 = arith.mulf %267, %267 : vector<4x256xf32>
    %cst_70 = arith.constant dense<0.000000e+00> : vector<4xf32>
    %269 = vector.multi_reduction <add>, %268, %cst_70 [1] : vector<4x256xf32> to vector<4xf32>
    %270 = vector.shape_cast %269 : vector<4xf32> to vector<4x1xf32>
    %271 = vector.shape_cast %270 : vector<4x1xf32> to vector<4x1xf32>
    %272 = vector.broadcast %271 : vector<4x1xf32> to vector<4x128xf32>
    %cst_71 = arith.constant dense<0.000000e+00> : vector<4x128xf32>
    %273 = tpu.matmul %257, %272, %cst_71 {dimension_numbers = #tpu.dot_dimension_numbers<[1], [0], [0], [1], [0, 0, 1, 1], [], []>} : vector<4x4xf32>, vector<4x128xf32>, vector<4x128xf32> -> vector<4x128xf32>
    %274 = vector.extract_strided_slice %273 {offsets = [0, 0], sizes = [4, 1], strides = [1, 1]} : vector<4x128xf32> to vector<4x1xf32>
    %cst_72 = arith.constant 9.99999997E-7 : f32
    %275 = vector.broadcast %cst_72 : f32 to vector<4x1xf32>
    %276 = arith.addf %274, %275 : vector<4x1xf32>
    %277 = math.rsqrt %276 : vector<4x1xf32>
    %278 = vector.broadcast %277 : vector<4x1xf32> to vector<4x256xf32>
    %279 = arith.mulf %267, %278 : vector<4x256xf32>
    %280 = vector.broadcast %258 : vector<4x1xf32> to vector<4x256xf32>
    %281 = arith.mulf %279, %280 : vector<4x256xf32>
    %282 = vector.broadcast %259 : vector<4x1xf32> to vector<4x256xf32>
    %283 = arith.addf %281, %282 : vector<4x256xf32>
    %284 = arith.negf %283 : vector<4x256xf32>
    %285 = math.exp %284 : vector<4x256xf32>
    %cst_73 = arith.constant 1.000000e+00 : f32
    %286 = vector.broadcast %cst_73 : f32 to vector<4x256xf32>
    %287 = arith.addf %286, %285 : vector<4x256xf32>
    %288 = arith.divf %286, %287 : vector<4x256xf32>
    %289 = arith.mulf %283, %288 : vector<4x256xf32>
    %290 = vector.extract_strided_slice %4 {offsets = [0, 59], sizes = [4, 9], strides = [1, 1]} : vector<4x74xf32> to vector<4x9xf32>
    %291 = vector.extract_strided_slice %4 {offsets = [0, 68], sizes = [4, 1], strides = [1, 1]} : vector<4x74xf32> to vector<4x1xf32>
    %cst_74 = arith.constant 0.000000e+00 : f32
    %292 = vector.broadcast %cst_74 : f32 to vector<4x256xf32>
    %c17_i32_75 = arith.constant 17 : i32
    %293 = tpu.dynamic_rotate %289 by %c17_i32_75 dim 1 : vector<4x256xf32>, i32 -> vector<4x256xf32>
    %294 = vector.extract_strided_slice %290 {offsets = [0, 0], sizes = [4, 1], strides = [1, 1]} : vector<4x9xf32> to vector<4x1xf32>
    %c0_76 = arith.constant 0 : index
    %c0_77 = arith.constant 0 : index
    %295 = vector.load %arg8[%c0_76, %c0_77] : memref<9x256xf32, #tpu.memory_space<vmem>>, vector<1x256xf32>
    %296 = vector.broadcast %295 : vector<1x256xf32> to vector<4x256xf32>
    %297 = arith.mulf %296, %293 : vector<4x256xf32>
    %298 = vector.broadcast %294 : vector<4x1xf32> to vector<4x256xf32>
    %299 = arith.mulf %298, %297 : vector<4x256xf32>
    %300 = arith.addf %292, %299 : vector<4x256xf32>
    %c16_i32_78 = arith.constant 16 : i32
    %301 = tpu.dynamic_rotate %289 by %c16_i32_78 dim 1 : vector<4x256xf32>, i32 -> vector<4x256xf32>
    %302 = vector.extract_strided_slice %290 {offsets = [0, 1], sizes = [4, 1], strides = [1, 1]} : vector<4x9xf32> to vector<4x1xf32>
    %c1_79 = arith.constant 1 : index
    %c0_80 = arith.constant 0 : index
    %303 = vector.load %arg8[%c1_79, %c0_80] : memref<9x256xf32, #tpu.memory_space<vmem>>, vector<1x256xf32>
    %304 = vector.broadcast %303 : vector<1x256xf32> to vector<4x256xf32>
    %305 = arith.mulf %304, %301 : vector<4x256xf32>
    %306 = vector.broadcast %302 : vector<4x1xf32> to vector<4x256xf32>
    %307 = arith.mulf %306, %305 : vector<4x256xf32>
    %308 = arith.addf %300, %307 : vector<4x256xf32>
    %c15_i32_81 = arith.constant 15 : i32
    %309 = tpu.dynamic_rotate %289 by %c15_i32_81 dim 1 : vector<4x256xf32>, i32 -> vector<4x256xf32>
    %310 = vector.extract_strided_slice %290 {offsets = [0, 2], sizes = [4, 1], strides = [1, 1]} : vector<4x9xf32> to vector<4x1xf32>
    %c2_82 = arith.constant 2 : index
    %c0_83 = arith.constant 0 : index
    %311 = vector.load %arg8[%c2_82, %c0_83] : memref<9x256xf32, #tpu.memory_space<vmem>>, vector<1x256xf32>
    %312 = vector.broadcast %311 : vector<1x256xf32> to vector<4x256xf32>
    %313 = arith.mulf %312, %309 : vector<4x256xf32>
    %314 = vector.broadcast %310 : vector<4x1xf32> to vector<4x256xf32>
    %315 = arith.mulf %314, %313 : vector<4x256xf32>
    %316 = arith.addf %308, %315 : vector<4x256xf32>
    %c1_i32_84 = arith.constant 1 : i32
    %317 = tpu.dynamic_rotate %289 by %c1_i32_84 dim 1 : vector<4x256xf32>, i32 -> vector<4x256xf32>
    %318 = vector.extract_strided_slice %290 {offsets = [0, 3], sizes = [4, 1], strides = [1, 1]} : vector<4x9xf32> to vector<4x1xf32>
    %c3_85 = arith.constant 3 : index
    %c0_86 = arith.constant 0 : index
    %319 = vector.load %arg8[%c3_85, %c0_86] : memref<9x256xf32, #tpu.memory_space<vmem>>, vector<1x256xf32>
    %320 = vector.broadcast %319 : vector<1x256xf32> to vector<4x256xf32>
    %321 = arith.mulf %320, %317 : vector<4x256xf32>
    %322 = vector.broadcast %318 : vector<4x1xf32> to vector<4x256xf32>
    %323 = arith.mulf %322, %321 : vector<4x256xf32>
    %324 = arith.addf %316, %323 : vector<4x256xf32>
    %325 = vector.extract_strided_slice %290 {offsets = [0, 4], sizes = [4, 1], strides = [1, 1]} : vector<4x9xf32> to vector<4x1xf32>
    %c4_87 = arith.constant 4 : index
    %c0_88 = arith.constant 0 : index
    %326 = vector.load %arg8[%c4_87, %c0_88] : memref<9x256xf32, #tpu.memory_space<vmem>>, vector<1x256xf32>
    %327 = vector.broadcast %326 : vector<1x256xf32> to vector<4x256xf32>
    %328 = arith.mulf %327, %289 : vector<4x256xf32>
    %329 = vector.broadcast %325 : vector<4x1xf32> to vector<4x256xf32>
    %330 = arith.mulf %329, %328 : vector<4x256xf32>
    %331 = arith.addf %324, %330 : vector<4x256xf32>
    %c255_i32_89 = arith.constant 255 : i32
    %332 = tpu.dynamic_rotate %289 by %c255_i32_89 dim 1 : vector<4x256xf32>, i32 -> vector<4x256xf32>
    %333 = vector.extract_strided_slice %290 {offsets = [0, 5], sizes = [4, 1], strides = [1, 1]} : vector<4x9xf32> to vector<4x1xf32>
    %c5_90 = arith.constant 5 : index
    %c0_91 = arith.constant 0 : index
    %334 = vector.load %arg8[%c5_90, %c0_91] : memref<9x256xf32, #tpu.memory_space<vmem>>, vector<1x256xf32>
    %335 = vector.broadcast %334 : vector<1x256xf32> to vector<4x256xf32>
    %336 = arith.mulf %335, %332 : vector<4x256xf32>
    %337 = vector.broadcast %333 : vector<4x1xf32> to vector<4x256xf32>
    %338 = arith.mulf %337, %336 : vector<4x256xf32>
    %339 = arith.addf %331, %338 : vector<4x256xf32>
    %c241_i32_92 = arith.constant 241 : i32
    %340 = tpu.dynamic_rotate %289 by %c241_i32_92 dim 1 : vector<4x256xf32>, i32 -> vector<4x256xf32>
    %341 = vector.extract_strided_slice %290 {offsets = [0, 6], sizes = [4, 1], strides = [1, 1]} : vector<4x9xf32> to vector<4x1xf32>
    %c6_93 = arith.constant 6 : index
    %c0_94 = arith.constant 0 : index
    %342 = vector.load %arg8[%c6_93, %c0_94] : memref<9x256xf32, #tpu.memory_space<vmem>>, vector<1x256xf32>
    %343 = vector.broadcast %342 : vector<1x256xf32> to vector<4x256xf32>
    %344 = arith.mulf %343, %340 : vector<4x256xf32>
    %345 = vector.broadcast %341 : vector<4x1xf32> to vector<4x256xf32>
    %346 = arith.mulf %345, %344 : vector<4x256xf32>
    %347 = arith.addf %339, %346 : vector<4x256xf32>
    %c240_i32_95 = arith.constant 240 : i32
    %348 = tpu.dynamic_rotate %289 by %c240_i32_95 dim 1 : vector<4x256xf32>, i32 -> vector<4x256xf32>
    %349 = vector.extract_strided_slice %290 {offsets = [0, 7], sizes = [4, 1], strides = [1, 1]} : vector<4x9xf32> to vector<4x1xf32>
    %c7_96 = arith.constant 7 : index
    %c0_97 = arith.constant 0 : index
    %350 = vector.load %arg8[%c7_96, %c0_97] : memref<9x256xf32, #tpu.memory_space<vmem>>, vector<1x256xf32>
    %351 = vector.broadcast %350 : vector<1x256xf32> to vector<4x256xf32>
    %352 = arith.mulf %351, %348 : vector<4x256xf32>
    %353 = vector.broadcast %349 : vector<4x1xf32> to vector<4x256xf32>
    %354 = arith.mulf %353, %352 : vector<4x256xf32>
    %355 = arith.addf %347, %354 : vector<4x256xf32>
    %c239_i32_98 = arith.constant 239 : i32
    %356 = tpu.dynamic_rotate %289 by %c239_i32_98 dim 1 : vector<4x256xf32>, i32 -> vector<4x256xf32>
    %357 = vector.extract_strided_slice %290 {offsets = [0, 8], sizes = [4, 1], strides = [1, 1]} : vector<4x9xf32> to vector<4x1xf32>
    %c8_99 = arith.constant 8 : index
    %c0_100 = arith.constant 0 : index
    %358 = vector.load %arg8[%c8_99, %c0_100] : memref<9x256xf32, #tpu.memory_space<vmem>>, vector<1x256xf32>
    %359 = vector.broadcast %358 : vector<1x256xf32> to vector<4x256xf32>
    %360 = arith.mulf %359, %356 : vector<4x256xf32>
    %361 = vector.broadcast %357 : vector<4x1xf32> to vector<4x256xf32>
    %362 = arith.mulf %361, %360 : vector<4x256xf32>
    %363 = arith.addf %355, %362 : vector<4x256xf32>
    %364 = vector.broadcast %291 : vector<4x1xf32> to vector<4x256xf32>
    %365 = arith.addf %363, %364 : vector<4x256xf32>
    %366 = vector.extract_strided_slice %4 {offsets = [0, 69], sizes = [4, 4], strides = [1, 1]} : vector<4x74xf32> to vector<4x4xf32>
    %cst_101 = arith.constant dense<0.000000e+00> : vector<4x256xf32>
    %367 = tpu.matmul %366, %365, %cst_101 {dimension_numbers = #tpu.dot_dimension_numbers<[1], [0], [0], [1], [0, 0, 1, 1], [], []>} : vector<4x4xf32>, vector<4x256xf32>, vector<4x256xf32> -> vector<4x256xf32>
    %368 = vector.extract_strided_slice %4 {offsets = [0, 73], sizes = [4, 1], strides = [1, 1]} : vector<4x74xf32> to vector<4x1xf32>
    %369 = vector.broadcast %368 : vector<4x1xf32> to vector<4x256xf32>
    %370 = arith.addf %367, %369 : vector<4x256xf32>
    %371 = vector.extract_strided_slice %2 {offsets = [0, 20], sizes = [8, 4], strides = [1, 1]} : vector<8x29xf32> to vector<8x4xf32>
    %cst_102 = arith.constant dense<0.000000e+00> : vector<8x256xf32>
    %372 = tpu.matmul %371, %175, %cst_102 {dimension_numbers = #tpu.dot_dimension_numbers<[1], [0], [0], [1], [0, 0, 1, 1], [], []>} : vector<8x4xf32>, vector<4x256xf32>, vector<8x256xf32> -> vector<8x256xf32>
    %373 = vector.extract_strided_slice %2 {offsets = [0, 24], sizes = [8, 4], strides = [1, 1]} : vector<8x29xf32> to vector<8x4xf32>
    %cst_103 = arith.constant dense<0.000000e+00> : vector<8x256xf32>
    %374 = tpu.matmul %373, %370, %cst_103 {dimension_numbers = #tpu.dot_dimension_numbers<[1], [0], [0], [1], [0, 0, 1, 1], [], []>} : vector<8x4xf32>, vector<4x256xf32>, vector<8x256xf32> -> vector<8x256xf32>
    %375 = arith.addf %372, %374 : vector<8x256xf32>
    %376 = vector.extract_strided_slice %2 {offsets = [0, 28], sizes = [8, 1], strides = [1, 1]} : vector<8x29xf32> to vector<8x1xf32>
    %377 = vector.broadcast %376 : vector<8x1xf32> to vector<8x256xf32>
    %378 = arith.addf %375, %377 : vector<8x256xf32>
    %379 = arith.addf %1, %378 : vector<8x256xf32>
    %c0_104 = arith.constant 0 : index
    %c0_105 = arith.constant 0 : index
    %c0_106 = arith.constant 0 : index
    %380 = vector.load %arg9[%c0_104, %c0_105, %c0_106] : memref<1x8x256xf32, #tpu.memory_space<vmem>>, vector<1x8x256xf32>
    %381 = vector.shape_cast %380 : vector<1x8x256xf32> to vector<8x256xf32>
    %382 = vector.shape_cast %379 : vector<8x256xf32> to vector<1x8x256xf32>
    tpu.vector_store %arg9[%c0_104, %c0_105, %c0_106], %382 {strides = array<i32>} : memref<1x8x256xf32, #tpu.memory_space<vmem>>, vector<1x8x256xf32>,
    return
  }
  func.func @transform_0(%arg0: i32) -> (i32, i32, i32) {
    %c0_i32 = arith.constant 0 : i32
    %c0_i32_0 = arith.constant 0 : i32
    %c0_i32_1 = arith.constant 0 : i32
    return %arg0, %c0_i32, %c0_i32_0 : i32, i32, i32
  }
  func.func @transform_1(%arg0: i32) -> (i32, i32) {
    %c0_i32 = arith.constant 0 : i32
    %c0_i32_0 = arith.constant 0 : i32
    %c0_i32_1 = arith.constant 0 : i32
    return %c0_i32, %c0_i32_0 : i32, i32
  }
  func.func @transform_2(%arg0: i32) -> (i32, i32) {
    %c0_i32 = arith.constant 0 : i32
    %c0_i32_0 = arith.constant 0 : i32
    %c0_i32_1 = arith.constant 0 : i32
    return %c0_i32, %c0_i32_0 : i32, i32
  }
  func.func @transform_3(%arg0: i32) -> (i32, i32) {
    %c0_i32 = arith.constant 0 : i32
    %c0_i32_0 = arith.constant 0 : i32
    %c0_i32_1 = arith.constant 0 : i32
    return %c0_i32, %c0_i32_0 : i32, i32
  }
  func.func @transform_4(%arg0: i32) -> (i32, i32) {
    %c0_i32 = arith.constant 0 : i32
    %c0_i32_0 = arith.constant 0 : i32
    %c0_i32_1 = arith.constant 0 : i32
    return %c0_i32, %c0_i32_0 : i32, i32
  }
  func.func @transform_5(%arg0: i32) -> (i32, i32) {
    %c0_i32 = arith.constant 0 : i32
    %c0_i32_0 = arith.constant 0 : i32
    %c0_i32_1 = arith.constant 0 : i32
    return %c0_i32, %c0_i32_0 : i32, i32
  }
  func.func @transform_6(%arg0: i32) -> (i32, i32) {
    %c0_i32 = arith.constant 0 : i32
    %c0_i32_0 = arith.constant 0 : i32
    %c0_i32_1 = arith.constant 0 : i32
    return %c0_i32, %c0_i32_0 : i32, i32
  }
  func.func @transform_7(%arg0: i32) -> (i32, i32) {
    %c0_i32 = arith.constant 0 : i32
    %c0_i32_0 = arith.constant 0 : i32
    %c0_i32_1 = arith.constant 0 : i32
    return %c0_i32, %c0_i32_0 : i32, i32
  }
  func.func @transform_8(%arg0: i32) -> (i32, i32, i32) {
    %c0_i32 = arith.constant 0 : i32
    %c0_i32_0 = arith.constant 0 : i32
    %c0_i32_1 = arith.constant 0 : i32
    return %arg0, %c0_i32, %c0_i32_0 : i32, i32, i32
  }
}

</mosaic_0001>

<bundles_post_ra>
// kernel: res_four6_forward.1
= control target key start
LH: loop header
LB: loop body
LE: loop exit
PB: predicated region body
PF: predicated region fallthrough
CT: control target
= control target key end

     0   :  { %13 = vsyncpa [#allocation3], 0  ;;  %s4872_s0 = inlined_call_operand.vmem [shape: f32[2,8,256], index: 0, kind: input, shape index: {}]   ;;  %s4873_s1 = inlined_call_operand.vmem [shape: f32[8,29], index: 1, kind: input, shape index: {}]   ;;  %s4874_s2 = inlined_call_operand.vmem [shape: f32[5,28], index: 2, kind: input, shape index: {}]   ;;  %s4875_s3 = inlined_call_operand.vmem [shape: f32[4,74], index: 3, kind: input, shape index: {}]   ;;  %s4876_s4 = inlined_call_operand.hbm [shape: f32[256,512], index: 4, kind: input, shape index: {}]   ;;  %s4877_s5 = inlined_call_operand.hbm [shape: f32[256,256], index: 5, kind: input, shape index: {}]   ;;  %s4878_s6 = inlined_call_operand.hbm [shape: f32[256,256], index: 6, kind: input, shape index: {}]   ;;  %s4879_s7 = inlined_call_operand.vmem [shape: f32[9,256], index: 7, kind: input, shape index: {}]   ;;  %s4880_s8 = inlined_call_operand.vmem [shape: f32[2,8,256], index: 8, kind: output, shape index: {}]  }
   0x1   :  { %14 = vsyncpa [#allocation5], 0  ;;  %s3794_s27 = smov 0  }
   0x2 LB: > { %s258_s30 = sshll.u32 %s4877_s5, 4  ;;  %s3803_s9 = sadd.s32 4294967295, %s3677_s27   ;;  %s3677_s27 = sphi %s3794_s27, %s20_s27   ;;  %s259_s30 = int_to_ptr.hbm [resolvable:$true] %s258_s30 }
   0x3   : > { %p3283_p0 = scmp.ge.s32.totalorder %s3677_s27, 1  ;;  %p224_p1 = scmp.lt.s32.totalorder %s3677_s27, 3 }
   0x4   : > { %p3408_p2 = scmp.eq.s32.totalorder %s3803_s9, 0  ;;  %s3679_s11 = smov [#allocation4]  }
   0x5   : > { %p3808_p3 = pnand %p3283_p0, %p224_p1  ;;  %s260_s12 = sshll.u32 %s3679_s11, 4  ;;  %s261_s12 = int_to_ptr.vmem [resolvable:$true] %s260_s12 }
   0x6   : > { %s244_s15 = sshll.u32 %s4876_s4, 4  ;;  %s3680_s17 = smov [#allocation2]   ;;  %s245_s15 = int_to_ptr.hbm [resolvable:$true] %s244_s15 }
   0x7   : > { %p3398_p4 = pneg %p3808_p3  ;;  %s246_s18 = sshll.u32 %s3680_s17, 4  ;;  %s247_s18 = int_to_ptr.vmem [resolvable:$true] %s246_s18 }
   0x8   : > { %s3681_s19 = smov 256   ;;  %s3682_s20 = smov 16  }
   0x9   : > { %p3819_p5 = pnand %p3408_p2, %p3398_p4  ;;  %s272_s23 = sshll.u32 %s4878_s6, 4  ;;  %s273_s23 = int_to_ptr.hbm [resolvable:$true] %s272_s23 }
   0xa   : > { %s3683_s24 = smov 512   ;;  %s3684_s25 = smov 32  }
   0xb   : > { %3404 = dma.hbm_to_vmem [thread:$0]  (!%p3819_p5), %s259_s30, 8192, %s261_s12, [#allocation5], %s3681_s19, %s3681_s19, %s3682_s20  }
   0xc   : > { %3401 = dma.hbm_to_vmem [thread:$0]  (!%p3819_p5), %s245_s15, 16384, %s247_s18, [#allocation3], %s3683_s24, %s3683_s24, %s3684_s25  }
   0xd   : > { %s3685_s26 = smov [#allocation6]   ;;  %301 = sbr.rel (%p3808_p3) target bundleno = 3442 (0xd72), region = 52 }
   0xe   : > { %s274_s28 = sshll.u32 %s3685_s26, 4  ;;  %s275_s28 = int_to_ptr.vmem [resolvable:$true] %s274_s28 }
   0xf   : > { %3407 = dma.hbm_to_vmem [thread:$0]  (!%p3819_p5), %s273_s23, 8192, %s275_s28, [#allocation5], %s3681_s19, %s3681_s19, %s3682_s20  }
  0x12   : > { %3668 = dma.done.wait (%p3408_p2), [#allocation3], 16384  }
  0x13   : > { %3670 = vsyncadd (%p3408_p2), [#allocation3], 4294950912 }
  0x14   : > { %3672 = dma.done.wait (%p3408_p2), [#allocation5], 16384  }
  0x15   : > { %3674 = vsyncadd (%p3408_p2), [#allocation5], 4294950912  ;;  %v3845_v0 = vld [vmem:[%s4874_s2] sm:$0x1f]  ;;  %s3686_s10 = smov 120   ;;  %s3687_s11 = smov 112  }
  0x16   : > { %405 = vrot.lane.b32.xlu0 %v3845_v0, %s3686_s10  ;;  %p346_p6 = scmp.lt.s32.totalorder %s3803_s9, 1  ;;  %vm361_vm0 = vcmask 64512   ;;  %v3688_v14 = vmov 21   ;;  %s3689_s16 = smov 106   ;;  %vm488_vm1 = vcmask 1044480   ;;  %vm485_vm3 = vcmask 39936  }
  0x17   : > { %3492 = vset.pattern.permute.xlu1 %v3688_v14  ;;  %v3690_v36 = vmov 27   ;;  %v3905_v37 = vld [vmem:[%s4873_s1] sm:$0xff]  ;;  %s3691_s19 = smov 123   ;;  %s3692_s20 = smov 118  }
  0x18   : > { %s4950_s9 = smov (!%p346_p6, %s3803_s9), 1  ;;  %480 = vperm.xlu1 %3492, %v3845_v0   ;;  %3493 = vset.pattern.permute.xlu2 %v3690_v36  ;;  %s3696_s23 = smov 119  }
  0x19   : > { %s3384_s12 = sshll.u32 %s4950_s9, 4  ;;  %542 = vperm.xlu2 %3493, %v3845_v0   ;;  %s3697_s24 = smov 110  }
  0x1a   : > { %s3860_s15 = scalar_lea.vmem %s4872_s0, %s3384_s12  ;;  %s3701_s25 = smov 100  }
  0x1b   : > { %v3863_v1 = vld [vmem:[%s3860_s15] sm:$0xff]  ;;  %v3866_v2 = vld [vmem:[%s3860_s15 + $0x8] sm:$0xff]  ;;  %s3702_s26 = smov 105   ;;  %s3703_s28 = smov 95  }
  0x1c   : > { %424 = vmatpush.msra.mxu2 %v3863_v1  ;;  %444 = vmatpush.msra.mxu3 %v3866_v2  ;;  %s3714_s29 = smov 16   ;;  %s3715_s30 = smov 17  }
  0x1d   : > { %380 = vmatpush.msra.mxu0 %v3863_v1  ;;  %400 = vmatpush.msra.mxu1 %v3866_v2  ;;  %s3717_s10 = smov 15   ;;  %s3718_s13 = smov 1  }
  0x1e   : > { %483 = vrot.lane.b32.xlu0 %v3845_v0, %s3687_s11  ;;  %3296 = vmatmul.msk.f32.vlgmr.msra.gmra.mxu0 %vm361_vm0, %v3845_v0  ;;  %s3719_s14 = smov 113   ;;  %s3722_s17 = smov 111  }
  0x1f   : > { %3297 = vmatmul.msk.f32.vlgmr.msra.gmra.mxu1 %vm361_vm0, %v3845_v0  ;;  %s3723_s22 = smov 80  }
  0x20   : > { %545 = vrot.lane.b32.xlu1 %v3845_v0, %s3689_s16  ;;  %s3721_s16 = smov 127  }
  0x21   : > { %614 = vrot.lane.b32.xlu2 %v3905_v37, %s3691_s19 }
  0x28   : > { %717 = vrot.lane.b32.xlu1 %v3905_v37, %s3692_s20 }
  0x73   : > { %v543_v52 = vpop.permute.xlu2 %542 }
  0x88   : > { %v406_v3 = vpop.permute.xlu0 %405 }
  0x89   : > { %3298 = vmatmul.msk.f32.vlgmr.msra.gmra.mxu2 %vm361_vm0, %v406_v3  ;;  %3299 = vmatmul.msk.f32.vlgmr.msra.gmra.mxu3 %vm361_vm0, %v406_v3 }
  0x8a   : > { %v481_v38 = vpop.permute.xlu1 %480 }
  0x90   : > { %v484_v32 = vpop.permute.xlu0 %483 }
  0x92   : > { %v546_v45 = vpop.permute.xlu1 %545 }
  0x9b   : > { %v3878_v4 = vpop.f32.mrf.mxu0 }
  0x9c   : > { %v3880_v5 = vpop.f32.mrf.mxu1  ;;  %v449_v6 = vmul.f32 %v3878_v4, %v3878_v4 }
  0x9d   : > { %v450_v7 = vmul.f32 %v3880_v5, %v3880_v5 }
 0x10c   : > { %v3886_v8 = vpop.f32.mrf.mxu2  ;;  %v3888_v9 = vpop.f32.mrf.mxu3 }
 0x10d   : > { %v451_v10 = vmul.f32 %v3886_v8, %v3886_v8  ;;  %v452_v11 = vmul.f32 %v3888_v9, %v3888_v9 }
 0x10f   : > { %v453_v12 = vadd.f32 %v451_v10, %v449_v6  ;;  %v454_v13 = vadd.f32 %v452_v11, %v450_v7 }
 0x111   : > { %3531 = vrsqrt.f32 %v453_v12  ;;  %vm462_vm2 = vcmp.eq.f32.partialorder %v453_v12, inf  ;;  %v465_v28 = vand.u32 2147483648, %v453_v12  ;;  %vm464_vm4 = vcmp.eq.f32.partialorder %v453_v12, 0.0 }
 0x112   : > { %3533 = vrsqrt.f32 %v454_v13  ;;  %vm474_vm5 = vcmp.eq.f32.partialorder %v454_v13, inf  ;;  %v477_v31 = vand.u32 2147483648, %v454_v13  ;;  %vm476_vm6 = vcmp.eq.f32.partialorder %v454_v13, 0.0 }
 0x117   : > { %v3532_v15 = vpop.eup %3531 }
 0x118   : > { %v3534_v16 = vpop.eup %3533  ;;  %v456_v17 = vmul.f32 %v3532_v15, %v453_v12 }
 0x119   : > { %v468_v18 = vmul.f32 %v3534_v16, %v454_v13 }
 0x11a   : > { %v457_v19 = vmul.f32 %v3532_v15, %v456_v17  ;;  %v4883_v17 = vmov 0  }
 0x11b   : > { %v469_v20 = vmul.f32 %v3534_v16, %v468_v18  ;;  %3494 = vset.pattern.permute.xlu2 %v4883_v17  ;;  %v718_v18 = vpop.permute.xlu1 %717 }
 0x11c   : > { %v458_v21 = vmul.f32 0.5, %v457_v19 }
 0x11d   : > { %v470_v22 = vmul.f32 0.5, %v469_v20 }
 0x11e   : > { %v459_v23 = vsub.f32 1.5, %v458_v21 }
 0x11f   : > { %v471_v24 = vsub.f32 1.5, %v470_v22 }
 0x120   : > { %v460_v25 = vmul.f32 %v3532_v15, %v459_v23 }
 0x121   : > { %v472_v26 = vmul.f32 %v3534_v16, %v471_v24 }
 0x122   : > { %v461_v27 = vmul.f32 %v460_v25, %v453_v12 }
 0x123   : > { %v473_v29 = vmul.f32 %v472_v26, %v454_v13  ;;  %v3694_v26 = vmov 18  }
 0x124   : > { %v463_v30 = vsel %vm462_vm2, %v453_v12, %v461_v27 }
 0x125   : > { %v466_v33 = vsel %vm464_vm4, %v465_v28, %v463_v30  ;;  %v475_v34 = vsel %vm474_vm5, %v454_v13, %v473_v29 }
 0x126   : > { %v478_v35 = vsel %vm476_vm6, %v477_v31, %v475_v34  ;;  %3300 = vmatpush.msk.msrb.mxu0 %vm488_vm1, %v466_v33  ;;  %vm595_vm9 = vcmp.gt.f32.partialorder %v466_v33, 0.0 }
 0x127   : > { %3302 = vmatpush.msk.msrb.mxu1 %vm488_vm1, %v478_v35  ;;  %3301 = vmatmul.msk.f32.vlgmr.msrb.gmra.mxu0 %vm485_vm3, %v484_v32  ;;  %vm596_vm10 = vcmp.gt.f32.partialorder %v478_v35, 0.0  ;;  %v597_v48 = vsel %vm595_vm9, %v466_v33, 1.0 }
 0x128   : > { %3303 = vmatmul.msk.f32.vlgmr.msrb.gmra.mxu1 %vm485_vm3, %v484_v32  ;;  %v598_v49 = vsel %vm596_vm10, %v478_v35, 1.0  ;;  %3535 = vrcp.f32 %v597_v48 }
 0x129   : > { %3537 = vrcp.f32 %v598_v49 }
 0x12e   : > { %v3536_v50 = vpop.eup %3535 }
 0x12f   : > { %v3538_v51 = vpop.eup %3537  ;;  %v605_v53 = vmul.f32 %v3536_v50, %v3886_v8  ;;  %v601_v54 = vmul.f32 %v3536_v50, %v3878_v4 }
 0x130   : > { %v606_v55 = vmul.f32 %v3538_v51, %v3888_v9  ;;  %v602_v56 = vmul.f32 %v3538_v51, %v3880_v5  ;;  %v615_v5 = vpop.permute.xlu2 %614  ;;  %v998_v51 = vld [vmem:[#allocation2 + $0x1e0] sm:$0xff] }
 0x131   : > { %v603_v60 = vsel %vm595_vm9, %v601_v54, 1.0  ;;  %v607_v61 = vsel %vm595_vm9, %v605_v53, 0.0  ;;  %v999_v53 = vld [vmem:[#allocation2 + $0x1e8] sm:$0xff] }
 0x132   : > { %v604_v3 = vsel %vm596_vm10, %v602_v56, 1.0  ;;  %v608_v6 = vsel %vm596_vm10, %v606_v55, 0.0  ;;  %v1063_v54 = vld [vmem:[#allocation2 + $0x3e8] sm:$0xff]  ;;  %v1058_v55 = vld [vmem:[#allocation2 + $0x3c0] sm:$0xff] }
 0x133   : > { %v995_v56 = vld [vmem:[#allocation2 + $0x1c8] sm:$0xff] }
 0x1a4   : > { %v512_v39 = vpop.f32.mrf.mxu0 }
 0x1a5   : > { %v513_v40 = vadd.f32 %v512_v39, %v481_v38  ;;  %v532_v41 = vpop.f32.mrf.mxu1  ;;  %v3944_v39 = vld [vmem:[%s4875_s3] sm:$0xf] }
 0x1a6   : > { %v533_v42 = vadd.f32 %v532_v41, %v481_v38  ;;  %v3695_v38 = vmov 19   ;;  %v3699_v41 = vmov 8  }
 0x1a7   : > { %v537_v43 = vmul.f32 0.1, %v513_v40  ;;  %vm535_vm7 = vcmp.ge.f32.partialorder %v513_v40, 0.0 }
 0x1a8   : > { %v538_v44 = vmul.f32 0.1, %v533_v42  ;;  %vm536_vm8 = vcmp.ge.f32.partialorder %v533_v42, 0.0 }
 0x1a9   : > { %v539_v46 = vsel %vm535_vm7, %v513_v40, %v537_v43  ;;  %v3698_v40 = vmov 22  }
 0x1aa   : > { %3304 = vmatpush.msk.msrb.mxu2 %vm488_vm1, %v539_v46  ;;  %v540_v47 = vsel %vm536_vm8, %v533_v42, %v538_v44  ;;  %3499 = vset.pattern.permute.xlu1 %v3698_v40  ;;  %v3700_v42 = vmov 17   ;;  %v1014_v40 = vld [vmem:[#allocation2 + $0x260] sm:$0xff] }
 0x1ab   : > { %3306 = vmatpush.msk.msrb.mxu3 %vm488_vm1, %v540_v47  ;;  %3305 = vmatmul.msk.f32.vlgmr.msrb.gmra.mxu2 %vm485_vm3, %v546_v45 }
 0x1ac   : > { %3307 = vmatmul.msk.f32.vlgmr.msrb.gmra.mxu3 %vm485_vm3, %v546_v45 }
 0x22e   : > { %v572_v57 = vpop.f32.mrf.mxu2 }
 0x22f   : > { %v573_v58 = vadd.f32 %v572_v57, %v543_v52  ;;  %v592_v59 = vpop.f32.mrf.mxu3  ;;  %v1059_v57 = vld [vmem:[#allocation2 + $0x3c8] sm:$0xff] }
 0x230   : > { %v593_v62 = vadd.f32 %v592_v59, %v543_v52  ;;  %v1062_v52 = vld [vmem:[#allocation2 + $0x3e0] sm:$0xff] }
 0x231   : > { %v609_v63 = vmul.f32 %v603_v60, %v573_v58  ;;  %v611_v0 = vmul.f32 %v607_v61, %v573_v58  ;;  %v990_v59 = vld [vmem:[#allocation2 + $0x1a0] sm:$0xff]  ;;  %v991_v61 = vld [vmem:[#allocation2 + $0x1a8] sm:$0xff] }
 0x232   : > { %v610_v7 = vmul.f32 %v604_v3, %v593_v62  ;;  %v612_v4 = vmul.f32 %v608_v6, %v593_v62  ;;  %v1054_v60 = vld [vmem:[#allocation2 + $0x3a0] sm:$0xff]  ;;  %v1055_v62 = vld [vmem:[#allocation2 + $0x3a8] sm:$0xff] }
 0x233   : > { %3308 = vmatpush.msk.msra.mxu0 %vm488_vm1, %v611_v0  ;;  %3312 = vmatpush.msk.msra.mxu2 %vm488_vm1, %v609_v63  ;;  %v986_v63 = vld [vmem:[#allocation2 + $0x180] sm:$0xff]  ;;  %v987_v3 = vld [vmem:[#allocation2 + $0x188] sm:$0xff] }
 0x234   : > { %3310 = vmatpush.msk.msra.mxu1 %vm488_vm1, %v612_v4  ;;  %3314 = vmatpush.msk.msra.mxu3 %vm488_vm1, %v610_v7  ;;  %v1050_v0 = vld [vmem:[#allocation2 + $0x380] sm:$0xff]  ;;  %v1051_v6 = vld [vmem:[#allocation2 + $0x388] sm:$0xff] }
 0x235   : > { %3313 = vmatmul.msk.f32.vlgmr.msra.gmra.mxu2 %vm485_vm3, %v3905_v37  ;;  %3315 = vmatmul.msk.f32.vlgmr.msra.gmra.mxu3 %vm485_vm3, %v3905_v37  ;;  %v982_v7 = vld [vmem:[#allocation2 + $0x160] sm:$0xff] }
 0x236   : > { %3309 = vmatmul.msk.f32.vlgmr.msra.gmra.mxu0 %vm485_vm3, %v615_v5  ;;  %3311 = vmatmul.msk.f32.vlgmr.msra.gmra.mxu1 %vm485_vm3, %v615_v5  ;;  %v1046_v4 = vld [vmem:[#allocation2 + $0x360] sm:$0xff]  ;;  %v983_v5 = vld [vmem:[#allocation2 + $0x168] sm:$0xff] }
 0x2b3   : > { %v641_v8 = vpop.f32.mrf.mxu0  ;;  %v661_v9 = vpop.f32.mrf.mxu1 }
 0x2b8   : > { %v689_v10 = vpop.f32.mrf.mxu2  ;;  %v709_v11 = vpop.f32.mrf.mxu3 }
 0x2b9   : > { %v690_v12 = vadd.f32 %v689_v10, %v641_v8  ;;  %v710_v13 = vadd.f32 %v709_v11, %v661_v9  ;;  %v1047_v8 = vld [vmem:[#allocation2 + $0x368] sm:$0xff]  ;;  %v978_v9 = vld [vmem:[#allocation2 + $0x140] sm:$0xff] }
 0x2ba   : > { %v1042_v10 = vld [vmem:[#allocation2 + $0x340] sm:$0xff]  ;;  %v979_v11 = vld [vmem:[#allocation2 + $0x148] sm:$0xff] }
 0x2bb   : > { %v712_v14 = vadd.f32 %v690_v12, %v3863_v1  ;;  %v713_v15 = vadd.f32 %v710_v13, %v3866_v2  ;;  %v1043_v12 = vld [vmem:[#allocation2 + $0x348] sm:$0xff]  ;;  %v974_v13 = vld [vmem:[#allocation2 + $0x120] sm:$0xff] }
 0x2bd   : > { %v714_v16 = vadd.f32 %v713_v15, %v712_v14 }
 0x2bf   : > { %715 = vadd.xlane.f32.xlu0 %v714_v16  ;;  %v1039_v16 = vld [vmem:[#allocation2 + $0x328] sm:$0xff] }
 0x2d3   : > { %1340 = vrot.lane.b32.xlu0 %v3944_v39, %s3697_s24 }
 0x332   : > { %v716_v19 = vpop.xlane.xlu0 %715 }
 0x333   : > { %736 = vmatpush.msrb.mxu0 %v716_v19  ;;  %v1034_v19 = vld [vmem:[#allocation2 + $0x300] sm:$0xff] }
 0x334   : > { %3316 = vmatmul.msk.f32.vlgmr.msrb.gmra.mxu0 %vm361_vm0, %v718_v18 }
 0x3b1   : > { %v738_v20 = vpop.f32.mrf.mxu0 }
 0x3b2   : > { %743 = vperm.xlu2 %3494, %v738_v20   ;;  %v971_v20 = vld [vmem:[#allocation2 + $0x108] sm:$0xff] }
 0x3ba   : > { %3495 = vset.pattern.permute.xlu2 %v3694_v26  ;;  %v963_v26 = vld [vmem:[#allocation2 + $0xc8] sm:$0xff] }
 0x3bb   : > { %792 = vperm.xlu2 %3495, %v3905_v37  }
 0x3c3   : > { %3496 = vset.pattern.permute.xlu2 %v4883_v17 }
 0x40c   : > { %v744_v21 = vpop.permute.xlu2 %743 }
 0x40d   : > { %v746_v22 = vsub.f32 %v712_v14, %v744_v21  ;;  %v747_v23 = vsub.f32 %v713_v15, %v744_v21  ;;  %v1038_v14 = vld [vmem:[#allocation2 + $0x320] sm:$0xff]  ;;  %v975_v15 = vld [vmem:[#allocation2 + $0x128] sm:$0xff] }
 0x40e   : > { %v1035_v21 = vld [vmem:[#allocation2 + $0x308] sm:$0xff] }
 0x40f   : > { %v748_v24 = vmul.f32 %v746_v22, %v746_v22  ;;  %v749_v25 = vmul.f32 %v747_v23, %v747_v23 }
 0x411   : > { %v750_v1 = vadd.f32 %v749_v25, %v748_v24  ;;  %v967_v24 = vld [vmem:[#allocation2 + $0xe8] sm:$0xff] }
 0x412   : > { %v1031_v25 = vld [vmem:[#allocation2 + $0x2e8] sm:$0xff] }
 0x413   : > { %751 = vadd.xlane.f32.xlu1 %v750_v1  ;;  %v962_v1 = vld [vmem:[#allocation2 + $0xc0] sm:$0xff] }
 0x42c   : > { %1337 = vperm.xlu1 %3499, %v3944_v39  }
 0x434   : > { %3502 = vset.pattern.permute.xlu1 %v3700_v42  ;;  %v946_v42 = vld [vmem:[#allocation2 + $0x40] sm:$0xff] }
 0x435   : > { %851 = vperm.xlu1 %3502, %v3944_v39  }
 0x43d   : > { %3505 = vset.pattern.permute.xlu1 %v3690_v36  ;;  %v994_v36 = vld [vmem:[#allocation2 + $0x1c0] sm:$0xff] }
 0x43e   : > { %1399 = vperm.xlu1 %3505, %v3944_v39  }
 0x486   : > { %v752_v2 = vpop.xlane.xlu1 %751 }
 0x487   : > { %768 = vmatpush.msrb.mxu1 %v752_v2  ;;  %v1026_v2 = vld [vmem:[#allocation2 + $0x2c0] sm:$0xff] }
 0x488   : > { %3317 = vmatmul.msk.f32.vlgmr.msrb.gmra.mxu1 %vm361_vm0, %v718_v18  ;;  %v970_v18 = vld [vmem:[#allocation2 + $0x100] sm:$0xff] }
 0x505   : > { %v770_v27 = vpop.f32.mrf.mxu1 }
 0x506   : > { %v773_v28 = vadd.f32 1e-06, %v770_v27  ;;  %v1027_v27 = vld [vmem:[#allocation2 + $0x2c8] sm:$0xff] }
 0x508   : > { %3539 = vrsqrt.f32 %v773_v28  ;;  %vm780_vm12 = vweird.f32 %v773_v28 }
 0x50e   : > { %v3540_v29 = vpop.eup %3539 }
 0x50f   : > { %v775_v30 = vmul.f32 %v3540_v29, %v773_v28  ;;  %vm781_vm11 = vweird.f32 %v3540_v29  ;;  %v958_v28 = vld [vmem:[#allocation2 + $0xa0] sm:$0xff] }
 0x510   : > { %vm782_vm13 = vmor %vm780_vm12, %vm781_vm11 }
 0x511   : > { %v776_v31 = vmul.f32 %v3540_v29, %v775_v30  ;;  %v959_v30 = vld [vmem:[#allocation2 + $0xa8] sm:$0xff] }
 0x513   : > { %v777_v32 = vmul.f32 0.5, %v776_v31  ;;  %v1023_v31 = vld [vmem:[#allocation2 + $0x2a8] sm:$0xff] }
 0x515   : > { %v778_v33 = vsub.f32 1.5, %v777_v32  ;;  %v954_v32 = vld [vmem:[#allocation2 + $0x80] sm:$0xff] }
 0x517   : > { %v779_v34 = vmul.f32 %v3540_v29, %v778_v33  ;;  %v1018_v33 = vld [vmem:[#allocation2 + $0x280] sm:$0xff] }
 0x519   : > { %v783_v35 = vsel %vm782_vm13, %v3540_v29, %v779_v34  ;;  %v1022_v29 = vld [vmem:[#allocation2 + $0x2a0] sm:$0xff]  ;;  %v955_v34 = vld [vmem:[#allocation2 + $0x88] sm:$0xff] }
 0x51a   : > { %786 = vperm.xlu2 %3496, %v783_v35   ;;  %v1019_v35 = vld [vmem:[#allocation2 + $0x288] sm:$0xff] }
 0x522   : > { %3497 = vset.pattern.permute.xlu2 %v3695_v38  ;;  %v950_v38 = vld [vmem:[#allocation2 + $0x60] sm:$0xff] }
 0x523   : > { %798 = vperm.xlu2 %3497, %v3905_v37   ;;  %v793_v37 = vpop.permute.xlu2 %792 }
 0x52b   : > { %854 = vrot.lane.b32.xlu2 %v3944_v39, %s3696_s23  ;;  %s3731_s23 = smov 75  }
 0x52c   : > { %3498 = vset.pattern.permute.xlu2 %v3699_v41  ;;  %v951_v41 = vld [vmem:[#allocation2 + $0x68] sm:$0xff] }
 0x533   : > { %805 = vperm.xlu2 %3498, %v3944_v39  }
 0x53b   : > { %1456 = vrot.lane.b32.xlu2 %v3944_v39, %s3701_s25 }
 0x543   : > { %1402 = vrot.lane.b32.xlu2 %v3944_v39, %s3702_s26 }
 0x54b   : > { %1516 = vrot.lane.b32.xlu2 %v3944_v39, %s3703_s28 }
 0x574   : > { %v787_v43 = vpop.permute.xlu2 %786 }
 0x575   : > { %v789_v44 = vmul.f32 %v787_v43, %v746_v22  ;;  %v790_v45 = vmul.f32 %v787_v43, %v747_v23  ;;  %v966_v22 = vld [vmem:[#allocation2 + $0xe0] sm:$0xff] }
 0x576   : > { %v1030_v23 = vld [vmem:[#allocation2 + $0x2e0] sm:$0xff] }
 0x577   : > { %v795_v46 = vmul.f32 %v793_v37, %v789_v44  ;;  %v796_v47 = vmul.f32 %v793_v37, %v790_v45  ;;  %v1015_v37 = vld [vmem:[#allocation2 + $0x268] sm:$0xff]  ;;  %v1010_v43 = vld [vmem:[#allocation2 + $0x240] sm:$0xff] }
 0x578   : > { %v947_v44 = vld [vmem:[#allocation2 + $0x48] sm:$0xff] }
 0x579   : > { %v1011_v45 = vld [vmem:[#allocation2 + $0x248] sm:$0xff] }
 0x57d   : > { %v799_v48 = vpop.permute.xlu2 %798 }
 0x57e   : > { %v801_v49 = vadd.f32 %v799_v48, %v795_v46  ;;  %v802_v50 = vadd.f32 %v799_v48, %v796_v47  ;;  %v942_v46 = vld [vmem:[#allocation2 + $0x20] sm:$0xff]  ;;  %v943_v48 = vld [vmem:[#allocation2 + $0x28] sm:$0xff] }
 0x57f   : > { %v1006_v47 = vld [vmem:[#allocation2 + $0x220] sm:$0xff] }
 0x580   : > { %825 = vmatpush.msrb.mxu2 %v801_v49  ;;  %845 = vmatpush.msrb.mxu3 %v802_v50 }
 0x581   : > { %873 = vmatpush.msra.mxu0 %v801_v49  ;;  %893 = vmatpush.msra.mxu1 %v802_v50  ;;  %v1007_v49 = vld [vmem:[#allocation2 + $0x228] sm:$0xff]  ;;  %v938_v50 = vld [vmem:[#allocation2] sm:$0xff] }
 0x582   : > { %3318 = vmatmul.msk.f32.vlgmr.msrb.gmra.mxu2 %vm361_vm0, %v3944_v39  ;;  %3319 = vmatmul.msk.f32.vlgmr.msrb.gmra.mxu3 %vm361_vm0, %v3944_v39 }
 0x583   : > { %1066 = vmatpush.msra.mxu2 %v998_v51  ;;  %1086 = vmatpush.msra.mxu3 %v1062_v52  ;;  %v1002_v51 = vld [vmem:[#allocation2 + $0x200] sm:$0xff]  ;;  %v939_v52 = vld [vmem:[#allocation2 + $0x8] sm:$0xff] }
 0x584   : > { %1106 = vmatpush.msrb.mxu0 %v999_v53  ;;  %1126 = vmatpush.msrb.mxu1 %v1063_v54  ;;  %v1003_v53 = vld [vmem:[#allocation2 + $0x208] sm:$0xff]  ;;  %v1000_v54 = vld [vmem:[#allocation2 + $0x1f0] sm:$0xff] }
 0x585   : > { %v855_v58 = vpop.permute.xlu2 %854  ;;  %1067 = vmatpush.msra.mxu2 %v994_v36  ;;  %1087 = vmatpush.msra.mxu3 %v1058_v55  ;;  %v1064_v36 = vld [vmem:[#allocation2 + $0x3f0] sm:$0xff]  ;;  %v1001_v55 = vld [vmem:[#allocation2 + $0x1f8] sm:$0xff] }
 0x586   : > { %3320 = vmatmul.msk.f32.vlgmr.msra.gmra.mxu0 %vm361_vm0, %v855_v58  ;;  %3321 = vmatmul.msk.f32.vlgmr.msra.gmra.mxu1 %vm361_vm0, %v855_v58  ;;  %v1060_v58 = vld [vmem:[#allocation2 + $0x3d0] sm:$0xff] }
 0x587   : > { %1107 = vmatpush.msrb.mxu0 %v995_v56  ;;  %1127 = vmatpush.msrb.mxu1 %v1059_v57  ;;  %v1065_v56 = vld [vmem:[#allocation2 + $0x3f8] sm:$0xff]  ;;  %v996_v57 = vld [vmem:[#allocation2 + $0x1d0] sm:$0xff] }
 0x588   : > { %1068 = vmatpush.msra.mxu2 %v990_v59  ;;  %1088 = vmatpush.msra.mxu3 %v1054_v60  ;;  %v997_v59 = vld [vmem:[#allocation2 + $0x1d8] sm:$0xff] }
 0x589   : > { %1108 = vmatpush.msrb.mxu0 %v991_v61  ;;  %1128 = vmatpush.msrb.mxu1 %v1055_v62  ;;  %v1061_v60 = vld [vmem:[#allocation2 + $0x3d8] sm:$0xff]  ;;  %v992_v61 = vld [vmem:[#allocation2 + $0x1b0] sm:$0xff] }
 0x58a   : > { %1069 = vmatpush.msra.mxu2 %v986_v63  ;;  %1089 = vmatpush.msra.mxu3 %v1050_v0  ;;  %v1056_v62 = vld [vmem:[#allocation2 + $0x3b0] sm:$0xff]  ;;  %v993_v63 = vld [vmem:[#allocation2 + $0x1b8] sm:$0xff] }
 0x58b   : > { %1109 = vmatpush.msrb.mxu0 %v987_v3  ;;  %1129 = vmatpush.msrb.mxu1 %v1051_v6  ;;  %v1057_v0 = vld [vmem:[#allocation2 + $0x3b8] sm:$0xff]  ;;  %v988_v3 = vld [vmem:[#allocation2 + $0x190] sm:$0xff] }
 0x58c   : > { %1070 = vmatpush.msra.mxu2 %v982_v7  ;;  %1090 = vmatpush.msra.mxu3 %v1046_v4  ;;  %v1052_v6 = vld [vmem:[#allocation2 + $0x390] sm:$0xff]  ;;  %v989_v7 = vld [vmem:[#allocation2 + $0x198] sm:$0xff] }
 0x58d   : > { %1110 = vmatpush.msrb.mxu0 %v983_v5  ;;  %1130 = vmatpush.msrb.mxu1 %v1047_v8  ;;  %v1053_v4 = vld [vmem:[#allocation2 + $0x398] sm:$0xff]  ;;  %v984_v5 = vld [vmem:[#allocation2 + $0x170] sm:$0xff] }
 0x58e   : > { %1071 = vmatpush.msra.mxu2 %v978_v9  ;;  %1091 = vmatpush.msra.mxu3 %v1042_v10  ;;  %v1048_v8 = vld [vmem:[#allocation2 + $0x370] sm:$0xff]  ;;  %v985_v9 = vld [vmem:[#allocation2 + $0x178] sm:$0xff] }
 0x58f   : > { %1111 = vmatpush.msrb.mxu0 %v979_v11  ;;  %1131 = vmatpush.msrb.mxu1 %v1043_v12  ;;  %v1049_v10 = vld [vmem:[#allocation2 + $0x378] sm:$0xff]  ;;  %v980_v11 = vld [vmem:[#allocation2 + $0x150] sm:$0xff] }
 0x590   : > { %1072 = vmatpush.msra.mxu2 %v974_v13  ;;  %1092 = vmatpush.msra.mxu3 %v1038_v14  ;;  %v1044_v12 = vld [vmem:[#allocation2 + $0x350] sm:$0xff]  ;;  %v981_v13 = vld [vmem:[#allocation2 + $0x158] sm:$0xff] }
 0x591   : > { %1112 = vmatpush.msrb.mxu0 %v975_v15  ;;  %1132 = vmatpush.msrb.mxu1 %v1039_v16  ;;  %v1045_v14 = vld [vmem:[#allocation2 + $0x358] sm:$0xff]  ;;  %v976_v15 = vld [vmem:[#allocation2 + $0x130] sm:$0xff] }
 0x592   : > { %1073 = vmatpush.msra.mxu2 %v970_v18  ;;  %1093 = vmatpush.msra.mxu3 %v1034_v19  ;;  %v1040_v16 = vld [vmem:[#allocation2 + $0x330] sm:$0xff]  ;;  %v977_v18 = vld [vmem:[#allocation2 + $0x138] sm:$0xff] }
 0x593   : > { %1113 = vmatpush.msrb.mxu0 %v971_v20  ;;  %1133 = vmatpush.msrb.mxu1 %v1035_v21  ;;  %v1041_v19 = vld [vmem:[#allocation2 + $0x338] sm:$0xff]  ;;  %v972_v20 = vld [vmem:[#allocation2 + $0x110] sm:$0xff] }
 0x594   : > { %1074 = vmatpush.msra.mxu2 %v966_v22  ;;  %1094 = vmatpush.msra.mxu3 %v1030_v23  ;;  %v1036_v21 = vld [vmem:[#allocation2 + $0x310] sm:$0xff]  ;;  %v973_v22 = vld [vmem:[#allocation2 + $0x118] sm:$0xff] }
 0x595   : > { %1114 = vmatpush.msrb.mxu0 %v967_v24  ;;  %1134 = vmatpush.msrb.mxu1 %v1031_v25  ;;  %v1037_v23 = vld [vmem:[#allocation2 + $0x318] sm:$0xff]  ;;  %v968_v24 = vld [vmem:[#allocation2 + $0xf0] sm:$0xff] }
 0x596   : > { %1075 = vmatpush.msra.mxu2 %v962_v1  ;;  %1095 = vmatpush.msra.mxu3 %v1026_v2  ;;  %v1032_v25 = vld [vmem:[#allocation2 + $0x2f0] sm:$0xff]  ;;  %v969_v1 = vld [vmem:[#allocation2 + $0xf8] sm:$0xff] }
 0x597   : > { %1115 = vmatpush.msrb.mxu0 %v963_v26  ;;  %1135 = vmatpush.msrb.mxu1 %v1027_v27  ;;  %v1033_v2 = vld [vmem:[#allocation2 + $0x2f8] sm:$0xff]  ;;  %v964_v26 = vld [vmem:[#allocation2 + $0xd0] sm:$0xff] }
 0x598   : > { %1076 = vmatpush.msra.mxu2 %v958_v28  ;;  %1096 = vmatpush.msra.mxu3 %v1022_v29  ;;  %v1028_v27 = vld [vmem:[#allocation2 + $0x2d0] sm:$0xff]  ;;  %v965_v28 = vld [vmem:[#allocation2 + $0xd8] sm:$0xff] }
 0x599   : > { %1116 = vmatpush.msrb.mxu0 %v959_v30  ;;  %1136 = vmatpush.msrb.mxu1 %v1023_v31  ;;  %v1029_v29 = vld [vmem:[#allocation2 + $0x2d8] sm:$0xff]  ;;  %v960_v30 = vld [vmem:[#allocation2 + $0xb0] sm:$0xff] }
 0x59a   : > { %1077 = vmatpush.msra.mxu2 %v954_v32  ;;  %1097 = vmatpush.msra.mxu3 %v1018_v33  ;;  %v1024_v31 = vld [vmem:[#allocation2 + $0x2b0] sm:$0xff]  ;;  %v961_v32 = vld [vmem:[#allocation2 + $0xb8] sm:$0xff] }
 0x59b   : > { %1117 = vmatpush.msrb.mxu0 %v955_v34  ;;  %1137 = vmatpush.msrb.mxu1 %v1019_v35  ;;  %v1025_v33 = vld [vmem:[#allocation2 + $0x2b8] sm:$0xff]  ;;  %v956_v34 = vld [vmem:[#allocation2 + $0x90] sm:$0xff] }
 0x59c   : > { %1078 = vmatpush.msra.mxu2 %v950_v38  ;;  %1098 = vmatpush.msra.mxu3 %v1014_v40  ;;  %v1020_v35 = vld [vmem:[#allocation2 + $0x290] sm:$0xff]  ;;  %v957_v38 = vld [vmem:[#allocation2 + $0x98] sm:$0xff]  ;;  %v3704_v40 = vmov 42  }
 0x59d   : > { %1118 = vmatpush.msrb.mxu0 %v951_v41  ;;  %1138 = vmatpush.msrb.mxu1 %v1015_v37  ;;  %v1021_v41 = vld [vmem:[#allocation2 + $0x298] sm:$0xff]  ;;  %v952_v37 = vld [vmem:[#allocation2 + $0x70] sm:$0xff] }
 0x59e   : > { %1079 = vmatpush.msra.mxu2 %v946_v42  ;;  %1099 = vmatpush.msra.mxu3 %v1010_v43  ;;  %v1016_v42 = vld [vmem:[#allocation2 + $0x270] sm:$0xff]  ;;  %v953_v43 = vld [vmem:[#allocation2 + $0x78] sm:$0xff] }
 0x59f   : > { %1119 = vmatpush.msrb.mxu0 %v947_v44  ;;  %1139 = vmatpush.msrb.mxu1 %v1011_v45  ;;  %v1017_v44 = vld [vmem:[#allocation2 + $0x278] sm:$0xff]  ;;  %v948_v45 = vld [vmem:[#allocation2 + $0x50] sm:$0xff] }
 0x5a0   : > { %1080 = vmatpush.msra.mxu2 %v942_v46  ;;  %1100 = vmatpush.msra.mxu3 %v1006_v47  ;;  %v1012_v46 = vld [vmem:[#allocation2 + $0x250] sm:$0xff]  ;;  %v949_v47 = vld [vmem:[#allocation2 + $0x58] sm:$0xff] }
 0x5a1   : > { %1120 = vmatpush.msrb.mxu0 %v943_v48  ;;  %1140 = vmatpush.msrb.mxu1 %v1007_v49  ;;  %v3705_v48 = vmov 32   ;;  %v1013_v49 = vld [vmem:[#allocation2 + $0x258] sm:$0xff] }
 0x5a2   : > { %1081 = vmatpush.msra.mxu2 %v938_v50  ;;  %1101 = vmatpush.msra.mxu3 %v1002_v51  ;;  %v944_v50 = vld [vmem:[#allocation2 + $0x30] sm:$0xff] }
 0x5a3   : > { %1121 = vmatpush.msrb.mxu0 %v939_v52  ;;  %1141 = vmatpush.msrb.mxu1 %v1003_v53  ;;  %v1008_v51 = vld [vmem:[#allocation2 + $0x230] sm:$0xff]  ;;  %v945_v52 = vld [vmem:[#allocation2 + $0x38] sm:$0xff] }
 0x5a4   : > { %1146 = vmatpush.msrb.mxu2 %v1000_v54  ;;  %1166 = vmatpush.msrb.mxu3 %v1064_v36  ;;  %v1009_v53 = vld [vmem:[#allocation2 + $0x238] sm:$0xff]  ;;  %v940_v54 = vld [vmem:[#allocation2 + $0x10] sm:$0xff] }
 0x5a5   : > { %1186 = vmatpush.msra.mxu0 %v1001_v55  ;;  %1206 = vmatpush.msra.mxu1 %v1065_v56  ;;  %v1004_v36 = vld [vmem:[#allocation2 + $0x210] sm:$0xff]  ;;  %v941_v55 = vld [vmem:[#allocation2 + $0x18] sm:$0xff] }
 0x5a6   : > { %1147 = vmatpush.msrb.mxu2 %v996_v57  ;;  %1167 = vmatpush.msrb.mxu3 %v1060_v58  ;;  %v1005_v56 = vld [vmem:[#allocation2 + $0x218] sm:$0xff]  ;;  %v3706_v57 = vmov 43   ;;  %v3707_v58 = vmov 38  }
 0x5a7   : > { %1187 = vmatpush.msra.mxu0 %v997_v59  ;;  %1207 = vmatpush.msra.mxu1 %v1061_v60  ;;  %v3966_v59 = vpop.permute.xlu1 %1337  ;;  %v3708_v60 = vmov 37  }
 0x5a8   : > { %1148 = vmatpush.msrb.mxu2 %v992_v61  ;;  %1168 = vmatpush.msrb.mxu3 %v1056_v62  ;;  %v3709_v61 = vmov 44   ;;  %v3710_v62 = vmov 40  }
 0x5a9   : > { %1188 = vmatpush.msra.mxu0 %v993_v63  ;;  %1208 = vmatpush.msra.mxu1 %v1057_v0  ;;  %v3711_v63 = vmov 39  }
 0x5aa   : > { %1149 = vmatpush.msrb.mxu2 %v988_v3  ;;  %1169 = vmatpush.msrb.mxu3 %v1052_v6  ;;  %v806_v3 = vpop.permute.xlu2 %805 }
 0x5ab   : > { %1189 = vmatpush.msra.mxu0 %v989_v7  ;;  %1209 = vmatpush.msra.mxu1 %v1053_v4 }
 0x5ac   : > { %1150 = vmatpush.msrb.mxu2 %v984_v5  ;;  %1170 = vmatpush.msrb.mxu3 %v1048_v8 }
 0x5ad   : > { %1190 = vmatpush.msra.mxu0 %v985_v9  ;;  %1210 = vmatpush.msra.mxu1 %v1049_v10 }
 0x5ae   : > { %1151 = vmatpush.msrb.mxu2 %v980_v11  ;;  %1171 = vmatpush.msrb.mxu3 %v1044_v12 }
 0x5af   : > { %1191 = vmatpush.msra.mxu0 %v981_v13  ;;  %1211 = vmatpush.msra.mxu1 %v1045_v14  ;;  %v852_v0 = vpop.permute.xlu1 %851  ;;  %v3712_v14 = vmov 41  }
 0x5b0   : > { %1152 = vmatpush.msrb.mxu2 %v976_v15  ;;  %1172 = vmatpush.msrb.mxu3 %v1040_v16 }
 0x5b1   : > { %1192 = vmatpush.msra.mxu0 %v977_v18  ;;  %1212 = vmatpush.msra.mxu1 %v1041_v19 }
 0x5b2   : > { %1153 = vmatpush.msrb.mxu2 %v972_v20  ;;  %1173 = vmatpush.msrb.mxu3 %v1036_v21 }
 0x5b3   : > { %1193 = vmatpush.msra.mxu0 %v973_v22  ;;  %1213 = vmatpush.msra.mxu1 %v1037_v23 }
 0x5b4   : > { %1154 = vmatpush.msrb.mxu2 %v968_v24  ;;  %1174 = vmatpush.msrb.mxu3 %v1032_v25 }
 0x5b5   : > { %1194 = vmatpush.msra.mxu0 %v969_v1  ;;  %1214 = vmatpush.msra.mxu1 %v1033_v2 }
 0x5b6   : > { %1155 = vmatpush.msrb.mxu2 %v964_v26  ;;  %1175 = vmatpush.msrb.mxu3 %v1028_v27 }
 0x5b7   : > { %1195 = vmatpush.msra.mxu0 %v965_v28  ;;  %1215 = vmatpush.msra.mxu1 %v1029_v29 }
 0x5b8   : > { %1156 = vmatpush.msrb.mxu2 %v960_v30  ;;  %1176 = vmatpush.msrb.mxu3 %v1024_v31  ;;  %v3713_v31 = vmov 45  }
 0x5b9   : > { %1196 = vmatpush.msra.mxu0 %v961_v32  ;;  %1216 = vmatpush.msra.mxu1 %v1025_v33 }
 0x5ba   : > { %3508 = vset.pattern.permute.xlu1 %v3704_v40  ;;  %1157 = vmatpush.msrb.mxu2 %v956_v34 }
 0x5bb   : > { %1177 = vmatpush.msrb.mxu3 %v1020_v35  ;;  %1197 = vmatpush.msra.mxu0 %v957_v38 }
 0x5bc   : > { %1217 = vmatpush.msra.mxu1 %v1021_v41  ;;  %2585 = vperm.xlu1 %3508, %v3944_v39  }
 0x5bd   : > { %1158 = vmatpush.msrb.mxu2 %v952_v37  ;;  %1178 = vmatpush.msrb.mxu3 %v1016_v42 }
 0x5be   : > { %1198 = vmatpush.msra.mxu0 %v953_v43  ;;  %1218 = vmatpush.msra.mxu1 %v1017_v44  ;;  %v3716_v43 = vmov 46   ;;  %v3720_v44 = vmov 47  }
 0x5bf   : > { %3500 = vset.pattern.permute.xlu0 %v3705_v48  ;;  %1159 = vmatpush.msrb.mxu2 %v948_v45  ;;  %v4011_v45 = vpop.permute.xlu1 %1399 }
 0x5c0   : > { %1453 = vperm.xlu0 %3500, %v3944_v39   ;;  %1179 = vmatpush.msrb.mxu3 %v1012_v46  ;;  %4909 = vst [vmem:[#allocation11_spill] sm:$0xff] %v4011_v45  ;;  %v4016_v46 = vld [vmem:[%s4879_s7 + $0x4] ss:$8 sm:$0x3] }
 0x5c1   : > { %1199 = vmatpush.msra.mxu0 %v949_v47  ;;  %1219 = vmatpush.msra.mxu1 %v1013_v49  ;;  %4910 = vst [vmem:[#allocation12_spill] sm:$0xff] %v4016_v46  ;;  %v4018_v47 = vpop.permute.xlu2 %1456  ;;  %v4881_v48 = vperm.slane %v4016_v46, 0 }
 0x5c2   : > { %1160 = vmatpush.msrb.mxu2 %v944_v50  ;;  %1180 = vmatpush.msrb.mxu3 %v1008_v51 }
 0x5c3   : > { %1200 = vmatpush.msra.mxu0 %v945_v52  ;;  %1220 = vmatpush.msra.mxu1 %v1009_v53 }
 0x5c4   : > { %1161 = vmatpush.msrb.mxu2 %v940_v54  ;;  %1181 = vmatpush.msrb.mxu3 %v1004_v36  ;;  %v4035_v54 = vpop.permute.xlu0 %1340 }
 0x5c5   : > { %1201 = vmatpush.msra.mxu0 %v941_v55  ;;  %1221 = vmatpush.msra.mxu1 %v1005_v56 }
 0x5c6   : > { %3509 = vset.pattern.permute.xlu1 %v3706_v57  ;;  %3501 = vset.pattern.permute.xlu2 %v3708_v60 }
 0x5c7   : > { %2609 = vperm.xlu1 %3509, %v3944_v39   ;;  %1513 = vperm.xlu2 %3501, %v3944_v39  }
 0x5c8   : > { %3503 = vset.pattern.permute.xlu0 %v3707_v58 }
 0x5c9   : > { %2496 = vperm.xlu0 %3503, %v3944_v39   ;;  %v4030_v52 = vpop.permute.xlu2 %1402 }
 0x5cf   : > { %3510 = vset.pattern.permute.xlu1 %v3709_v61  ;;  %3504 = vset.pattern.permute.xlu2 %v3711_v63 }
 0x5d0   : > { %2633 = vperm.xlu1 %3510, %v3944_v39   ;;  %2520 = vperm.xlu2 %3504, %v3944_v39  }
 0x5d1   : > { %3506 = vset.pattern.permute.xlu0 %v3710_v62  ;;  %v4033_v53 = vpop.permute.xlu2 %1516 }
 0x5d2   : > { %2544 = vperm.xlu0 %3506, %v3944_v39  }
 0x5d8   : > { %3507 = vset.pattern.permute.xlu2 %v3712_v14  ;;  %3511 = vset.pattern.permute.xlu1 %v3713_v31 }
 0x5d9   : > { %2568 = vperm.xlu2 %3507, %v3944_v39  }
 0x5da   : > { %3512 = vset.pattern.permute.xlu0 %v3716_v43 }
 0x5e1   : > { %3513 = vset.pattern.permute.xlu2 %v3720_v44 }
 0x603   : > { %v875_v6 = vpop.f32.mrf.mxu0  ;;  %v895_v7 = vpop.f32.mrf.mxu1 }
 0x604   : > { %v876_v4 = vadd.f32 %v875_v6, %v852_v0  ;;  %v896_v5 = vadd.f32 %v895_v7, %v852_v0 }
 0x605   : > { %v827_v8 = vpop.f32.mrf.mxu2  ;;  %v847_v9 = vpop.f32.mrf.mxu3 }
 0x606   : > { %v3322_v10 = vmul.f32 -1.442695, %v876_v4  ;;  %v3972_v11 = vadd.f32 %v827_v8, %v806_v3  ;;  %v3974_v12 = vadd.f32 %v847_v9, %v806_v3  ;;  %v3323_v13 = vmul.f32 -1.442695, %v896_v5 }
 0x607   : > { %v2482_v8 = vlaneseq }
 0x608   : > { %4907 = vst [vmem:[#allocation9_spill] sm:$0xff] %v3972_v11  ;;  %3541 = vpow2.f32 %v3322_v10  ;;  %1082 = vmatmul.f32.vlgmr.msra.gmra.mxu2 %v3972_v11  ;;  %1102 = vmatmul.f32.vlgmr.msra.gmra.mxu3 %v3974_v12 }
 0x609   : > { %4908 = vst [vmem:[#allocation10_spill] sm:$0xff] %v3974_v12  ;;  %1122 = vmatmul.f32.vlgmr.msrb.gmra.mxu0 %v3972_v11  ;;  %1142 = vmatmul.f32.vlgmr.msrb.gmra.mxu1 %v3974_v12  ;;  %3543 = vpow2.f32 %v3323_v13 }
 0x60e   : > { %v3542_v15 = vpop.eup %3541 }
 0x60f   : > { %v3544_v16 = vpop.eup %3543  ;;  %v904_v18 = vadd.f32 1.0, %v3542_v15 }
 0x610   : > { %v905_v19 = vadd.f32 1.0, %v3544_v16  ;;  %1162 = vmatmul.f32.vlgmr.msrb.gmra.mxu2 %v3972_v11  ;;  %1182 = vmatmul.f32.vlgmr.msrb.gmra.mxu3 %v3974_v12 }
 0x611   : > { %3545 = vrcp.f32 %v904_v18  ;;  %1202 = vmatmul.f32.vlgmr.msra.gmra.mxu0 %v3972_v11  ;;  %1222 = vmatmul.f32.vlgmr.msra.gmra.mxu1 %v3974_v12  ;;  %vm911_vm14 = vweird.f32 %v904_v18  ;;  %v917_v23 = vand.u32 2147483648, %v904_v18  ;;  %v915_v1 = vand.u32 2147483647, %v904_v18 }
 0x612   : > { %3547 = vrcp.f32 %v905_v19  ;;  %v932_v2 = vand.u32 2147483648, %v905_v19  ;;  %vm926_vm0 = vweird.f32 %v905_v19  ;;  %v930_v27 = vand.u32 2147483647, %v905_v19 }
 0x613   : > { %v918_v29 = vor.u32 1.1754944e-38, %v917_v23  ;;  %vm916_vm3 = vcmp.eq.f32.partialorder %v915_v1, 8.507059e+37 }
 0x614   : > { %v933_v33 = vor.u32 1.1754944e-38, %v932_v2  ;;  %vm931_vm5 = vcmp.eq.f32.partialorder %v930_v27, 8.507059e+37 }
 0x617   : > { %v3546_v20 = vpop.eup %3545 }
 0x618   : > { %v3548_v21 = vpop.eup %3547  ;;  %v907_v22 = vmul.f32 %v3546_v20, %v904_v18  ;;  %vm912_vm15 = vweird.f32 %v3546_v20 }
 0x619   : > { %v922_v24 = vmul.f32 %v3548_v21, %v905_v19  ;;  %vm927_vm1 = vweird.f32 %v3548_v21  ;;  %vm913_vm2 = vmor %vm911_vm14, %vm912_vm15  ;;  %vm1345_vm14 = vcmask 1043456  }
 0x61a   : > { %v908_v25 = vsub.f32 1.0, %v907_v22  ;;  %vm928_vm4 = vmor %vm926_vm0, %vm927_vm1  ;;  %v4075_v22 = vand.u32 127, %v2482_v8 }
 0x61b   : > { %v923_v26 = vsub.f32 1.0, %v922_v24  ;;  %v4082_v24 = vld [vmem:[%s4879_s7] ss:$8 sm:$0x3] }
 0x61c   : > { %v909_v28 = vmul.f32 %v3546_v20, %v908_v25  ;;  %vm2484_vm7 = vcmp.lt.s32.totalorder %v4075_v22, 17  ;;  %vm2507_vm9 = vcmp.lt.s32.totalorder %v4075_v22, 16  ;;  %vm2531_vm10 = vcmp.lt.s32.totalorder %v4075_v22, 15 }
 0x61d   : > { %v924_v30 = vmul.f32 %v3548_v21, %v923_v26  ;;  %vm2555_vm11 = vcmp.lt.s32.totalorder %v4075_v22, 1 }
 0x61e   : > { %v910_v32 = vadd.f32 %v3546_v20, %v909_v28 }
 0x61f   : > { %v925_v34 = vadd.f32 %v3548_v21, %v924_v30  ;;  %v4105_v30 = vld [vmem:[%s4879_s7 + $0x1] ss:$8 sm:$0x3] }
 0x620   : > { %v914_v35 = vsel %vm913_vm2, %v3546_v20, %v910_v32 }
 0x621   : > { %v919_v38 = vsel %vm916_vm3, %v918_v29, %v914_v35  ;;  %v929_v40 = vsel %vm928_vm4, %v3548_v21, %v925_v34  ;;  %v4037_v36 = vpop.permute.xlu2 %1513  ;;  %v4882_v29 = vperm.slane %v4082_v24, 0 }
 0x622   : > { %v936_v41 = vmul.f32 %v919_v38, %v876_v4  ;;  %v934_v37 = vsel %vm931_vm5, %v933_v33, %v929_v40  ;;  %v4116_v33 = vld [vmem:[%s4879_s7 + $0x2] ss:$8 sm:$0x3]  ;;  %v4886_v40 = vperm.slane %v4105_v30, 0 }
 0x623   : > { %v3985_v42 = vmul.f32 %v934_v37, %v896_v5  ;;  %v4885_v43 = vperm.slane %v4116_v33, 0 }
 0x624   : > { %2503 = vrot.lane.b32.xlu1 %v936_v41, %s3714_s29  ;;  %2478 = vrot.lane.b32.xlu0 %v936_v41, %s3715_s30  ;;  %v2582_v49 = vmul.f32 %v4881_v48, %v936_v41 }
 0x625   : > { %2480 = vrot.lane.b32.xlu2 %v3985_v42, %s3715_s30 }
 0x62a   : > { %v4041_v56 = vpop.permute.xlu2 %2520 }
 0x62c   : > { %2529 = vrot.lane.b32.xlu1 %v3985_v42, %s3717_s10  ;;  %2505 = vrot.lane.b32.xlu0 %v3985_v42, %s3714_s29 }
 0x62d   : > { %2527 = vrot.lane.b32.xlu2 %v936_v41, %s3717_s10 }
 0x62e   : > { %v4025_v50 = vpop.permute.xlu1 %2585 }
 0x62f   : > { %v4028_v51 = vmul.f32 %v4025_v50, %v2582_v49 }
 0x632   : > { %v4039_v55 = vpop.permute.xlu0 %1453 }
 0x633   : > { %v4047_v60 = vpop.permute.xlu2 %2568 }
 0x634   : > { %2553 = vrot.lane.b32.xlu1 %v3985_v42, %s3718_s13  ;;  %2616 = vrot.lane.b32.xlu0 %v936_v41, %s3719_s14 }
 0x635   : > { %2551 = vrot.lane.b32.xlu2 %v936_v41, %s3718_s13 }
 0x639   : > { %v4043_v57 = vpop.permute.xlu1 %2609 }
 0x63b   : > { %v4045_v58 = vpop.permute.xlu0 %2496 }
 0x63c   : > { %2592 = vrot.lane.b32.xlu1 %v936_v41, %s3721_s16  ;;  %2640 = vrot.lane.b32.xlu0 %v936_v41, %s3687_s11 }
 0x63d   : > { %2594 = vrot.lane.b32.xlu2 %v3985_v42, %s3721_s16 }
 0x642   : > { %v4049_v0 = vpop.permute.xlu1 %2633 }
 0x643   : > { %4911 = vst [vmem:[#allocation13_spill] sm:$0xff] %v4049_v0 }
 0x644   : > { %2657 = vperm.xlu1 %3511, %v3944_v39   ;;  %2664 = vrot.lane.b32.xlu0 %v936_v41, %s3722_s17  ;;  %v4051_v3 = vpop.permute.xlu0 %2544 }
 0x645   : > { %2618 = vrot.lane.b32.xlu2 %v3985_v42, %s3719_s14 }
 0x64c   : > { %2681 = vperm.xlu0 %3512, %v3944_v39  }
 0x64d   : > { %2642 = vrot.lane.b32.xlu2 %v3985_v42, %s3687_s11 }
 0x655   : > { %2666 = vrot.lane.b32.xlu2 %v3985_v42, %s3722_s17 }
 0x65d   : > { %2689 = vperm.xlu2 %3513, %v3944_v39  }
 0x67f   : > { %v4057_v9 = vpop.permute.xlu2 %2480 }
 0x686   : > { %v1123_v61 = vpop.f32.mrf.mxu0  ;;  %v1143_v62 = vpop.f32.mrf.mxu1 }
 0x687   : > { %v4053_v6 = vadd.f32 %v1143_v62, %v1123_v61  ;;  %v4107_v31 = vpop.permute.xlu2 %2527 }
 0x689   : > { %v1227_v10 = vmul.f32 %v4053_v6, %v4053_v6  ;;  %v4062_v13 = vand.u32 2147483647, %v4053_v6 }
 0x68b   : > { %v1083_v63 = vpop.f32.mrf.mxu2  ;;  %v1103_v39 = vpop.f32.mrf.mxu3 }
 0x68c   : > { %v4069_v16 = vadd.f32 %v1103_v39, %v1083_v63  ;;  %v4140_v39 = vld [vmem:[%s4879_s7 + $0x3] ss:$8 sm:$0x3] }
 0x68e   : > { %v1203_v7 = vpop.f32.mrf.mxu0  ;;  %v1223_v4 = vpop.f32.mrf.mxu1  ;;  %v4086_v25 = vand.u32 2147483647, %v4069_v16  ;;  %v1226_v49 = vmul.f32 %v4069_v16, %v4069_v16 }
 0x68f   : > { %v4055_v5 = vadd.f32 %v1223_v4, %v1203_v7 }
 0x691   : > { %v1229_v14 = vmul.f32 %v4055_v5, %v4055_v5  ;;  %v4067_v15 = vand.u32 2147483647, %v4055_v5 }
 0x693   : > { %v4071_v18 = vadd.f32 %v1229_v14, %v1227_v10  ;;  %v1261_v19 = vmax.f32 %v4062_v13, %v4067_v15  ;;  %v1163_v20 = vpop.f32.mrf.mxu2  ;;  %v1183_v21 = vpop.f32.mrf.mxu3 }
 0x694   : > { %v4077_v23 = vadd.f32 %v1183_v21, %v1163_v20 }
 0x695   : > { %vm1265_vm6 = vcmp.gt.f32.partialorder %v1261_v19, 0.0  ;;  %3549 = vrsqrt.f32 %v4071_v18  ;;  %vm1251_vm13 = vcmp.eq.f32.partialorder %v4071_v18, inf  ;;  %vm1253_vm0 = vcmp.eq.f32.partialorder %v4071_v18, 0.0 }
 0x696   : > { %v4088_v1 = vsel %vm1265_vm6, %v1261_v19, 1.0  ;;  %v4091_v2 = vand.u32 2147483647, %v4077_v23  ;;  %v4093_v26 = vpop.permute.xlu1 %2503  ;;  %v4095_v27 = vpop.permute.xlu0 %2478  ;;  %v1228_v38 = vmul.f32 %v4077_v23, %v4077_v23  ;;  %vm4903_vm6 = vcmp.lt.s32.totalorder %v4075_v22, 127 }
 0x697   : > { %3551 = vrcp.f32 %v4088_v1  ;;  %v2486_v32 = vsel %vm2484_vm7, %v4057_v9, %v4095_v27  ;;  %v1294_v10 = vand.u32 2147483648, %v4088_v1  ;;  %vm1288_vm15 = vweird.f32 %v4088_v1 }
 0x698   : > { %v1260_v28 = vmax.f32 %v4086_v25, %v4091_v2  ;;  %v2493_v37 = vmul.f32 %v4882_v29, %v2486_v32  ;;  %v4152_v14 = vadd.f32 %v1228_v38, %v1226_v49  ;;  %v1263_v38 = vmin.f32 %v4062_v13, %v4067_v15 }
 0x69a   : > { %vm1264_vm8 = vcmp.gt.f32.partialorder %v1260_v28, 0.0  ;;  %v2499_v20 = vmul.f32 %v4045_v58, %v2493_v37 }
 0x69b   : > { %v3550_v34 = vpop.eup %3549  ;;  %v4118_v35 = vsel %vm1264_vm8, %v1260_v28, 1.0 }
 0x69c   : > { %3553 = vrcp.f32 %v4118_v35  ;;  %v1245_v44 = vmul.f32 %v3550_v34, %v4071_v18  ;;  %v1277_v12 = vand.u32 2147483647, %v4118_v35  ;;  %vm1273_vm4 = vweird.f32 %v4118_v35 }
 0x69d   : > { %v3552_v41 = vpop.eup %3551  ;;  %3555 = vrsqrt.f32 %v4152_v14 }
 0x69e   : > { %v1284_v61 = vmul.f32 %v3552_v41, %v4088_v1  ;;  %v4133_v62 = vpop.permute.xlu1 %2529  ;;  %v4135_v63 = vpop.permute.xlu0 %2505  ;;  %v1246_v32 = vmul.f32 %v3550_v34, %v1245_v44  ;;  %vm1289_vm12 = vweird.f32 %v3552_v41  ;;  %v1295_v44 = vor.u32 1.1754944e-38, %v1294_v10 }
 0x69f   : > { %v2533_v7 = vsel %vm2531_vm10, %v4133_v62, %v4107_v31  ;;  %v2509_v4 = vsel %vm2507_vm9, %v4135_v63, %v4093_v26  ;;  %vm1290_vm1 = vmor %vm1288_vm15, %vm1289_vm12  ;;  %vm1278_vm8 = vcmp.eq.f32.partialorder %v1277_v12, 8.507059e+37  ;;  %vm1239_vm12 = vcmp.eq.f32.partialorder %v4152_v14, inf }
 0x6a0   : > { %v1285_v8 = vsub.f32 1.0, %v1284_v61  ;;  %v2517_v19 = vmul.f32 %v4886_v40, %v2509_v4  ;;  %v2541_v21 = vmul.f32 %v4885_v43, %v2533_v7  ;;  %v1292_v61 = vand.u32 2147483647, %v4088_v1  ;;  %v4167_v7 = vpop.permute.xlu2 %2551 }
 0x6a1   : > { %v1247_v4 = vmul.f32 0.5, %v1246_v32  ;;  %v1279_v1 = vand.u32 2147483648, %v4118_v35  ;;  %vm4904_vm15 = vcmask 31744  }
 0x6a2   : > { %v3554_v48 = vpop.eup %3553  ;;  %v1286_v29 = vmul.f32 %v3552_v41, %v1285_v8  ;;  %v2523_v17 = vmul.f32 %v4041_v56, %v2517_v19  ;;  %v2547_v19 = vmul.f32 %v4051_v3, %v2541_v21  ;;  %vm1293_vm2 = vcmp.eq.f32.partialorder %v1292_v61, 8.507059e+37 }
 0x6a3   : > { %v1269_v49 = vmul.f32 %v3554_v48, %v4118_v35  ;;  %v1248_v40 = vsub.f32 1.5, %v1247_v4  ;;  %vm1274_vm3 = vweird.f32 %v3554_v48 }
 0x6a4   : > { %v1287_v37 = vadd.f32 %v3552_v41, %v1286_v29  ;;  %v2525_v43 = vadd.f32 %v2523_v17, %v2499_v20  ;;  %v1262_v29 = vmin.f32 %v4086_v25, %v4091_v2  ;;  %v1254_v20 = vand.u32 2147483648, %v4071_v18  ;;  %vm1275_vm5 = vmor %vm1273_vm4, %vm1274_vm3 }
 0x6a5   : > { %v1270_v8 = vsub.f32 1.0, %v1269_v49  ;;  %v4912_v49 = vperm.slane %v4140_v39, 0  ;;  %vm1331_vm3 = vcmp.lt.f32.partialorder %v4055_v5, 0.0  ;;  %vm1324_vm4 = vcmp.lt.f32.partialorder %v4069_v16, 0.0 }
 0x6a6   : > { %v1291_v32 = vsel %vm1290_vm1, %v3552_v41, %v1287_v37  ;;  %v4175_v10 = vpop.permute.xlu1 %2553  ;;  %v1249_v41 = vmul.f32 %v3550_v34, %v1248_v40  ;;  %v2549_v61 = vadd.f32 %v2547_v19, %v2525_v43  ;;  %v4189_v37 = vld [vmem:[%s4879_s7 + $0x5] ss:$8 sm:$0x3]  ;;  %vm1325_vm1 = vcmp.lt.f32.partialorder %v4053_v6, 0.0 }
 0x6a7   : > { %v1296_v28 = vsel %vm1293_vm2, %v1295_v44, %v1291_v32  ;;  %v1271_v11 = vmul.f32 %v3554_v48, %v1270_v8  ;;  %v2557_v17 = vsel %vm2555_vm11, %v4175_v10, %v4167_v7  ;;  %v1280_v44 = vor.u32 1.1754944e-38, %v1279_v1 }
 0x6a8   : > { %v1297_v46 = vmul.f32 %v1296_v28, %v1263_v38  ;;  %v2565_v4 = vmul.f32 %v4912_v49, %v2557_v17  ;;  %v3556_v28 = vpop.eup %3555  ;;  %v1250_v34 = vmul.f32 %v1249_v41, %v4071_v18  ;;  %v4892_v32 = vperm.slane %v4189_v37, 0 }
 0x6a9   : > { %v1272_v21 = vadd.f32 %v3554_v48, %v1271_v11  ;;  %v1233_v40 = vmul.f32 %v3556_v28, %v4152_v14  ;;  %vm1318_vm2 = vcmp.gt.f32.partialorder %v4091_v2, %v4086_v25 }
 0x6aa   : > { %v1299_v38 = vmul.f32 %v1297_v46, %v1297_v46  ;;  %v2571_v35 = vmul.f32 %v4047_v60, %v2565_v4  ;;  %v1252_v19 = vsel %vm1251_vm13, %v4071_v18, %v1250_v34  ;;  %vm1241_vm13 = vcmp.eq.f32.partialorder %v4152_v14, 0.0 }
 0x6ab   : > { %v1276_v11 = vsel %vm1275_vm5, %v3554_v48, %v1272_v21  ;;  %v1255_v41 = vsel %vm1253_vm0, %v1254_v20, %v1252_v19  ;;  %v4201_v48 = vpop.permute.xlu2 %2594  ;;  %v1234_v21 = vmul.f32 %v3556_v28, %v1233_v40  ;;  %vm1319_vm0 = vcmp.gt.f32.partialorder %v4067_v15, %v4062_v13 }
 0x6ac   : > { %v1301_v43 = vmul.f32 0.0208351, %v1299_v38  ;;  %v1281_v8 = vsel %vm1278_vm8, %v1280_v44, %v1276_v11  ;;  %v2573_v1 = vadd.f32 %v2571_v35, %v2549_v61  ;;  %3326 = vmatpush.msk.msra.mxu3 %vm1345_vm14, %v1255_v41  ;;  %vm1330_vm5 = vcmp.lt.f32.partialorder %v4077_v23, 0.0 }
 0x6ad   : > { %v1282_v17 = vmul.f32 %v1281_v8, %v1262_v29  ;;  %v1235_v20 = vmul.f32 0.5, %v1234_v21  ;;  %3327 = vmatmul.msk.f32.vlgmr.msra.gmra.mxu3 %vm4904_vm15, %v4035_v54 }
 0x6ae   : > { %v1303_v49 = vadd.f32 -0.085133, %v1301_v43  ;;  %v4204_v12 = vpop.permute.xlu1 %2592  ;;  %v2590_v44 = vadd.f32 %v4028_v51, %v2573_v1 }
 0x6af   : > { %v1298_v4 = vmul.f32 %v1282_v17, %v1282_v17  ;;  %v2597_v29 = vsel %vm4903_vm6, %v4204_v12, %v4201_v48  ;;  %v1236_v43 = vsub.f32 1.5, %v1235_v20 }
 0x6b0   : > { %v1305_v61 = vmul.f32 %v1303_v49, %v1299_v38  ;;  %v2606_v18 = vmul.f32 %v4892_v32, %v2597_v29  ;;  %v1242_v49 = vand.u32 2147483648, %v4152_v14 }
 0x6b1   : > { %v1300_v34 = vmul.f32 0.0208351, %v1298_v4  ;;  %v1237_v51 = vmul.f32 %v3556_v28, %v1236_v43 }
 0x6b2   : > { %v1307_v11 = vadd.f32 0.180141, %v1305_v61  ;;  %v2612_v35 = vmul.f32 %v4043_v57, %v2606_v18 }
 0x6b3   : > { %v1302_v8 = vadd.f32 -0.085133, %v1300_v34  ;;  %v1238_v45 = vmul.f32 %v1237_v51, %v4152_v14 }
 0x6b4   : > { %v1309_v40 = vmul.f32 %v1307_v11, %v1299_v38  ;;  %v4214_v19 = vadd.f32 %v2612_v35, %v2590_v44 }
 0x6b5   : > { %v1304_v1 = vmul.f32 %v1302_v8, %v1298_v4  ;;  %v1240_v29 = vsel %vm1239_vm12, %v4152_v14, %v1238_v45 }
 0x6b6   : > { %v1311_v41 = vadd.f32 -0.3302995, %v1309_v40  ;;  %v1243_v18 = vsel %vm1241_vm13, %v1242_v49, %v1240_v29 }
 0x6b7   : > { %v1306_v0 = vadd.f32 0.180141, %v1304_v1  ;;  %3324 = vmatpush.msk.msra.mxu2 %vm1345_vm14, %v1243_v18 }
 0x6b8   : > { %v1313_v21 = vmul.f32 %v1311_v41, %v1299_v38  ;;  %3325 = vmatmul.msk.f32.vlgmr.msra.gmra.mxu2 %vm4904_vm15, %v4035_v54 }
 0x6b9   : > { %v1308_v61 = vmul.f32 %v1306_v0, %v1298_v4 }
 0x6ba   : > { %v1315_v20 = vadd.f32 0.999866, %v1313_v21 }
 0x6bb   : > { %v1310_v28 = vadd.f32 -0.3302995, %v1308_v61 }
 0x6bc   : > { %v1317_v44 = vmul.f32 %v1315_v20, %v1297_v46 }
 0x6bd   : > { %v1312_v34 = vmul.f32 %v1310_v28, %v1298_v4 }
 0x6be   : > { %v1321_v38 = vsub.f32 1.5707964, %v1317_v44 }
 0x6bf   : > { %v1314_v45 = vadd.f32 0.999866, %v1312_v34 }
 0x6c0   : > { %v1323_v0 = vsel %vm1319_vm0, %v1321_v38, %v1317_v44 }
 0x6c1   : > { %v1316_v14 = vmul.f32 %v1314_v45, %v1282_v17  ;;  %v1327_v11 = vsub.f32 3.1415927, %v1323_v0 }
 0x6c3   : > { %v1329_v35 = vsel %vm1325_vm1, %v1327_v11, %v1323_v0  ;;  %v1320_v43 = vsub.f32 1.5707964, %v1316_v14 }
 0x6c4   : > { %v1333_v8 = vsub.f32 0.0, %v1329_v35 }
 0x6c5   : > { %v1322_v46 = vsel %vm1318_vm2, %v1320_v43, %v1316_v14 }
 0x6c6   : > { %v1335_v54 = vsel %vm1331_vm3, %v1333_v8, %v1329_v35  ;;  %v1326_v4 = vsub.f32 3.1415927, %v1322_v46 }
 0x6c7   : > { %3334 = vmatpush.msk.msrb.mxu3 %vm1345_vm14, %v1335_v54 }
 0x6c8   : > { %3335 = vmatmul.msk.f32.vlgmr.msrb.gmra.mxu3 %vm4904_vm15, %v4018_v47  ;;  %v1328_v13 = vsel %vm1324_vm4, %v1326_v4, %v1322_v46 }
 0x6c9   : > { %v1332_v6 = vsub.f32 0.0, %v1328_v13 }
 0x6cb   : > { %v1334_v15 = vsel %vm1330_vm5, %v1332_v6, %v1328_v13 }
 0x6cc   : > { %3332 = vmatpush.msk.msrb.mxu2 %vm1345_vm14, %v1334_v15 }
 0x6cd   : > { %3333 = vmatmul.msk.f32.vlgmr.msrb.gmra.mxu2 %vm4904_vm15, %v4018_v47 }
 0x730   : > { %v1389_v5 = vpop.f32.mrf.mxu3 }
 0x731   : > { %v1390_v2 = vadd.f32 %v1389_v5, %v3966_v59 }
 0x733   : > { %vm1393_vm8 = vcmp.ge.f32.partialorder %v1390_v2, 0.0  ;;  %v1395_v17 = vmul.f32 0.1, %v1390_v2 }
 0x735   : > { %v1397_v51 = vsel %vm1393_vm8, %v1390_v2, %v1395_v17  ;;  %v3725_v2 = vmov 2475754826   ;;  %v3726_v17 = vmov 2131351028  }
 0x736   : > { %3330 = vmatpush.msk.msrb.mxu1 %vm1345_vm14, %v1397_v51  ;;  %v4899_v51 = vmov 2102212464  }
 0x737   : > { %3331 = vmatmul.msk.f32.vlgmr.msrb.gmra.mxu1 %vm4904_vm15, %v4030_v52 }
 0x73b   : > { %v1369_v25 = vpop.f32.mrf.mxu2 }
 0x73c   : > { %v1370_v16 = vadd.f32 %v1369_v25, %v3966_v59 }
 0x73e   : > { %vm1392_vm12 = vcmp.ge.f32.partialorder %v1370_v16, 0.0  ;;  %v1394_v40 = vmul.f32 0.1, %v1370_v16 }
 0x740   : > { %v1396_v1 = vsel %vm1392_vm12, %v1370_v16, %v1394_v40 }
 0x741   : > { %3328 = vmatpush.msk.msrb.mxu0 %vm1345_vm14, %v1396_v1 }
 0x742   : > { %3329 = vmatmul.msk.f32.vlgmr.msrb.gmra.mxu0 %vm4904_vm15, %v4030_v52  ;;  %v3567_v52 = vld [vmem:[%s4875_s3] sm:$0xf] }
 0x743   : > { %2698 = vrot.lane.b32.xlu1 %v3567_v52, %s3723_s22 }
 0x74b   : > { %v1503_v47 = vpop.f32.mrf.mxu3 }
 0x74c   : > { %v1504_v23 = vadd.f32 %v1503_v47, %v4039_v55  ;;  %v4897_v47 = vmov 920167782  }
 0x74e   : > { %vm1507_vm13 = vcmp.ge.f32.partialorder %v1504_v23, 0.0  ;;  %v1509_v59 = vmul.f32 0.1, %v1504_v23 }
 0x750   : > { %v1511_v41 = vsel %vm1507_vm13, %v1504_v23, %v1509_v59  ;;  %v1483_v49 = vpop.f32.mrf.mxu2 }
 0x751   : > { %v1484_v21 = vadd.f32 %v1483_v49, %v4039_v55  ;;  %3338 = vmatpush.msk.msra.mxu1 %vm1345_vm14, %v1511_v41 }
 0x752   : > { %3339 = vmatmul.msk.f32.vlgmr.msra.gmra.mxu1 %vm4904_vm15, %v4033_v53 }
 0x753   : > { %vm1506_vm0 = vcmp.ge.f32.partialorder %v1484_v21, 0.0  ;;  %v1508_v29 = vmul.f32 0.1, %v1484_v21 }
 0x755   : > { %v1510_v61 = vsel %vm1506_vm0, %v1484_v21, %v1508_v29 }
 0x756   : > { %3336 = vmatpush.msk.msra.mxu0 %vm1345_vm14, %v1510_v61 }
 0x757   : > { %3337 = vmatmul.msk.f32.vlgmr.msra.gmra.mxu0 %vm4904_vm15, %v4033_v53 }
 0x7b4   : > { %v4259_v55 = vpop.f32.mrf.mxu1 }
 0x7bf   : > { %v4261_v18 = vpop.f32.mrf.mxu0 }
 0x7cf   : > { %v1563_v20 = vpop.f32.mrf.mxu1 }
 0x7d0   : > { %v4264_v28 = vadd.f32 %v1563_v20, %v4037_v36  ;;  %v4896_v20 = vmov 1326507024  }
 0x7d2   : > { %v1723_v44 = vand.u32 2139095040, %v4264_v28  ;;  %v4894_v34 = vand.u32 2147483647, %v4264_v28 }
 0x7d4   : > { %v1724_v38 = vshrl.u32 %v1723_v44, 23  ;;  %v1543_v53 = vpop.f32.mrf.mxu0  ;;  %v1727_v14 = vand.u32 8388607, %v4894_v34 }
 0x7d5   : > { %v4269_v45 = vadd.f32 %v1543_v53, %v4037_v36  ;;  %v4895_v36 = vmov 683565275  }
 0x7d6   : > { %v3343_v0 = vadd.s32 4294967169, %v1724_v38  ;;  %v1728_v8 = vor.u32 8388608, %v1727_v14 }
 0x7d7   : > { %v1569_v11 = vand.u32 2139095040, %v4269_v45  ;;  %v4893_v54 = vand.u32 2147483647, %v4269_v45 }
 0x7d8   : > { %v1730_v35 = vadd.s32 1, %v3343_v0  ;;  %v4280_v59 = vshll.u32 %v1728_v8, 8 }
 0x7d9   : > { %v1570_v43 = vshrl.u32 %v1569_v11, 23  ;;  %v1573_v41 = vand.u32 8388607, %v4893_v54 }
 0x7da   : > { %vm1731_vm1 = vcmp.gt.s32.totalorder %v1730_v35, 0 }
 0x7db   : > { %v1732_v46 = vsel %vm1731_vm1, %v1730_v35, 0  ;;  %v3340_v4 = vadd.s32 4294967169, %v1570_v43 }
 0x7dc   : > { %v1733_v13 = vshrl.u32 %v1732_v46, 5  ;;  %v1734_v6 = vand.u32 31, %v1732_v46 }
 0x7dd   : > { %v1576_v15 = vadd.s32 1, %v3340_v4  ;;  %v1574_v4 = vor.u32 8388608, %v1573_v41 }
 0x7de   : > { %v1735_v5 = vsub.s32 32, %v1734_v6  ;;  %v1737_v25 = vshll.u32 %v4895_v36, %v1734_v6  ;;  %v1740_v16 = vshll.u32 %v3725_v2, %v1734_v6  ;;  %v1743_v40 = vshll.u32 %v3726_v17, %v1734_v6 }
 0x7df   : > { %v1746_v1 = vshll.u32 %v4899_v51, %v1734_v6  ;;  %v1749_v23 = vshll.u32 %v4897_v47, %v1734_v6  ;;  %vm1752_vm2 = vcmp.lt.s32.totalorder %v1733_v13, 1  ;;  %vm1755_vm3 = vcmp.lt.s32.totalorder %v1733_v13, 4 }
 0x7e0   : > { %v1738_v49 = vshrl.u32 %v3725_v2, %v1735_v5  ;;  %v1741_v21 = vshrl.u32 %v3726_v17, %v1735_v5  ;;  %v1744_v29 = vshrl.u32 %v4899_v51, %v1735_v5  ;;  %v1736_v61 = vshrl.u32 %v4895_v36, %v1735_v5 }
 0x7e1   : > { %v1747_v52 = vshrl.u32 %v4897_v47, %v1735_v5  ;;  %v1750_v44 = vshrl.u32 %v4896_v20, %v1735_v5  ;;  %vm1577_vm4 = vcmp.gt.s32.totalorder %v1576_v15, 0  ;;  %vm1754_vm5 = vcmp.lt.s32.totalorder %v1733_v13, 3 }
 0x7e2   : > { %v1739_v38 = vor.u32 %v1738_v49, %v1737_v25  ;;  %v1742_v53 = vor.u32 %v1741_v21, %v1740_v16  ;;  %v1745_v0 = vor.u32 %v1744_v29, %v1743_v40  ;;  %v1578_v35 = vsel %vm1577_vm4, %v1576_v15, 0 }
 0x7e3   : > { %v1748_v14 = vor.u32 %v1747_v52, %v1746_v1  ;;  %v1751_v11 = vor.u32 %v1750_v44, %v1749_v23  ;;  %vm1753_vm8 = vcmp.lt.s32.totalorder %v1733_v13, 2  ;;  %v1580_v23 = vand.u32 31, %v1578_v35 }
 0x7e4   : > { %v1757_v43 = vsel %vm1755_vm3, %v1745_v0, 2102212464  ;;  %v1760_v8 = vsel %vm1752_vm2, %v1739_v38, %v1742_v53  ;;  %v1764_v46 = vsel %vm1752_vm2, %v1742_v53, %v1745_v0  ;;  %v1756_v6 = vsel %vm1752_vm2, %v1736_v61, %v1739_v38 }
 0x7e5   : > { %v1761_v5 = vsel %vm1755_vm3, %v1748_v14, 920167782  ;;  %v1765_v25 = vsel %vm1755_vm3, %v1751_v11, 1326507024  ;;  %v1758_v16 = vsel %vm1754_vm5, %v1742_v53, %v1757_v43  ;;  %v1769_v21 = vand.u32 65535, %v4280_v59 }
 0x7e6   : > { %v1762_v40 = vsel %vm1754_vm5, %v1745_v0, %v1761_v5  ;;  %v1766_v1 = vsel %vm1754_vm5, %v1748_v14, %v1765_v25  ;;  %v1770_v29 = vshrl.u32 %v4280_v59, 16  ;;  %v4301_v38 = vsel %vm1753_vm8, %v1756_v6, %v1758_v16 }
 0x7e7   : > { %v1763_v15 = vsel %vm1753_vm8, %v1760_v8, %v1762_v40  ;;  %v1767_v49 = vsel %vm1753_vm8, %v1764_v46, %v1766_v1  ;;  %v4303_v11 = vshrl.u32 %v1578_v35, 5  ;;  %v4305_v53 = vshll.u32 %v1574_v4, 8 }
 0x7e8   : > { %v1771_v41 = vand.u32 65535, %v1767_v49  ;;  %v1772_v52 = vshrl.u32 %v1767_v49, 16  ;;  %v1793_v44 = vand.u32 65535, %v1763_v15  ;;  %v1794_v61 = vshrl.u32 %v1763_v15, 16 }
 0x7e9   : > { %v4307_v43 = vsub.s32 32, %v1580_v23  ;;  %v1583_v8 = vshll.u32 %v4895_v36, %v1580_v23  ;;  %v1586_v25 = vshll.u32 %v3725_v2, %v1580_v23  ;;  %v1589_v40 = vshll.u32 %v3726_v17, %v1580_v23 }
 0x7ea   : > { %v1774_v0 = vmul.u32 %v1772_v52, %v1769_v21  ;;  %v1775_v14 = vmul.u32 %v1771_v41, %v1770_v29  ;;  %v1796_v46 = vmul.u32 %v1794_v61, %v1769_v21  ;;  %v1797_v5 = vmul.u32 %v1793_v44, %v1770_v29 }
 0x7eb   : > { %v1773_v1 = vmul.u32 %v1771_v41, %v1769_v21  ;;  %v1776_v13 = vmul.u32 %v1772_v52, %v1770_v29  ;;  %v1795_v16 = vmul.u32 %v1793_v44, %v1769_v21  ;;  %v1798_v4 = vmul.u32 %v1794_v61, %v1770_v29  ;;  %v2314_v52 = vld [vmem:[#allocation6 + $0x1f0] sm:$0xff] }
 0x7ec   : > { %v1777_v6 = vshll.u32 %v1774_v0, 16  ;;  %v1778_v35 = vshrl.u32 %v1774_v0, 16  ;;  %v1779_v15 = vshll.u32 %v1775_v14, 16  ;;  %v1799_v49 = vshll.u32 %v1796_v46, 16  ;;  %2336 = vmatpush.msra.mxu3 %v2314_v52 }
 0x7ed   : > { %v1801_v54 = vshll.u32 %v1797_v5, 16  ;;  %v1584_v34 = vshrl.u32 %v3725_v2, %v4307_v43  ;;  %v4913_v36 = vmov 0   ;;  %v1587_v41 = vshrl.u32 %v3726_v17, %v4307_v43  ;;  %v2312_v2 = vld [vmem:[#allocation6 + $0x1e0] sm:$0xff] }
 0x7ee   : > { %vm1781_vm12 = vc.u32 %v1773_v1, %v1777_v6  ;;  %v1783_v32 = vadd.s32 %v1777_v6, %v1773_v1  ;;  %vm1803_vm13 = vc.u32 %v1795_v16, %v1799_v49  ;;  %v1805_v47 = vadd.s32 %v1799_v49, %v1795_v16  ;;  %2337 = vmatpush.msra.mxu3 %v2312_v2 }
 0x7ef   : > { %v1782_v20 = vsel %vm1781_vm12, 1, %v4913_v36  ;;  %v1780_v51 = vshrl.u32 %v1775_v14, 16  ;;  %v1804_v29 = vsel %vm1803_vm13, 1, %v4913_v36  ;;  %v1800_v61 = vshrl.u32 %v1796_v46, 16 }
 0x7f0   : > { %v1784_v21 = vadd.s32 %v1782_v20, %v1776_v13  ;;  %vm1785_vm0 = vc.u32 %v1783_v32, %v1779_v15  ;;  %v1806_v0 = vadd.s32 %v1804_v29, %v1798_v4  ;;  %vm1807_vm1 = vc.u32 %v1805_v47, %v1801_v54  ;;  %v2310_v15 = vld [vmem:[#allocation6 + $0x1d0] sm:$0xff] }
 0x7f1   : > { %v1786_v44 = vsel %vm1785_vm0, 1, %v4913_v36  ;;  %v1808_v6 = vsel %vm1807_vm1, 1, %v4913_v36  ;;  %v4320_v16 = vor.u32 %v1584_v34, %v1583_v8  ;;  %v4914_v17 = vmov 2102212464   ;;  %2338 = vmatpush.msra.mxu3 %v2310_v15 }
 0x7f2   : > { %v1788_v1 = vadd.s32 %v1786_v44, %v1784_v21  ;;  %v1590_v49 = vshrl.u32 %v4914_v17, %v4307_v43  ;;  %v1810_v20 = vadd.s32 %v1808_v6, %v1806_v0  ;;  %v4324_v32 = vor.u32 %v1587_v41, %v1586_v25  ;;  %v2282_v25 = vld [vmem:[#allocation6 + $0xf0] sm:$0xff]  ;;  %v2308_v41 = vld [vmem:[#allocation6 + $0x1c0] sm:$0xff] }
 0x7f3   : > { %v1592_v14 = vshll.u32 %v4914_v17, %v1580_v23  ;;  %v4915_v13 = vmov 920167782   ;;  %v4916_v34 = vmov 1326507024   ;;  %v1802_v29 = vshrl.u32 %v1797_v5, 16  ;;  %2316 = vmatpush.msra.mxu2 %v2282_v25  ;;  %2339 = vmatpush.msra.mxu3 %v2308_v41 }
 0x7f4   : > { %v1593_v46 = vshrl.u32 %v4915_v13, %v4307_v43  ;;  %v1789_v4 = vadd.s32 %v1788_v1, %v1778_v35  ;;  %v4329_v52 = vor.u32 %v1590_v49, %v1589_v40  ;;  %v1595_v21 = vshll.u32 %v4915_v13, %v1580_v23  ;;  %v2304_v13 = vld [vmem:[#allocation6 + $0x1a0] sm:$0xff] }
 0x7f5   : > { %v1596_v8 = vshrl.u32 %v4916_v34, %v4307_v43  ;;  %v1811_v44 = vadd.s32 %v1810_v20, %v1800_v61  ;;  %vm1598_vm2 = vcmp.lt.s32.totalorder %v4303_v11, 1  ;;  %v4337_v6 = vadd.s32 %v1805_v47, %v1801_v54  ;;  %v2306_v61 = vld [vmem:[#allocation6 + $0x1b0] sm:$0xff]  ;;  %v2315_v54 = vld [vmem:[#allocation6 + $0x1f8] sm:$0xff] }
 0x7f6   : > { %v1594_v0 = vor.u32 %v1593_v46, %v1592_v14  ;;  %v4335_v2 = vadd.s32 %v1789_v4, %v1780_v51  ;;  %vm1601_vm3 = vcmp.lt.s32.totalorder %v4303_v11, 4  ;;  %vm1600_vm4 = vcmp.lt.s32.totalorder %v4303_v11, 3  ;;  %v2280_v51 = vld [vmem:[#allocation6 + $0xe0] sm:$0xff]  ;;  %2340 = vmatpush.msra.mxu3 %v2306_v61  ;;  %2376 = vmatpush.msrb.mxu1 %v2315_v54  ;;  %v2278_v14 = vld [vmem:[#allocation6 + $0xd0] sm:$0xff]  ;;  %v2313_v46 = vld [vmem:[#allocation6 + $0x1e8] sm:$0xff] }
 0x7f7   : > { %v1597_v35 = vor.u32 %v1596_v8, %v1595_v21  ;;  %v1812_v23 = vadd.s32 %v1811_v44, %v1802_v29  ;;  %v1606_v5 = vsel %vm1598_vm2, %v4320_v16, %v4324_v32  ;;  %vm1599_vm8 = vcmp.lt.s32.totalorder %v4303_v11, 2  ;;  %2317 = vmatpush.msra.mxu2 %v2280_v51  ;;  %v2300_v61 = vld [vmem:[#allocation6 + $0x180] sm:$0xff]  ;;  %v2283_v54 = vld [vmem:[#allocation6 + $0xf8] sm:$0xff]  ;;  %v2258_v11 = vld [vmem:[#allocation6 + $0x30] sm:$0xff] }
 0x7f8   : > { %v1607_v40 = vsel %vm1601_vm3, %v1594_v0, 920167782  ;;  %vm1815_vm5 = vc.u32 %v4335_v2, %v4337_v6  ;;  %v1610_v49 = vsel %vm1598_vm2, %v4324_v32, %v4329_v52  ;;  %v1813_v15 = vmul.u32 %v4280_v59, %v4301_v38  ;;  %2341 = vmatpush.msra.mxu3 %v2304_v13  ;;  %2377 = vmatpush.msrb.mxu1 %v2313_v46  ;;  %v2276_v59 = vld [vmem:[#allocation6 + $0xc0] sm:$0xff]  ;;  %v2302_v38 = vld [vmem:[#allocation6 + $0x190] sm:$0xff] }
 0x7f9   : > { %v1608_v47 = vsel %vm1600_vm4, %v4329_v52, %v1607_v40  ;;  %v1816_v1 = vadd.s32 1, %v1812_v23  ;;  %v1611_v20 = vsel %vm1601_vm3, %v1597_v35, 1326507024  ;;  %2318 = vmatpush.msra.mxu2 %v2278_v14  ;;  %v1615_v44 = vand.u32 65535, %v4305_v53  ;;  %2356 = vmatpush.msrb.mxu0 %v2283_v54 }
 0x7fa   : > { %v4355_v17 = vsel %vm1599_vm8, %v1606_v5, %v1608_v47  ;;  %v1612_v4 = vsel %vm1600_vm4, %v1594_v0, %v1611_v20  ;;  %v1616_v25 = vshrl.u32 %v4305_v53, 16  ;;  %v2311_v0 = vld [vmem:[#allocation6 + $0x1d8] sm:$0xff]  ;;  %2342 = vmatpush.msra.mxu3 %v2302_v38  ;;  %v2490_v20 = vperm.slane %v4082_v24, 1 }
 0x7fb   : > { %v1639_v21 = vand.u32 65535, %v4355_v17  ;;  %v1640_v34 = vshrl.u32 %v4355_v17, 16  ;;  %v1817_v8 = vsel %vm1815_vm5, %v1816_v1, %v1812_v23  ;;  %v1613_v29 = vsel %vm1599_vm8, %v1610_v49, %v1612_v4  ;;  %2319 = vmatpush.msra.mxu2 %v2276_v59  ;;  %2378 = vmatpush.msrb.mxu1 %v2311_v0  ;;  %v2274_v23 = vld [vmem:[#allocation6 + $0xb0] sm:$0xff]  ;;  %v2309_v49 = vld [vmem:[#allocation6 + $0x1c8] sm:$0xff] }
 0x7fc   : > { %v1818_v41 = vadd.s32 %v1817_v8, %v1813_v15  ;;  %v1617_v35 = vand.u32 65535, %v1613_v29  ;;  %v1618_v5 = vshrl.u32 %v1613_v29, 16  ;;  %2343 = vmatpush.msra.mxu3 %v2300_v61  ;;  %v2272_v15 = vld [vmem:[#allocation6 + $0xa0] sm:$0xff]  ;;  %v2298_v4 = vld [vmem:[#allocation6 + $0x170] sm:$0xff]  ;;  %v2281_v8 = vld [vmem:[#allocation6 + $0xe8] sm:$0xff]  ;;  %v4391_v29 = vsel %vm2484_vm7, %v4095_v27, %v4057_v9 }
 0x7fd   : > { %v4376_v40 = vmul.u32 %v1640_v34, %v1615_v44  ;;  %v4378_v51 = vmul.u32 %v1639_v21, %v1616_v25  ;;  %2320 = vmatpush.msra.mxu2 %v2274_v23  ;;  %v1641_v13 = vmul.u32 %v1639_v21, %v1615_v44  ;;  %2379 = vmatpush.msrb.mxu1 %v2309_v49  ;;  %v2307_v21 = vld [vmem:[#allocation6 + $0x1b8] sm:$0xff]  ;;  %v2270_v9 = vld [vmem:[#allocation6 + $0x90] sm:$0xff]  ;;  %v2296_v27 = vld [vmem:[#allocation6 + $0x160] sm:$0xff]  ;;  %v4919_v54 = vmov 683565275  }
 0x7fe   : > { %v1819_v47 = vadd.s32 536870912, %v1818_v41  ;;  %v4380_v1 = vmul.u32 %v1618_v5, %v1615_v44  ;;  %v4382_v17 = vmul.u32 %v1617_v35, %v1616_v25  ;;  %v1619_v38 = vmul.u32 %v1617_v35, %v1615_v44  ;;  %2357 = vmatpush.msrb.mxu0 %v2281_v8  ;;  %2344 = vmatpush.msra.mxu3 %v2298_v4  ;;  %v2294_v4 = vld [vmem:[#allocation6 + $0x150] sm:$0xff] }
 0x7ff   : > { %v1645_v46 = vshll.u32 %v4376_v40, 16  ;;  %2321 = vmatpush.msra.mxu2 %v2272_v15  ;;  %v1622_v23 = vmul.u32 %v1618_v5, %v1616_v25  ;;  %v4901_v61 = vshll.u32 %v4378_v51, 16  ;;  %2380 = vmatpush.msrb.mxu1 %v2307_v21  ;;  %v2305_v5 = vld [vmem:[#allocation6 + $0x1a8] sm:$0xff]  ;;  %v1644_v14 = vmul.u32 %v1640_v34, %v1616_v25  ;;  %v2303_v25 = vld [vmem:[#allocation6 + $0x198] sm:$0xff] }
 0x800   : > { %v4393_v59 = vshrl.u32 %v1819_v47, 30  ;;  %v1623_v0 = vshll.u32 %v4380_v1, 16  ;;  %v2279_v47 = vld [vmem:[#allocation6 + $0xd8] sm:$0xff]  ;;  %v1625_v35 = vshll.u32 %v4382_v17, 16  ;;  %2345 = vmatpush.msra.mxu3 %v2296_v27  ;;  %v2277_v21 = vld [vmem:[#allocation6 + $0xc8] sm:$0xff] }
 0x801   : > { %vm4397_vm12 = vc.u32 %v1641_v13, %v1645_v46  ;;  %v4401_v49 = vadd.s32 %v1645_v46, %v1641_v13  ;;  %2322 = vmatpush.msra.mxu2 %v2270_v9  ;;  %2358 = vmatpush.msrb.mxu0 %v2279_v47  ;;  %v2268_v46 = vld [vmem:[#allocation6 + $0x80] sm:$0xff]  ;;  %v1582_v9 = vshrl.u32 %v4919_v54, %v4307_v43  ;;  %v2301_v43 = vld [vmem:[#allocation6 + $0x188] sm:$0xff]  ;;  %v1648_v54 = vshrl.u32 %v4378_v51, 16 }
 0x802   : > { %v1821_v44 = vshll.u32 %v4393_v59, 30  ;;  %vm1627_vm13 = vc.u32 %v1619_v38, %v1623_v0  ;;  %v1629_v15 = vadd.s32 %v1623_v0, %v1619_v38  ;;  %v1650_v13 = vsel %vm4397_vm12, 1, %v4913_v36  ;;  %2381 = vmatpush.msrb.mxu1 %v2305_v5  ;;  %2346 = vmatpush.msra.mxu3 %v2294_v4  ;;  %v2273_v4 = vld [vmem:[#allocation6 + $0xa8] sm:$0xff] }
 0x803   : > { %v1628_v8 = vsel %vm1627_vm13, 1, %v4913_v36  ;;  %vm1653_vm0 = vc.u32 %v4401_v49, %v4901_v61  ;;  %v1603_v0 = vsel %vm1601_vm3, %v4329_v52, 2102212464  ;;  %2323 = vmatpush.msra.mxu2 %v2268_v46  ;;  %v1652_v27 = vadd.s32 %v1650_v13, %v1644_v14  ;;  %2359 = vmatpush.msrb.mxu0 %v2277_v21  ;;  %v2275_v61 = vld [vmem:[#allocation6 + $0xb8] sm:$0xff]  ;;  %v2264_v46 = vld [vmem:[#allocation6 + $0x60] sm:$0xff] }
 0x804   : > { %v4412_v38 = vsub.s32 %v1818_v41, %v1821_v44  ;;  %v1630_v34 = vadd.s32 %v1628_v8, %v1622_v23  ;;  %vm1631_vm1 = vc.u32 %v1629_v15, %v1625_v35  ;;  %v1654_v5 = vsel %vm1653_vm0, 1, %v4913_v36  ;;  %v2266_v41 = vld [vmem:[#allocation6 + $0x70] sm:$0xff]  ;;  %v2292_v44 = vld [vmem:[#allocation6 + $0x140] sm:$0xff]  ;;  %2382 = vmatpush.msrb.mxu1 %v2303_v25 }
 0x805   : > { %v1632_v47 = vsel %vm1631_vm1, 1, %v4913_v36  ;;  %v1624_v23 = vshrl.u32 %v4380_v1, 16  ;;  %2324 = vmatpush.msra.mxu2 %v2266_v41  ;;  %v2508_v14 = vsel %vm2507_vm9, %v4093_v26, %v4135_v63  ;;  %v1602_v15 = vsel %vm1598_vm2, %v1582_v9, %v4320_v16  ;;  %2347 = vmatpush.msra.mxu3 %v2292_v44  ;;  %v2290_v1 = vld [vmem:[#allocation6 + $0x130] sm:$0xff]  ;;  %v2299_v16 = vld [vmem:[#allocation6 + $0x178] sm:$0xff] }
 0x806   : > { %vm1823_vm5 = vcmp.lt.s32.totalorder %v4412_v38, 0  ;;  %v1824_v52 = vsub.s32 0, %v4412_v38  ;;  %v1634_v35 = vadd.s32 %v1632_v47, %v1630_v34  ;;  %v1646_v8 = vshrl.u32 %v4376_v40, 16  ;;  %2360 = vmatpush.msrb.mxu0 %v2275_v61  ;;  %2383 = vmatpush.msrb.mxu1 %v2301_v43  ;;  %v4442_v61 = vpop.permute.xlu0 %2616  ;;  %v2262_v47 = vld [vmem:[#allocation6 + $0x50] sm:$0xff] }
 0x807   : > { %v1656_v13 = vadd.s32 %v1654_v5, %v1652_v27  ;;  %v1604_v26 = vsel %vm1600_vm4, %v4324_v32, %v1603_v0  ;;  %v1626_v63 = vshrl.u32 %v4382_v17, 16  ;;  %2325 = vmatpush.msra.mxu2 %v2264_v46  ;;  %v2494_v40 = vmul.f32 %v2490_v20, %v4391_v29  ;;  %2348 = vmatpush.msra.mxu3 %v2290_v1  ;;  %v2288_v32 = vld [vmem:[#allocation6 + $0x120] sm:$0xff]  ;;  %v2271_v0 = vld [vmem:[#allocation6 + $0x98] sm:$0xff] }
 0x808   : > { %v1825_v21 = vsel %vm1823_vm5, %v1824_v52, %v4412_v38  ;;  %v1635_v34 = vadd.s32 %v1634_v35, %v1624_v23  ;;  %2361 = vmatpush.msrb.mxu0 %v2273_v4  ;;  %v2538_v17 = vperm.slane %v4116_v33, 1  ;;  %v4920_v27 = vperm.slane %v4105_v30, 1  ;;  %2384 = vmatpush.msrb.mxu1 %v2299_v16  ;;  %v2297_v52 = vld [vmem:[#allocation6 + $0x168] sm:$0xff]  ;;  %v4459_v35 = vpop.permute.xlu2 %2618  ;;  %v2295_v46 = vld [vmem:[#allocation6 + $0x158] sm:$0xff]  ;;  %v2250_v16 = vld [vmem:[#allocation4 + $0x1f0] sm:$0xff] }
 0x809   : > { %v1826_v25 = vclz %v1825_v21  ;;  %v1657_v9 = vadd.s32 %v1656_v13, %v1646_v8  ;;  %v4921_v29 = vshll.u32 %v4378_v51, 16  ;;  %2326 = vmatpush.msra.mxu2 %v2262_v47  ;;  %v2532_v23 = vsel %vm2531_vm10, %v4107_v31, %v4133_v62  ;;  %2349 = vmatpush.msra.mxu3 %v2288_v32  ;;  %v2260_v51 = vld [vmem:[#allocation6 + $0x40] sm:$0xff]  ;;  %v2269_v13 = vld [vmem:[#allocation6 + $0x88] sm:$0xff]  ;;  %v2267_v1 = vld [vmem:[#allocation6 + $0x78] sm:$0xff] }
 0x80a   : > { %v2518_v5 = vmul.f32 %v4920_v27, %v2508_v14  ;;  %v4448_v41 = vadd.s32 %v1635_v34, %v1626_v63  ;;  %v1605_v14 = vsel %vm1599_vm8, %v1602_v15, %v1604_v26  ;;  %2362 = vmatpush.msrb.mxu0 %v2271_v0  ;;  %2385 = vmatpush.msrb.mxu1 %v2297_v52  ;;  %v2284_v15 = vld [vmem:[#allocation6 + $0x100] sm:$0xff]  ;;  %v2293_v34 = vld [vmem:[#allocation6 + $0x148] sm:$0xff]  ;;  %v2291_v47 = vld [vmem:[#allocation6 + $0x138] sm:$0xff]  ;;  %vm2620_vm4 = vcmp.lt.s32.totalorder %v4075_v22, 113 }
 0x80b   : > { %v4453_v44 = vadd.s32 %v4401_v49, %v4921_v29  ;;  %v3344_v43 = vadd.s32 4294967294, %v1826_v25  ;;  %v1658_v8 = vadd.s32 %v1657_v9, %v1648_v54  ;;  %v2286_v49 = vld [vmem:[#allocation6 + $0x110] sm:$0xff]  ;;  %2327 = vmatpush.msra.mxu2 %v2260_v51  ;;  %v2500_v31 = vmul.f32 %v4045_v58, %v2494_v40  ;;  %v2256_v9 = vld [vmem:[#allocation6 + $0x20] sm:$0xff]  ;;  %v2263_v52 = vld [vmem:[#allocation6 + $0x58] sm:$0xff] }
 0x80c   : > { %2350 = vmatpush.msra.mxu3 %v2286_v49  ;;  %2363 = vmatpush.msrb.mxu0 %v2269_v13  ;;  %v2542_v4 = vmul.f32 %v2538_v17, %v2532_v23  ;;  %v2524_v21 = vmul.f32 %v4041_v56, %v2518_v5  ;;  %v1659_v63 = vmul.u32 %v4305_v53, %v1605_v14  ;;  %v2265_v56 = vld [vmem:[#allocation6 + $0x68] sm:$0xff]  ;;  %v2562_v53 = vperm.slane %v4140_v39, 1  ;;  %v2248_v0 = vld [vmem:[#allocation4 + $0x1e0] sm:$0xff]  ;;  %v2254_v29 = vld [vmem:[#allocation6 + $0x10] sm:$0xff] }
 0x80d   : > { %vm1661_vm2 = vc.u32 %v4448_v41, %v4453_v44  ;;  %vm3345_vm3 = vcmp.lt.s32.totalorder %v3344_v43, 0  ;;  %v1662_v62 = vadd.s32 1, %v1658_v8  ;;  %2386 = vmatpush.msrb.mxu1 %v2295_v46  ;;  %2328 = vmatpush.msra.mxu2 %v2258_v11  ;;  %v1814_v58 = vadd.s32 %v4337_v6, %v4335_v2  ;;  %v2289_v23 = vld [vmem:[#allocation6 + $0x128] sm:$0xff]  ;;  %v2246_v14 = vld [vmem:[#allocation4 + $0x1d0] sm:$0xff]  ;;  %v2287_v46 = vld [vmem:[#allocation6 + $0x118] sm:$0xff] }
 0x80e   : > { %v1829_v26 = vsel %vm3345_vm3, 0, %v3344_v43  ;;  %2351 = vmatpush.msra.mxu3 %v2284_v15  ;;  %2364 = vmatpush.msrb.mxu0 %v2267_v1  ;;  %v2556_v2 = vsel %vm2555_vm11, %v4167_v7, %v4175_v10  ;;  %v2526_v51 = vadd.f32 %v2524_v21, %v2500_v31  ;;  %v4482_v49 = vpop.permute.xlu0 %2640  ;;  %v2252_v10 = vld [vmem:[#allocation6] sm:$0xff]  ;;  %v2259_v21 = vld [vmem:[#allocation6 + $0x38] sm:$0xff]  ;;  %vm1722_vm12 = vcmp.lt.s32.totalorder %v4264_v28, 0 }
 0x80f   : > { %v1830_v40 = vsub.s32 32, %v1829_v26  ;;  %v1834_v25 = vsub.s32 4294967266, %v1829_v26  ;;  %v1663_v54 = vsel %vm1661_vm2, %v1662_v62, %v1658_v8  ;;  %2387 = vmatpush.msrb.mxu1 %v2293_v34  ;;  %v1831_v6 = vshll.u32 %v4412_v38, %v1829_v26  ;;  %2329 = vmatpush.msra.mxu2 %v2256_v9  ;;  %v2261_v38 = vld [vmem:[#allocation6 + $0x48] sm:$0xff]  ;;  %v2244_v31 = vld [vmem:[#allocation4 + $0x1c0] sm:$0xff] }
 0x810   : > { %v1664_v32 = vadd.s32 %v1663_v54, %v1659_v63  ;;  %2416 = vmatpush.msrb.mxu3 %v2250_v16  ;;  %2365 = vmatpush.msrb.mxu0 %v2265_v56  ;;  %v2548_v8 = vmul.f32 %v4051_v3, %v2542_v4  ;;  %v2566_v62 = vmul.f32 %v2562_v53, %v2556_v2  ;;  %v4489_v11 = vld [vmem:[%s4879_s7 + $0x6] ss:$8 sm:$0x3]  ;;  %v2218_v3 = vld [vmem:[#allocation4 + $0xf0] sm:$0xff]  ;;  %v4494_v1 = vpop.permute.xlu2 %2642  ;;  %vm2644_vm0 = vcmp.lt.s32.totalorder %v4075_v22, 112 }
 0x811   : > { %v1832_v27 = vshrl.u32 %v1814_v58, %v1830_v40  ;;  %v1835_v5 = vadd.s32 127, %v1834_v25  ;;  %2388 = vmatpush.msrb.mxu1 %v2291_v47  ;;  %2330 = vmatpush.msra.mxu2 %v2254_v29  ;;  %v2285_v26 = vld [vmem:[#allocation6 + $0x108] sm:$0xff]  ;;  %v2216_v58 = vld [vmem:[#allocation4 + $0xe0] sm:$0xff]  ;;  %v2242_v40 = vld [vmem:[#allocation4 + $0x1b0] sm:$0xff]  ;;  %v2627_v9 = vperm.slane %v4489_v11, 1  ;;  %vm2668_vm1 = vcmp.lt.s32.totalorder %v4075_v22, 111 }
 0x812   : > { %v1665_v43 = vadd.s32 536870912, %v1664_v32  ;;  %2417 = vmatpush.msrb.mxu3 %v2248_v0  ;;  %2366 = vmatpush.msrb.mxu0 %v2263_v52  ;;  %v4499_v63 = vld [vmem:[%s4879_s7 + $0x4] ss:$8 sm:$0x3]  ;;  %v2251_v25 = vld [vmem:[#allocation4 + $0x1f8] sm:$0xff]  ;;  %v2550_v54 = vadd.f32 %v2548_v8, %v2526_v51  ;;  %v2572_v2 = vmul.f32 %v4047_v60, %v2566_v62  ;;  %v2214_v29 = vld [vmem:[#allocation4 + $0xd0] sm:$0xff]  ;;  %vm1863_vm2 = vweird.f32 %v4264_v28 }
 0x813   : > { %v1833_v13 = vor.u32 %v1832_v27, %v1831_v6  ;;  %v1836_v7 = vshll.u32 %v1835_v5, 23  ;;  %2389 = vmatpush.msrb.mxu1 %v2289_v23  ;;  %2331 = vmatpush.msra.mxu2 %v2252_v10  ;;  %v2579_v34 = vperm.slane %v4499_v63, 1  ;;  %v2257_v0 = vld [vmem:[#allocation6 + $0x28] sm:$0xff]  ;;  %v2622_v6 = vsel %vm2620_vm4, %v4459_v35, %v4442_v61  ;;  %v2240_v52 = vld [vmem:[#allocation4 + $0x1a0] sm:$0xff] }
 0x814   : > { %v4491_v15 = vshrl.u32 %v1665_v43, 30  ;;  %2418 = vmatpush.msrb.mxu3 %v2246_v14  ;;  %2367 = vmatpush.msrb.mxu0 %v2261_v38  ;;  %v2603_v27 = vperm.slane %v4189_v37, 1  ;;  %v2249_v23 = vld [vmem:[#allocation4 + $0x1e8] sm:$0xff]  ;;  %v2598_v43 = vsel %vm4903_vm6, %v4201_v48, %v4204_v12  ;;  %v2255_v14 = vld [vmem:[#allocation6 + $0x18] sm:$0xff]  ;;  %v2212_v51 = vld [vmem:[#allocation4 + $0xc0] sm:$0xff]  ;;  %v2631_v48 = vmul.f32 %v2627_v9, %v2622_v6 }
 0x815   : > { %v1837_v4 = vor.u32 4788187, %v1836_v7  ;;  %2390 = vmatpush.msrb.mxu1 %v2287_v46  ;;  %2396 = vmatpush.msrb.mxu2 %v2218_v3  ;;  %v1840_v47 = vcvt.s32.f32 %v1833_v13  ;;  %v2583_v8 = vmul.f32 %v2579_v34, %v3985_v42  ;;  %v2238_v13 = vld [vmem:[#allocation4 + $0x190] sm:$0xff]  ;;  %v2247_v7 = vld [vmem:[#allocation4 + $0x1d8] sm:$0xff]  ;;  %v2253_v42 = vld [vmem:[#allocation6 + $0x8] sm:$0xff]  ;;  %v2574_v38 = vadd.f32 %v2572_v2, %v2550_v54 }
 0x816   : > { %v1667_v16 = vshll.u32 %v4491_v15, 30  ;;  %2419 = vmatpush.msrb.mxu3 %v2244_v31  ;;  %2368 = vmatpush.msrb.mxu0 %v2259_v21  ;;  %v4526_v12 = vld [vmem:[%s4879_s7 + $0x7] ss:$8 sm:$0x3]  ;;  %v2607_v46 = vmul.f32 %v2603_v27, %v2598_v43  ;;  %v2210_v3 = vld [vmem:[#allocation4 + $0xb0] sm:$0xff]  ;;  %v4534_v21 = vpop.permute.xlu0 %2664  ;;  %v2243_v43 = vld [vmem:[#allocation4 + $0x1b8] sm:$0xff] }
 0x817   : > { %v1838_v56 = vand.u32 2147483647, %v1837_v4  ;;  %2391 = vmatpush.msrb.mxu1 %v2285_v26  ;;  %2397 = vmatpush.msrb.mxu2 %v2216_v58  ;;  %v2236_v31 = vld [vmem:[#allocation4 + $0x180] sm:$0xff]  ;;  %v2219_v4 = vld [vmem:[#allocation4 + $0xf8] sm:$0xff]  ;;  %v4922_v26 = vand.u32 2147483647, %v4264_v28 }
 0x818   : > { %v4510_v5 = vsub.s32 %v1664_v32, %v1667_v16  ;;  %2420 = vmatpush.msrb.mxu3 %v2242_v40  ;;  %2369 = vmatpush.msrb.mxu0 %v2257_v0  ;;  %v1844_v40 = vsub.s32 4, %v4393_v59  ;;  %v2245_v54 = vld [vmem:[#allocation4 + $0x1c8] sm:$0xff]  ;;  %v2208_v0 = vld [vmem:[#allocation4 + $0xa0] sm:$0xff]  ;;  %v2234_v2 = vld [vmem:[#allocation4 + $0x170] sm:$0xff] }
 0x819   : > { %v1841_v60 = vmul.f32 %v1840_v47, %v1838_v56  ;;  %2456 = vmatpush.msra.mxu1 %v2251_v25  ;;  %2398 = vmatpush.msrb.mxu2 %v2214_v29  ;;  %vm4538_vm13 = vcmp.le.f32.partialorder %v4922_v26, 0.7853982  ;;  %v2589_v56 = vmul.f32 %v4025_v50, %v2583_v8  ;;  %v2217_v6 = vld [vmem:[#allocation4 + $0xe8] sm:$0xff]  ;;  %v4556_v29 = vld [vmem:[%s4879_s7 + $0x10] ss:$8 sm:$0x3]  ;;  %v4558_v50 = vpop.permute.xlu2 %2666 }
 0x81a   : > { %vm1669_vm8 = vcmp.lt.s32.totalorder %v4510_v5, 0  ;;  %v1670_v32 = vsub.s32 0, %v4510_v5  ;;  %2421 = vmatpush.msrb.mxu3 %v2240_v52  ;;  %2370 = vmatpush.msrb.mxu0 %v2255_v14  ;;  %v2213_v26 = vld [vmem:[#allocation4 + $0xc8] sm:$0xff] }
 0x81b   : > { %v1842_v10 = vxor.u32 2147483648, %v1841_v60  ;;  %2457 = vmatpush.msra.mxu1 %v2249_v23  ;;  %2399 = vmatpush.msrb.mxu2 %v2212_v51  ;;  %v2591_v8 = vadd.f32 %v2589_v56, %v2574_v38  ;;  %v4902_v51 = vperm.slane %v4526_v12, 1  ;;  %v2239_v56 = vld [vmem:[#allocation4 + $0x198] sm:$0xff] }
 0x81c   : > { %v1671_v62 = vsel %vm1669_vm8, %v1670_v32, %v4510_v5  ;;  %2422 = vmatpush.msrb.mxu3 %v2238_v13  ;;  %2371 = vmatpush.msrb.mxu0 %v2253_v42  ;;  %v2613_v32 = vmul.f32 %v4043_v57, %v2607_v46  ;;  %v2206_v13 = vld [vmem:[#allocation4 + $0x90] sm:$0xff]  ;;  %v2646_v42 = vsel %vm2644_vm0, %v4494_v1, %v4482_v49  ;;  %v2241_v57 = vld [vmem:[#allocation4 + $0x1a8] sm:$0xff]  ;;  %v2204_v46 = vld [vmem:[#allocation4 + $0x80] sm:$0xff]  ;;  %vm1568_vm8 = vcmp.lt.s32.totalorder %v4269_v45, 0 }
 0x81d   : > { %v1843_v58 = vsel %vm1722_vm12, %v1842_v10, %v1841_v60  ;;  %v1672_v25 = vclz %v1671_v62  ;;  %2458 = vmatpush.msra.mxu1 %v2247_v7  ;;  %2400 = vmatpush.msrb.mxu2 %v2210_v3  ;;  %v4925_v60 = vld [vmem:[#allocation13_spill] sm:$0xff]  ;;  %v2215_v10 = vld [vmem:[#allocation4 + $0xd8] sm:$0xff]  ;;  %v2675_v62 = vperm.slane %v4556_v29, 1  ;;  %v2670_v3 = vsel %vm2668_vm1, %v4558_v50, %v4534_v21 }
 0x81e   : > { %v4550_v47 = vsel %vm4538_vm13, %v4264_v28, %v1843_v58  ;;  %2423 = vmatpush.msrb.mxu3 %v2236_v31  ;;  %2436 = vmatpush.msra.mxu0 %v2219_v4  ;;  %v4565_v14 = vmul.f32 %v4925_v60, %v2631_v48  ;;  %v2232_v7 = vld [vmem:[#allocation4 + $0x160] sm:$0xff]  ;;  %v1845_v48 = vsel %vm1722_vm12, %v1844_v40, %v4393_v59  ;;  %v2230_v4 = vld [vmem:[#allocation4 + $0x150] sm:$0xff] }
 0x81f   : > { %v4562_v52 = vmul.f32 %v4550_v47, %v4550_v47  ;;  %v3341_v23 = vadd.s32 4294967294, %v1672_v25  ;;  %2459 = vmatpush.msra.mxu1 %v2245_v54  ;;  %2401 = vmatpush.msrb.mxu2 %v2208_v0  ;;  %v1660_v40 = vadd.s32 %v4453_v44, %v4448_v41  ;;  %v2202_v0 = vld [vmem:[#allocation4 + $0x70] sm:$0xff]  ;;  %v4591_v41 = vpop.permute.xlu1 %2657  ;;  %v2679_v16 = vmul.f32 %v2675_v62, %v2670_v3  ;;  %v2224_v3 = vld [vmem:[#allocation4 + $0x120] sm:$0xff] }
 0x820   : > { %2424 = vmatpush.msrb.mxu3 %v2234_v2  ;;  %2437 = vmatpush.msra.mxu0 %v2217_v6  ;;  %v2615_v2 = vadd.f32 %v2613_v32, %v2591_v8  ;;  %v2655_v6 = vmul.f32 %v4902_v51, %v2646_v42  ;;  %v2237_v32 = vld [vmem:[#allocation4 + $0x188] sm:$0xff]  ;;  %v2200_v42 = vld [vmem:[#allocation4 + $0x60] sm:$0xff] }
 0x821   : > { %v1856_v38 = vmul.f32 -0.00019511016, %v4562_v52  ;;  %vm3342_vm5 = vcmp.lt.s32.totalorder %v3341_v23, 0  ;;  %2460 = vmatpush.msra.mxu1 %v2243_v43  ;;  %2402 = vmatpush.msrb.mxu2 %v2206_v13  ;;  %v1849_v59 = vmul.f32 -0.001358992, %v4562_v52  ;;  %v2228_v43 = vld [vmem:[#allocation4 + $0x140] sm:$0xff] }
 0x822   : > { %v1675_v31 = vsel %vm3342_vm5, 0, %v3341_v23  ;;  %2425 = vmatpush.msrb.mxu3 %v2232_v7  ;;  %2438 = vmatpush.msra.mxu0 %v2215_v10  ;;  %v4589_v23 = vsel %vm4538_vm13, 0, %v1845_v48  ;;  %v2211_v13 = vld [vmem:[#allocation4 + $0xb8] sm:$0xff]  ;;  %v2226_v48 = vld [vmem:[#allocation4 + $0x130] sm:$0xff] }
 0x823   : > { %v1857_v58 = vadd.f32 0.008332121, %v1856_v38  ;;  %v1676_v25 = vsub.s32 32, %v1675_v31  ;;  %v1680_v54 = vsub.s32 4294967266, %v1675_v31  ;;  %2461 = vmatpush.msra.mxu1 %v2241_v57  ;;  %2403 = vmatpush.msrb.mxu2 %v2204_v46  ;;  %v1850_v38 = vadd.f32 0.041655596, %v1849_v59  ;;  %v4598_v59 = vpop.permute.xlu0 %2681 }
 0x824   : > { %v1677_v7 = vshll.u32 %v4510_v5, %v1675_v31  ;;  %2426 = vmatpush.msrb.mxu3 %v2230_v4  ;;  %2439 = vmatpush.msra.mxu0 %v2213_v26  ;;  %v2209_v57 = vld [vmem:[#allocation4 + $0xa8] sm:$0xff]  ;;  %v2235_v31 = vld [vmem:[#allocation4 + $0x178] sm:$0xff]  ;;  %v2198_v4 = vld [vmem:[#allocation4 + $0x50] sm:$0xff]  ;;  %v2639_v26 = vadd.f32 %v4565_v14, %v2615_v2 }
 0x825   : > { %v1858_v44 = vmul.f32 %v1857_v58, %v4562_v52  ;;  %v1678_v10 = vshrl.u32 %v1660_v40, %v1676_v25  ;;  %v1681_v8 = vadd.s32 127, %v1680_v54  ;;  %2462 = vmatpush.msra.mxu1 %v2239_v56  ;;  %2404 = vmatpush.msrb.mxu2 %v2202_v0  ;;  %v1851_v46 = vmul.f32 %v1850_v38, %v4562_v52  ;;  %v2207_v25 = vld [vmem:[#allocation4 + $0x98] sm:$0xff]  ;;  %v2222_v14 = vld [vmem:[#allocation4 + $0x110] sm:$0xff]  ;;  %v2205_v2 = vld [vmem:[#allocation4 + $0x88] sm:$0xff] }
 0x826   : > { %2427 = vmatpush.msrb.mxu3 %v2228_v43  ;;  %2440 = vmatpush.msra.mxu0 %v2211_v13  ;;  %v2661_v40 = vmul.f32 %v4591_v41, %v2655_v6  ;;  %v2175_v56 = vadd.s32 3, %v4589_v23  ;;  %v2233_v43 = vld [vmem:[#allocation4 + $0x168] sm:$0xff]  ;;  %v2196_v13 = vld [vmem:[#allocation4 + $0x40] sm:$0xff] }
 0x827   : > { %v1859_v58 = vadd.f32 -0.16666654, %v1858_v44  ;;  %v1679_v51 = vor.u32 %v1678_v10, %v1677_v7  ;;  %v1682_v5 = vshll.u32 %v1681_v8, 23  ;;  %2463 = vmatpush.msra.mxu1 %v2237_v32  ;;  %2405 = vmatpush.msrb.mxu2 %v2200_v42  ;;  %v1852_v54 = vadd.f32 -0.4999988, %v1851_v46  ;;  %v2231_v32 = vld [vmem:[#allocation4 + $0x158] sm:$0xff] }
 0x828   : > { %2428 = vmatpush.msrb.mxu3 %v2226_v48  ;;  %2441 = vmatpush.msra.mxu0 %v2209_v57  ;;  %v2685_v44 = vmul.f32 %v4598_v59, %v2679_v16  ;;  %v2194_v42 = vld [vmem:[#allocation4 + $0x30] sm:$0xff]  ;;  %v2663_v46 = vadd.f32 %v2661_v40, %v2639_v26  ;;  %v2220_v48 = vld [vmem:[#allocation4 + $0x100] sm:$0xff]  ;;  %v2203_v57 = vld [vmem:[#allocation4 + $0x78] sm:$0xff]  ;;  %v2176_v16 = vand.u32 3, %v2175_v56  ;;  %v1864_v40 = vand.u32 3, %v4589_v23  ;;  %v4623_v23 = vpop.permute.xlu2 %2689 }
 0x829   : > { %v1860_v0 = vmul.f32 %v1859_v58, %v4562_v52  ;;  %v1683_v38 = vor.u32 4788187, %v1682_v5  ;;  %2464 = vmatpush.msra.mxu1 %v2235_v31  ;;  %2406 = vmatpush.msrb.mxu2 %v2198_v4  ;;  %v1853_v6 = vmul.f32 %v1852_v54, %v4562_v52  ;;  %v1686_v8 = vcvt.s32.f32 %v1679_v51  ;;  %v2229_v52 = vld [vmem:[#allocation4 + $0x148] sm:$0xff]  ;;  %v2192_v4 = vld [vmem:[#allocation4 + $0x20] sm:$0xff] }
 0x82a   : > { %2429 = vmatpush.msrb.mxu3 %v2224_v3  ;;  %2442 = vmatpush.msra.mxu0 %v2207_v25  ;;  %v2687_v51 = vadd.f32 %v2685_v44, %v2663_v46  ;;  %v2201_v26 = vld [vmem:[#allocation4 + $0x68] sm:$0xff]  ;;  %v4926_v25 = vld [vmem:[#allocation11_spill] sm:$0xff]  ;;  %vm2178_vm12 = vcmp.eq.s32.totalorder %v2176_v16, 0  ;;  %vm2181_vm13 = vcmp.eq.s32.totalorder %v2176_v16, 2  ;;  %vm2177_vm5 = vcmp.lt.s32.totalorder %v2176_v16, 2 }
 0x82b   : > { %v1861_v7 = vadd.f32 1.0, %v1860_v0  ;;  %v1684_v10 = vand.u32 2147483647, %v1683_v38  ;;  %2465 = vmatpush.msra.mxu1 %v2233_v43  ;;  %2407 = vmatpush.msrb.mxu2 %v2196_v13  ;;  %v4606_v58 = vadd.f32 1.0, %v1853_v6  ;;  %v4613_v54 = vadd.f32 %v4259_v55, %v4926_v25  ;;  %v2227_v0 = vld [vmem:[#allocation4 + $0x138] sm:$0xff]  ;;  %v2190_v38 = vld [vmem:[#allocation4 + $0x10] sm:$0xff] }
 0x82c   : > { %2430 = vmatpush.msrb.mxu3 %v2222_v14  ;;  %2443 = vmatpush.msra.mxu0 %v2205_v2  ;;  %v4927_v43 = vand.u32 2147483647, %v4269_v45  ;;  %v2199_v55 = vld [vmem:[#allocation4 + $0x58] sm:$0xff]  ;;  %v2225_v6 = vld [vmem:[#allocation4 + $0x128] sm:$0xff]  ;;  %vm1866_vm6 = vcmp.eq.s32.totalorder %v1864_v40, 0  ;;  %v2626_v46 = vperm.slane %v4489_v11, 0 }
 0x82d   : > { %v1862_v5 = vmul.f32 %v1861_v7, %v4550_v47  ;;  %v1687_v31 = vmul.f32 %v1686_v8, %v1684_v10  ;;  %2466 = vmatpush.msra.mxu1 %v2231_v32  ;;  %2408 = vmatpush.msrb.mxu2 %v2194_v42  ;;  %v1870_v3 = vxor.u32 2147483648, %v4606_v58  ;;  %v2188_v7 = vld [vmem:[#allocation4] sm:$0xff]  ;;  %v1690_v10 = vsub.s32 4, %v4491_v15  ;;  %v2197_v42 = vld [vmem:[#allocation4 + $0x48] sm:$0xff] }
 0x82e   : > { %2431 = vmatpush.msrb.mxu3 %v2220_v48  ;;  %2444 = vmatpush.msra.mxu0 %v2203_v57  ;;  %vm4618_vm3 = vcmp.le.f32.partialorder %v4927_v43, 0.7853982 }
 0x82f   : > { %v1688_v56 = vxor.u32 2147483648, %v1687_v31  ;;  %v1867_v47 = vxor.u32 2147483648, %v1862_v5  ;;  %2467 = vmatpush.msra.mxu1 %v2229_v52  ;;  %2409 = vmatpush.msrb.mxu2 %v2192_v4  ;;  %v2183_v2 = vsel %vm2181_vm13, %v1870_v3, %v1862_v5  ;;  %v2693_v52 = vadd.f32 %v4623_v23, %v2687_v51 }
 0x830   : > { %2445 = vmatpush.msra.mxu0 %v2201_v26  ;;  %v2223_v26 = vld [vmem:[#allocation4 + $0x118] sm:$0xff]  ;;  %vm1865_vm13 = vcmp.lt.s32.totalorder %v1864_v40, 2 }
 0x831   : > { %v1689_v44 = vsel %vm1568_vm8, %v1688_v56, %v1687_v31  ;;  %v2180_v14 = vsel %vm2178_vm12, %v4606_v58, %v1867_v47  ;;  %2468 = vmatpush.msra.mxu1 %v2227_v0  ;;  %2410 = vmatpush.msrb.mxu2 %v2190_v38  ;;  %v1868_v16 = vsel %vm1866_vm6, %v4606_v58, %v1867_v47  ;;  %vm1869_vm12 = vcmp.eq.s32.totalorder %v1864_v40, 2  ;;  %v2195_v38 = vld [vmem:[#allocation4 + $0x38] sm:$0xff]  ;;  %v2193_v40 = vld [vmem:[#allocation4 + $0x28] sm:$0xff] }
 0x832   : > { %v4632_v8 = vsel %vm4618_vm3, %v4269_v45, %v1689_v44  ;;  %v2184_v32 = vsel %vm2177_vm5, %v2180_v14, %v2183_v2  ;;  %2446 = vmatpush.msra.mxu0 %v2199_v55  ;;  %v2621_v31 = vsel %vm2620_vm4, %v4442_v61, %v4459_v35  ;;  %v1871_v43 = vsel %vm1869_vm12, %v1870_v3, %v1862_v5  ;;  %v2221_v61 = vld [vmem:[#allocation4 + $0x108] sm:$0xff] }
 0x833   : > { %v1694_v48 = vmul.f32 %v4632_v8, %v4632_v8  ;;  %v2185_v57 = vsel %vm1863_vm2, nan, %v2184_v32  ;;  %2469 = vmatpush.msra.mxu1 %v2225_v6  ;;  %2411 = vmatpush.msrb.mxu2 %v2188_v7  ;;  %v1691_v58 = vsel %vm1568_vm8, %v1690_v10, %v4491_v15  ;;  %v1872_v35 = vsel %vm1865_vm13, %v1868_v16, %v1871_v43  ;;  %v2191_v7 = vld [vmem:[#allocation4 + $0x18] sm:$0xff]  ;;  %v2189_v16 = vld [vmem:[#allocation4 + $0x8] sm:$0xff] }
 0x834   : > { %v2187_v4 = vmul.f32 %v2185_v57, %v4613_v54  ;;  %2447 = vmatpush.msra.mxu0 %v2197_v42  ;;  %v2630_v51 = vmul.f32 %v2626_v46, %v2621_v31  ;;  %v2650_v47 = vperm.slane %v4526_v12, 0  ;;  %v2645_v15 = vsel %vm2644_vm0, %v4482_v49, %v4494_v1  ;;  %v4673_v31 = vld [vmem:[%s4875_s3] sm:$0xf] }
 0x835   : > { %v1702_v56 = vmul.f32 -0.00019511016, %v1694_v48  ;;  %v1695_v0 = vmul.f32 -0.001358992, %v1694_v48  ;;  %2470 = vmatpush.msra.mxu1 %v2223_v26  ;;  %v2674_v5 = vperm.slane %v4556_v29, 0  ;;  %v1693_v3 = vsel %vm4618_vm3, 0, %v1691_v58  ;;  %2753 = vrot.lane.b32.xlu0 %v4673_v31, %s3731_s23 }
 0x836   : > { %2352 = vmatmul.f32.vlgmr.msra.gmra.mxu3 %v2187_v4  ;;  %2392 = vmatmul.f32.vlgmr.msrb.gmra.mxu1 %v2187_v4  ;;  %v1873_v6 = vsel %vm1863_vm2, nan, %v1872_v35  ;;  %v2669_v10 = vsel %vm2668_vm1, %v4534_v21, %v4558_v50  ;;  %v2636_v49 = vmul.f32 %v4925_v60, %v2630_v51  ;;  %v2654_v1 = vmul.f32 %v2650_v47, %v2645_v15  ;;  %v2699_v51 = vpop.permute.xlu1 %2698 }
 0x837   : > { %v1703_v55 = vadd.f32 0.008332121, %v1702_v56  ;;  %3362 = vmatpush.msk.msra.mxu3 %vm1345_vm14, %v2693_v52  ;;  %v1696_v44 = vadd.f32 0.041655596, %v1695_v0  ;;  %2448 = vmatpush.msra.mxu0 %v2195_v38  ;;  %v3730_v42 = vmov 52   ;;  %v2020_v57 = vadd.s32 3, %v1693_v3 }
 0x838   : > { %2471 = vmatpush.msra.mxu1 %v2221_v61  ;;  %3514 = vset.pattern.permute.xlu2 %v3730_v42  ;;  %v1875_v28 = vmul.f32 %v1873_v6, %v4613_v54  ;;  %v2678_v21 = vmul.f32 %v2674_v5, %v2669_v10  ;;  %v2638_v52 = vadd.f32 %v2636_v49, %v4214_v19  ;;  %v1710_v58 = vand.u32 3, %v1693_v3 }
 0x839   : > { %v1704_v14 = vmul.f32 %v1703_v55, %v1694_v48  ;;  %v1697_v2 = vmul.f32 %v1696_v44, %v1694_v48  ;;  %2449 = vmatpush.msra.mxu0 %v2193_v40  ;;  %2695 = vperm.xlu2 %3514, %v4673_v31   ;;  %v2660_v54 = vmul.f32 %v4591_v41, %v2654_v1  ;;  %v2021_v56 = vand.u32 3, %v2020_v57 }
 0x83a   : > { %v2684_v0 = vmul.f32 %v4598_v59, %v2678_v21  ;;  %v1430_v55 = vadd.f32 %v4261_v18, %v4926_v25  ;;  %vm1709_vm8 = vweird.f32 %v4269_v45  ;;  %vm1712_vm5 = vcmp.eq.s32.totalorder %v1710_v58, 0 }
 0x83b   : > { %v1705_v13 = vadd.f32 -0.16666654, %v1704_v14  ;;  %v1698_v32 = vadd.f32 -0.4999988, %v1697_v2  ;;  %2450 = vmatpush.msra.mxu0 %v2191_v7  ;;  %v2662_v61 = vadd.f32 %v2660_v54, %v2638_v52  ;;  %vm2023_vm6 = vcmp.eq.s32.totalorder %v2021_v56, 0 }
 0x83c   : > { %vm2026_vm2 = vcmp.eq.s32.totalorder %v2021_v56, 2  ;;  %vm2022_vm3 = vcmp.lt.s32.totalorder %v2021_v56, 2  ;;  %vm1715_vm12 = vcmp.eq.s32.totalorder %v1710_v58, 2  ;;  %vm1711_vm13 = vcmp.lt.s32.totalorder %v1710_v58, 2 }
 0x83d   : > { %v1706_v50 = vmul.f32 %v1705_v13, %v1694_v48  ;;  %v1699_v60 = vmul.f32 %v1698_v32, %v1694_v48  ;;  %2451 = vmatpush.msra.mxu0 %v2189_v16  ;;  %v2686_v19 = vadd.f32 %v2684_v0, %v2662_v61 }
 0x83e   : > { %2432 = vmatmul.f32.vlgmr.msrb.gmra.mxu3 %v1875_v28  ;;  %2472 = vmatmul.f32.vlgmr.msra.gmra.mxu1 %v1875_v28 }
 0x83f   : > { %v1707_v4 = vadd.f32 1.0, %v1706_v50  ;;  %v1700_v26 = vadd.f32 1.0, %v1699_v60  ;;  %v2692_v15 = vadd.f32 %v4623_v23, %v2686_v19 }
 0x841   : > { %v1708_v38 = vmul.f32 %v1707_v4, %v4632_v8  ;;  %v1716_v43 = vxor.u32 2147483648, %v1700_v26  ;;  %3515 = vset.pattern.permute.xlu2 %v4913_v36 }
 0x843   : > { %v1713_v35 = vxor.u32 2147483648, %v1708_v38  ;;  %v2028_v48 = vsel %vm2026_vm2, %v1716_v43, %v1708_v38  ;;  %v1717_v3 = vsel %vm1715_vm12, %v1716_v43, %v1708_v38 }
 0x845   : > { %v2025_v41 = vsel %vm2023_vm6, %v1700_v26, %v1713_v35  ;;  %v1714_v44 = vsel %vm1712_vm5, %v1700_v26, %v1713_v35 }
 0x846   : > { %v2029_v59 = vsel %vm2022_vm3, %v2025_v41, %v2028_v48  ;;  %3363 = vmatmul.msk.f32.vlgmr.msra.gmra.mxu3 %vm4904_vm15, %v2699_v51  ;;  %v1718_v14 = vsel %vm1711_vm13, %v1714_v44, %v1717_v3  ;;  %v3732_v48 = vmov 57  }
 0x847   : > { %v2030_v8 = vsel %vm1709_vm8, nan, %v2029_v59  ;;  %v1719_v18 = vsel %vm1709_vm8, nan, %v1718_v14  ;;  %v3733_v59 = vmov 59  }
 0x848   : > { %v2186_v40 = vmul.f32 %v2030_v8, %v1430_v55  ;;  %v1874_v25 = vmul.f32 %v1719_v18, %v1430_v55  ;;  %3519 = vset.pattern.permute.xlu1 %v3733_v59 }
 0x84a   : > { %2332 = vmatmul.f32.vlgmr.msra.gmra.mxu2 %v2186_v40  ;;  %2372 = vmatmul.f32.vlgmr.msrb.gmra.mxu0 %v2186_v40  ;;  %v3734_v40 = vmov 63  }
 0x84b   : > { %3360 = vmatpush.msk.msra.mxu2 %vm1345_vm14, %v2692_v15 }
 0x852   : > { %2412 = vmatmul.f32.vlgmr.msrb.gmra.mxu2 %v1874_v25  ;;  %2452 = vmatmul.f32.vlgmr.msra.gmra.mxu0 %v1874_v25 }
 0x85a   : > { %3361 = vmatmul.msk.f32.vlgmr.msra.gmra.mxu2 %vm4904_vm15, %v2699_v51 }
 0x893   : > { %v2696_v32 = vpop.permute.xlu2 %2695 }
 0x8a7   : > { %v2754_v54 = vpop.permute.xlu0 %2753 }
 0x8b3   : > { %v2393_v2 = vpop.f32.mrf.mxu1 }
 0x8b9   : > { %v2353_v45 = vpop.f32.mrf.mxu3 }
 0x8bb   : > { %v4706_v55 = vpop.f32.mrf.mxu1 }
 0x8c1   : > { %v2433_v49 = vpop.f32.mrf.mxu3 }
 0x8c7   : > { %v2373_v6 = vpop.f32.mrf.mxu0 }
 0x8c8   : > { %v4691_v23 = vadd.f32 %v2393_v2, %v2373_v6  ;;  %v3735_v2 = vmov 58  }
 0x8c9   : > { %v2745_v42 = vpop.f32.mrf.mxu3 }
 0x8ca   : > { %v2746_v28 = vadd.f32 %v2745_v42, %v2696_v32 }
 0x8cc   : > { %v2749_v50 = vsel %vm1345_vm14, %v2746_v28, 0.0 }
 0x8cd   : > { %v2333_v7 = vpop.f32.mrf.mxu2 }
 0x8ce   : > { %v2354_v10 = vadd.f32 %v2353_v45, %v2333_v7 }
 0x8cf   : > { %v4699_v26 = vpop.f32.mrf.mxu0 }
 0x8d5   : > { %v2413_v1 = vpop.f32.mrf.mxu2 }
 0x8d6   : > { %v2414_v13 = vadd.f32 %v2413_v1, %v2354_v10  ;;  %v3736_v10 = vmov 64  }
 0x8d8   : > { %v4693_v57 = vadd.f32 %v2433_v49, %v2414_v13  ;;  %v3737_v49 = vmov 60  }
 0x8dd   : > { %v2725_v16 = vpop.f32.mrf.mxu2 }
 0x8de   : > { %v2726_v21 = vadd.f32 %v2725_v16, %v2696_v32 }
 0x8e0   : > { %v2748_v60 = vsel %vm1345_vm14, %v2726_v21, 0.0 }
 0x8e1   : > { %v2750_v52 = vadd.f32 %v2749_v50, %v2748_v60  ;;  %v3738_v50 = vmov 62   ;;  %v3739_v60 = vmov 65  }
 0x8e2   : > { %3522 = vset.pattern.permute.xlu0 %v3738_v50 }
 0x8e3   : > { %2751 = vadd.xlane.f32.xlu1 %v2750_v52  ;;  %v3740_v52 = vmov 61  }
 0x8fc   : > { %2896 = vperm.xlu1 %3519, %v4673_v31  }
 0x904   : > { %3523 = vset.pattern.permute.xlu1 %v3734_v40 }
 0x905   : > { %2954 = vperm.xlu1 %3523, %v4673_v31  }
 0x90d   : > { %3524 = vset.pattern.permute.xlu1 %v3736_v10 }
 0x90e   : > { %2970 = vperm.xlu1 %3524, %v4673_v31  }
 0x916   : > { %3525 = vset.pattern.permute.xlu1 %v3739_v60 }
 0x917   : > { %2986 = vperm.xlu1 %3525, %v4673_v31  }
 0x956   : > { %v2752_v4 = vpop.xlane.xlu1 %2751 }
 0x957   : > { %3364 = vmatpush.msk.msrb.mxu0 %vm1345_vm14, %v2752_v4 }
 0x958   : > { %3365 = vmatmul.msk.f32.vlgmr.msrb.gmra.mxu0 %vm4904_vm15, %v2754_v54 }
 0x9d5   : > { %v2777_v56 = vpop.f32.mrf.mxu0 }
 0x9d6   : > { %2782 = vperm.xlu2 %3515, %v2777_v56  }
 0x9de   : > { %3516 = vset.pattern.permute.xlu2 %v3732_v48 }
 0x9df   : > { %2836 = vperm.xlu2 %3516, %v4673_v31  }
 0x9e7   : > { %3517 = vset.pattern.permute.xlu2 %v4913_v36 }
 0xa30   : > { %v2783_v0 = vpop.permute.xlu2 %2782 }
 0xa31   : > { %v2785_v38 = vsub.f32 %v2726_v21, %v2783_v0  ;;  %v2786_v43 = vsub.f32 %v2746_v28, %v2783_v0 }
 0xa33   : > { %v2787_v58 = vmul.f32 %v2785_v38, %v2785_v38  ;;  %v2788_v61 = vmul.f32 %v2786_v43, %v2786_v43 }
 0xa35   : > { %v2789_v35 = vsel %vm1345_vm14, %v2787_v58, 0.0  ;;  %v2790_v51 = vsel %vm1345_vm14, %v2788_v61, 0.0 }
 0xa36   : > { %v2791_v19 = vadd.f32 %v2790_v51, %v2789_v35 }
 0xa38   : > { %2792 = vadd.xlane.f32.xlu0 %v2791_v19 }
 0xa39   : > { %v2837_v6 = vpop.permute.xlu2 %2836 }
 0xa4c   : > { %2944 = vperm.xlu0 %3522, %v4673_v31  }
 0xaab   : > { %v2793_v41 = vpop.xlane.xlu0 %2792 }
 0xaac   : > { %3366 = vmatpush.msk.msrb.mxu1 %vm1345_vm14, %v2793_v41 }
 0xaad   : > { %3367 = vmatmul.msk.f32.vlgmr.msrb.gmra.mxu1 %vm4904_vm15, %v2754_v54 }
 0xb2a   : > { %v2814_v8 = vpop.f32.mrf.mxu1 }
 0xb2b   : > { %v2817_v44 = vadd.f32 1e-06, %v2814_v8 }
 0xb2d   : > { %3557 = vrsqrt.f32 %v2817_v44  ;;  %vm2824_vm2 = vweird.f32 %v2817_v44 }
 0xb33   : > { %v3558_v15 = vpop.eup %3557 }
 0xb34   : > { %v2819_v3 = vmul.f32 %v3558_v15, %v2817_v44  ;;  %vm2825_vm6 = vweird.f32 %v3558_v15 }
 0xb35   : > { %vm2826_vm3 = vmor %vm2824_vm2, %vm2825_vm6 }
 0xb36   : > { %v2820_v14 = vmul.f32 %v3558_v15, %v2819_v3 }
 0xb38   : > { %v2821_v18 = vmul.f32 0.5, %v2820_v14  ;;  %v3741_v14 = vmov 66  }
 0xb39   : > { %3526 = vset.pattern.permute.xlu1 %v3741_v14 }
 0xb3a   : > { %v2822_v25 = vsub.f32 1.5, %v2821_v18 }
 0xb3c   : > { %v2823_v45 = vmul.f32 %v3558_v15, %v2822_v25 }
 0xb3e   : > { %v2827_v36 = vsel %vm2826_vm3, %v3558_v15, %v2823_v45 }
 0xb3f   : > { %2830 = vperm.xlu2 %3517, %v2827_v36  }
 0xb47   : > { %3518 = vset.pattern.permute.xlu2 %v3735_v2 }
 0xb48   : > { %2842 = vperm.xlu2 %3518, %v4673_v31  }
 0xb50   : > { %3520 = vset.pattern.permute.xlu2 %v3737_v49 }
 0xb51   : > { %2912 = vperm.xlu2 %3520, %v4673_v31  }
 0xb59   : > { %3521 = vset.pattern.permute.xlu2 %v3740_v52 }
 0xb5a   : > { %2928 = vperm.xlu2 %3521, %v4673_v31  }
 0xb99   : > { %v2831_v7 = vpop.permute.xlu2 %2830 }
 0xb9a   : > { %v2833_v1 = vmul.f32 %v2831_v7, %v2785_v38  ;;  %v2834_v13 = vmul.f32 %v2831_v7, %v2786_v43 }
 0xb9c   : > { %v2839_v32 = vmul.f32 %v2837_v6, %v2833_v1  ;;  %v2840_v42 = vmul.f32 %v2837_v6, %v2834_v13  ;;  %v3742_v1 = vmov 68   ;;  %v3743_v13 = vmov 67  }
 0xb9d   : > { %3528 = vset.pattern.permute.xlu0 %v3742_v1  ;;  %3527 = vset.pattern.permute.xlu2 %v3743_v13  ;;  %v4934_v13 = vld [vmem:[#allocation12_spill] sm:$0xff] }
 0xba2   : > { %v2843_v28 = vpop.permute.xlu2 %2842 }
 0xba3   : > { %v2845_v16 = vadd.f32 %v2843_v28, %v2839_v32  ;;  %v2846_v21 = vadd.f32 %v2843_v28, %v2840_v42  ;;  %v4760_v42 = vld [vmem:[%s4873_s1] sm:$0xff]  ;;  %v2897_v28 = vpop.permute.xlu1 %2896 }
 0xba5   : > { %v3368_v54 = vmul.f32 -1.442695, %v2845_v16  ;;  %v3369_v4 = vmul.f32 -1.442695, %v2846_v21 }
 0xba7   : > { %3559 = vpow2.f32 %v3368_v54 }
 0xba8   : > { %3561 = vpow2.f32 %v3369_v4  ;;  %v2945_v4 = vpop.permute.xlu0 %2944 }
 0xbab   : > { %v2913_v32 = vpop.permute.xlu2 %2912 }
 0xbad   : > { %v3560_v56 = vpop.eup %3559 }
 0xbae   : > { %v3562_v0 = vpop.eup %3561  ;;  %v2853_v38 = vadd.f32 1.0, %v3560_v56 }
 0xbaf   : > { %v2854_v43 = vadd.f32 1.0, %v3562_v0 }
 0xbb0   : > { %3563 = vrcp.f32 %v2853_v38  ;;  %v2866_v41 = vand.u32 2147483648, %v2853_v38  ;;  %v2864_v8 = vand.u32 2147483647, %v2853_v38  ;;  %vm2860_vm12 = vweird.f32 %v2853_v38 }
 0xbb1   : > { %3565 = vrcp.f32 %v2854_v43  ;;  %v2881_v44 = vand.u32 2147483648, %v2854_v43  ;;  %v2879_v15 = vand.u32 2147483647, %v2854_v43  ;;  %vm2875_vm6 = vweird.f32 %v2854_v43 }
 0xbb2   : > { %v2867_v18 = vor.u32 1.1754944e-38, %v2866_v41  ;;  %vm2865_vm2 = vcmp.eq.f32.partialorder %v2864_v8, 8.507059e+37  ;;  %v4932_v8 = vperm.slane %v4082_v24, 0 }
 0xbb3   : > { %v2882_v36 = vor.u32 1.1754944e-38, %v2881_v44  ;;  %vm2880_vm15 = vcmp.eq.f32.partialorder %v2879_v15, 8.507059e+37 }
 0xbb6   : > { %v3564_v58 = vpop.eup %3563 }
 0xbb7   : > { %v3566_v61 = vpop.eup %3565  ;;  %v2856_v35 = vmul.f32 %v3564_v58, %v2853_v38  ;;  %vm2861_vm8 = vweird.f32 %v3564_v58 }
 0xbb8   : > { %v2871_v51 = vmul.f32 %v3566_v61, %v2854_v43  ;;  %vm2876_vm5 = vweird.f32 %v3566_v61  ;;  %vm2862_vm13 = vmor %vm2860_vm12, %vm2861_vm8 }
 0xbb9   : > { %v2857_v19 = vsub.f32 1.0, %v2856_v35  ;;  %vm2877_vm3 = vmor %vm2875_vm6, %vm2876_vm5 }
 0xbba   : > { %v2872_v48 = vsub.f32 1.0, %v2871_v51 }
 0xbbb   : > { %v2858_v59 = vmul.f32 %v3564_v58, %v2857_v19  ;;  %v4930_v19 = vperm.slane %v4105_v30, 0 }
 0xbbc   : > { %v2873_v40 = vmul.f32 %v3566_v61, %v2872_v48  ;;  %v4931_v48 = vperm.slane %v4105_v30, 1 }
 0xbbd   : > { %v2859_v3 = vadd.f32 %v3564_v58, %v2858_v59 }
 0xbbe   : > { %v2874_v25 = vadd.f32 %v3566_v61, %v2873_v40 }
 0xbbf   : > { %v2863_v45 = vsel %vm2862_vm13, %v3564_v58, %v2859_v3 }
 0xbc0   : > { %v2868_v2 = vsel %vm2865_vm2, %v2867_v18, %v2863_v45  ;;  %v2878_v6 = vsel %vm2877_vm3, %v3566_v61, %v2874_v25 }
 0xbc1   : > { %v2883_v7 = vsel %vm2880_vm15, %v2882_v36, %v2878_v6  ;;  %v4717_v10 = vmul.f32 %v2868_v2, %v2845_v16  ;;  %v2929_v16 = vpop.permute.xlu2 %2928  ;;  %v4933_v36 = vperm.slane %v4116_v33, 0 }
 0xbc2   : > { %v4719_v49 = vmul.f32 %v2883_v7, %v2846_v21  ;;  %v2955_v21 = vpop.permute.xlu1 %2954 }
 0xbc3   : > { %2887 = vrot.lane.b32.xlu2 %v4717_v10, %s3715_s30 }
 0xbc4   : > { %2905 = vrot.lane.b32.xlu0 %v4719_v49, %s3714_s29  ;;  %2889 = vrot.lane.b32.xlu1 %v4719_v49, %s3715_s30 }
 0xbca   : > { %v4764_v60 = vpop.permute.xlu1 %2970 }
 0xbcb   : > { %2903 = vrot.lane.b32.xlu2 %v4717_v10, %s3714_s29  ;;  %s3744_s29 = smov 59  }
 0xbcc   : > { %2937 = vrot.lane.b32.xlu1 %v4719_v49, %s3718_s13  ;;  %2935 = vrot.lane.b32.xlu0 %v4717_v10, %s3718_s13  ;;  %s3745_s13 = smov 108  }
 0xbd2   : > { %v4766_v54 = vpop.permute.xlu1 %2986 }
 0xbd3   : > { %2919 = vrot.lane.b32.xlu2 %v4717_v10, %s3717_s10 }
 0xbd4   : > { %2961 = vrot.lane.b32.xlu1 %v4717_v10, %s3721_s16  ;;  %2979 = vrot.lane.b32.xlu0 %v4719_v49, %s3719_s14 }
 0xbdb   : > { %2921 = vrot.lane.b32.xlu2 %v4719_v49, %s3717_s10 }
 0xbdc   : > { %2995 = vrot.lane.b32.xlu0 %v4719_v49, %s3687_s11  ;;  %3002 = vperm.xlu1 %3526, %v4673_v31  }
 0xbe3   : > { %2963 = vrot.lane.b32.xlu2 %v4719_v49, %s3721_s16 }
 0xbe4   : > { %3011 = vrot.lane.b32.xlu0 %v4719_v49, %s3722_s17  ;;  %3035 = vrot.lane.b32.xlu1 %v4673_v31, %s3744_s29 }
 0xbeb   : > { %2977 = vrot.lane.b32.xlu2 %v4717_v10, %s3719_s14  ;;  %s3746_s14 = smov 104  }
 0xbec   : > { %3026 = vperm.xlu0 %3528, %v4673_v31  }
 0xbf3   : > { %2993 = vrot.lane.b32.xlu2 %v4717_v10, %s3687_s11 }
 0xbfb   : > { %3009 = vrot.lane.b32.xlu2 %v4717_v10, %s3722_s17  ;;  %s355_s17 = scalar_lea.vmem %s4880_s8, %s3384_s12 }
 0xc03   : > { %3018 = vperm.xlu2 %3527, %v4673_v31  }
 0xc0b   : > { %3135 = vrot.lane.b32.xlu2 %v4760_v42, %s3745_s13 }
 0xc13   : > { %3085 = vrot.lane.b32.xlu2 %v4760_v42, %s3746_s14 }
 0xc1d   : > { %v2888_v50 = vpop.permute.xlu2 %2887 }
 0xc25   : > { %v2904_v52 = vpop.permute.xlu2 %2903 }
 0xc2d   : > { %v2920_v56 = vpop.permute.xlu2 %2919 }
 0xc35   : > { %v2922_v0 = vpop.permute.xlu2 %2921 }
 0xc36   : > { %v2906_v38 = vpop.permute.xlu0 %2905  ;;  %v2890_v43 = vpop.permute.xlu1 %2889  ;;  %v2923_v15 = vsel %vm2531_vm10, %v2920_v56, %v2922_v0  ;;  %v2924_v3 = vsel %vm2531_vm10, %v2922_v0, %v2920_v56  ;;  %v4936_v0 = vperm.slane %v4140_v39, 0  ;;  %vm4943_vm10 = vcmask 31744  }
 0xc37   : > { %v2907_v58 = vsel %vm2507_vm9, %v2904_v52, %v2906_v38  ;;  %v2908_v61 = vsel %vm2507_vm9, %v2906_v38, %v2904_v52  ;;  %v2891_v35 = vsel %vm2484_vm7, %v2888_v50, %v2890_v43  ;;  %v2892_v51 = vsel %vm2484_vm7, %v2890_v43, %v2888_v50  ;;  %vm4945_vm15 = vmmov %vm4943_vm10 }
 0xc38   : > { %v2909_v41 = vmul.f32 %v2908_v61, %v4930_v19  ;;  %v2910_v59 = vmul.f32 %v2907_v58, %v4931_v48  ;;  %v2893_v44 = vmul.f32 %v2892_v51, %v4932_v8  ;;  %v2894_v40 = vmul.f32 %v2891_v35, %v2490_v20 }
 0xc39   : > { %v2925_v30 = vmul.f32 %v2924_v3, %v4933_v36  ;;  %v2926_v2 = vmul.f32 %v2923_v15, %v2538_v17  ;;  %v4935_v50 = vperm.slane %v4934_v13, 0  ;;  %v3747_v8 = vmov 73  }
 0xc3a   : > { %v2915_v14 = vmul.f32 %v2913_v32, %v2909_v41  ;;  %v2916_v18 = vmul.f32 %v2913_v32, %v2910_v59  ;;  %v2899_v25 = vmul.f32 %v2897_v28, %v2893_v44  ;;  %v2900_v45 = vmul.f32 %v2897_v28, %v2894_v40  ;;  %3529 = vset.pattern.permute.xlu1 %v3747_v8 }
 0xc3b   : > { %v2951_v52 = vmul.f32 %v4717_v10, %v4935_v50  ;;  %v2952_v32 = vmul.f32 %v4719_v49, %v2579_v34  ;;  %v2931_v17 = vmul.f32 %v2929_v16, %v2925_v30  ;;  %v2932_v56 = vmul.f32 %v2929_v16, %v2926_v2  ;;  %3032 = vperm.xlu1 %3529, %v4673_v31  }
 0xc3c   : > { %v2917_v7 = vadd.f32 %v2915_v14, %v2899_v25  ;;  %v2918_v24 = vadd.f32 %v2916_v18, %v2900_v45  ;;  %vm4937_vm7 = vcmp.lt.s32.totalorder %v4075_v22, 127  ;;  %v4940_v2 = vperm.slane %v4526_v12, 1 }
 0xc3d   : > { %v2964_v6 = vpop.permute.xlu2 %2963  ;;  %v2957_v35 = vmul.f32 %v2955_v21, %v2951_v52  ;;  %v2958_v34 = vmul.f32 %v2955_v21, %v2952_v32  ;;  %vm4938_vm9 = vmmov %vm4937_vm7  ;;  %v4939_v21 = vperm.slane %v4189_v37, 0  ;;  %v2454_v12 = vadd.f32 %v4699_v26, %v4691_v23 }
 0xc3e   : > { %v2938_v20 = vpop.permute.xlu1 %2937  ;;  %v2936_v1 = vpop.permute.xlu0 %2935  ;;  %v2933_v58 = vadd.f32 %v2931_v17, %v2917_v7  ;;  %v2934_v10 = vadd.f32 %v2932_v56, %v2918_v24 }
 0xc3f   : > { %v2939_v28 = vsel %vm2555_vm11, %v2936_v1, %v2938_v20  ;;  %v2940_v33 = vsel %vm2555_vm11, %v2938_v20, %v2936_v1  ;;  %vm4944_vm11 = vmmov %vm4943_vm10 }
 0xc40   : > { %v2941_v38 = vmul.f32 %v2940_v33, %v4936_v0  ;;  %v2942_v43 = vmul.f32 %v2939_v28, %v2562_v53 }
 0xc42   : > { %v2947_v61 = vmul.f32 %v2945_v4, %v2941_v38  ;;  %v2948_v63 = vmul.f32 %v2945_v4, %v2942_v43 }
 0xc44   : > { %v2949_v49 = vadd.f32 %v2947_v61, %v2933_v58  ;;  %v2950_v51 = vadd.f32 %v2948_v63, %v2934_v10  ;;  %v4941_v61 = vld [vmem:[#allocation10_spill] sm:$0xff] }
 0xc45   : > { %v2978_v19 = vpop.permute.xlu2 %2977 }
 0xc46   : > { %v2959_v41 = vadd.f32 %v2957_v35, %v2949_v49  ;;  %v2960_v48 = vadd.f32 %v2958_v34, %v2950_v51  ;;  %v2980_v59 = vpop.permute.xlu0 %2979  ;;  %v2962_v16 = vpop.permute.xlu1 %2961  ;;  %v4942_v35 = vld [vmem:[#allocation9_spill] sm:$0xff] }
 0xc47   : > { %v2965_v39 = vsel %vm4937_vm7, %v2962_v16, %v2964_v6  ;;  %v2966_v53 = vsel %vm4938_vm9, %v2964_v6, %v2962_v16  ;;  %v2981_v3 = vsel %vm2620_vm4, %v2978_v19, %v2980_v59  ;;  %v2982_v31 = vsel %vm2620_vm4, %v2980_v59, %v2978_v19  ;;  %vm4946_vm4 = vmmov %vm4943_vm10 }
 0xc48   : > { %v2967_v40 = vmul.f32 %v2965_v39, %v4939_v21  ;;  %v2968_v15 = vmul.f32 %v2966_v53, %v2603_v27  ;;  %v2983_v37 = vmul.f32 %v2981_v3, %v2626_v46  ;;  %v2984_v27 = vmul.f32 %v2982_v31, %v2627_v9 }
 0xc4a   : > { %v2973_v25 = vmul.f32 %v4764_v60, %v2967_v40  ;;  %v2974_v45 = vmul.f32 %v4764_v60, %v2968_v15  ;;  %v2989_v46 = vmul.f32 %v4766_v54, %v2983_v37  ;;  %v2990_v11 = vmul.f32 %v4766_v54, %v2984_v27  ;;  %v3572_v40 = vld [vmem:[%s3860_s15 + $0x8] sm:$0xff] }
 0xc4b   : > { %v2474_v54 = vadd.f32 %v4706_v55, %v2454_v12 }
 0xc4c   : > { %v2975_v20 = vadd.f32 %v2973_v25, %v2959_v41  ;;  %v2976_v1 = vadd.f32 %v2974_v45, %v2960_v48 }
 0xc4d   : > { %v2994_v4 = vpop.permute.xlu2 %2993  ;;  %v2477_v63 = vadd.f32 %v2474_v54, %v4941_v61 }
 0xc4e   : > { %v2996_v44 = vpop.permute.xlu0 %2995  ;;  %v3003_v24 = vpop.permute.xlu1 %3002  ;;  %v2992_v52 = vadd.f32 %v2990_v11, %v2976_v1 }
 0xc4f   : > { %v2997_v14 = vsel %vm2644_vm0, %v2994_v4, %v2996_v44  ;;  %v2998_v18 = vsel %vm2644_vm0, %v2996_v44, %v2994_v4  ;;  %vm4947_vm0 = vmmov %vm4946_vm4  ;;  %v3571_v44 = vld [vmem:[%s3860_s15] sm:$0xff] }
 0xc50   : > { %v2999_v30 = vmul.f32 %v2997_v14, %v2650_v47  ;;  %v3000_v6 = vmul.f32 %v2998_v18, %v4940_v2  ;;  %v2991_v47 = vadd.f32 %v2989_v46, %v2975_v20 }
 0xc52   : > { %v3005_v9 = vmul.f32 %v3003_v24, %v2999_v30  ;;  %v3006_v50 = vmul.f32 %v3003_v24, %v3000_v6 }
 0xc54   : > { %v3007_v22 = vadd.f32 %v3005_v9, %v2991_v47  ;;  %v3008_v17 = vadd.f32 %v3006_v50, %v2992_v52 }
 0xc55   : > { %v3010_v36 = vpop.permute.xlu2 %3009 }
 0xc56   : > { %v3012_v7 = vpop.permute.xlu0 %3011  ;;  %v3036_v26 = vpop.permute.xlu1 %3035 }
 0xc57   : > { %v3013_v60 = vsel %vm2668_vm1, %v3010_v36, %v3012_v7  ;;  %v3014_v13 = vsel %vm2668_vm1, %v3012_v7, %v3010_v36  ;;  %vm4948_vm1 = vmmov %vm4947_vm0 }
 0xc58   : > { %v3015_v32 = vmul.f32 %v3013_v60, %v2674_v5  ;;  %v3016_v28 = vmul.f32 %v3014_v13, %v2675_v62  ;;  %v2476_v5 = vadd.f32 %v4693_v57, %v4942_v35  ;;  %v3748_v62 = vmov 28  }
 0xc59   : > { %3530 = vset.pattern.permute.xlu0 %v3748_v62 }
 0xc5a   : > { %3186 = vperm.xlu0 %3530, %v4760_v42  }
 0xc5d   : > { %v3019_v33 = vpop.permute.xlu2 %3018 }
 0xc5e   : > { %v3021_v56 = vmul.f32 %v3019_v33, %v3015_v32  ;;  %v3022_v0 = vmul.f32 %v3019_v33, %v3016_v28  ;;  %v3027_v38 = vpop.permute.xlu0 %3026 }
 0xc60   : > { %v3023_v43 = vadd.f32 %v3021_v56, %v3007_v22  ;;  %v3024_v58 = vadd.f32 %v3022_v0, %v3008_v17 }
 0xc62   : > { %v3029_v10 = vadd.f32 %v3027_v38, %v3023_v43  ;;  %v3030_v23 = vadd.f32 %v3027_v38, %v3024_v58 }
 0xc64   : > { %3370 = vmatpush.msk.msrb.mxu2 %vm1345_vm14, %v3029_v10  ;;  %3372 = vmatpush.msk.msrb.mxu3 %vm1345_vm14, %v3030_v23 }
 0xc65   : > { %3371 = vmatmul.msk.f32.vlgmr.msrb.gmra.mxu2 %vm4943_vm10, %v3036_v26  ;;  %3373 = vmatmul.msk.f32.vlgmr.msrb.gmra.mxu3 %vm4944_vm11, %v3036_v26  ;;  %v3136_v29 = vpop.permute.xlu2 %3135 }
 0xc66   : > { %3378 = vmatpush.msk.msra.mxu2 %vm1345_vm14, %v2476_v5  ;;  %3380 = vmatpush.msk.msra.mxu3 %vm1345_vm14, %v2477_v63 }
 0xc6d   : > { %3379 = vmatmul.msk.f32.vlgmr.msra.gmra.mxu2 %vm4945_vm15, %v3136_v29  ;;  %3381 = vmatmul.msk.f32.vlgmr.msra.gmra.mxu3 %vm4946_vm4, %v3136_v29  ;;  %v3086_v19 = vpop.permute.xlu2 %3085 }
 0xcad   : > { %v3033_v57 = vpop.permute.xlu1 %3032 }
 0xccc   : > { %v3187_v41 = vpop.permute.xlu0 %3186 }
 0xce8   : > { %v3062_v55 = vpop.f32.mrf.mxu2  ;;  %v3082_v34 = vpop.f32.mrf.mxu3 }
 0xce9   : > { %v3063_v49 = vadd.f32 %v3062_v55, %v3033_v57  ;;  %v3083_v51 = vadd.f32 %v3082_v34, %v3033_v57 }
 0xceb   : > { %3374 = vmatpush.msk.msra.mxu0 %vm1345_vm14, %v3063_v49  ;;  %3376 = vmatpush.msk.msra.mxu1 %vm1345_vm14, %v3083_v51 }
 0xcec   : > { %3375 = vmatmul.msk.f32.vlgmr.msra.gmra.mxu0 %vm4947_vm0, %v3086_v19  ;;  %3377 = vmatmul.msk.f32.vlgmr.msra.gmra.mxu1 %vm4948_vm1, %v3086_v19 }
 0xcf0   : > { %v3162_v48 = vpop.f32.mrf.mxu2  ;;  %v3182_v42 = vpop.f32.mrf.mxu3 }
 0xd69   : > { %v3112_v59 = vpop.f32.mrf.mxu0  ;;  %v3132_v8 = vpop.f32.mrf.mxu1 }
 0xd6a   : > { %v3163_v16 = vadd.f32 %v3162_v48, %v3112_v59  ;;  %v3183_v39 = vadd.f32 %v3182_v42, %v3132_v8 }
 0xd6c   : > { %v3189_v53 = vadd.f32 %v3187_v41, %v3163_v16  ;;  %v3190_v4 = vadd.f32 %v3187_v41, %v3183_v39 }
 0xd6e   : > { %v3191_v21 = vadd.f32 %v3571_v44, %v3189_v53  ;;  %v3192_v15 = vadd.f32 %v3572_v40, %v3190_v4 }
 0xd70   : > { %3193 = vst [vmem:[%s355_s17] sm:$0xff] %v3191_v21 }
 0xd71   : > { %3194 = vst [vmem:[%s355_s17 + $0x8] sm:$0xff] %v3192_v15 }
 0xd72 PF: > { %s20_s27 = sadd.s32 1, %s3677_s27  }
 0xd73   : > { %p17_p7 = scmp.ge.s32.totalorder %s20_s27, 4  }
 0xd75   :  { %19 = sbr.rel (!%p17_p7) target bundleno = 2 (0x2), region = 103 }
 0xd7a   :  { %3216 = vsyncpa [#allocation3], 1 }
 0xd7b   :  { %3218 = vsyncpa [#allocation3 + $0x1], 1 }
 0xd7c   :  { %3219 = vsyncpa [#allocation5], 1 }

</bundles_post_ra>
